<compile_context>
chip_gen: v6e
topology: v6e:2x2x1
jax: 0.10.0
libtpu: 0.0.40
codegen_flags: <defaults>
</compile_context>

<pallas_src>
import functools

import jax
import jax.numpy as jnp
import numpy as np
from jax.experimental import pallas as pl
from jax.experimental.pallas import tpu as pltpu

EPS = 1e-5
LANE = 128
PIXEL_TILE_CAP = 512            # pixel rows per tile for the 1x1-conv passes
COUT_TILE_CAP = 512             # output-channel tile for the final pass


def _rup(x, m):
    return (x + m - 1) // m * m


def _pick_pixel_tile(nhw, cap=PIXEL_TILE_CAP):
    """Full-dim block when small, otherwise a fixed 8-aligned cap (cdiv grid + masked tail)."""
    if nhw <= cap:
        return nhw
    return cap  # cap is a multiple of 8; ragged last tile handled by cdiv + masking


def _pick_channel_tile(cp, cap=COUT_TILE_CAP):
    """Largest multiple of LANE that divides cp and is <= cap."""
    nb = cp // LANE
    best = 1
    for cand in range(1, nb + 1):
        if nb % cand == 0 and cand * LANE <= cap:
            best = cand
    return best * LANE


def _vmem_limit_bytes():
    cap = 64 * 1024 * 1024
    try:
        info = pltpu.get_tpu_info()
        cap = int(getattr(info, "vmem_capacity_bytes", cap)) or cap
    except Exception:
        pass
    # leave headroom for the compiler's internal scratch / double buffering
    return int(min(max(cap * 3 // 4, 32 * 1024 * 1024), 112 * 1024 * 1024))


# ----------------- pass A: bn2a + relu + 1x1 conv_branch2a + partial stats of y1 -----------------
def _make_passA_kernel(cdtype, want_xbn, nhw, tile):
    need_mask = (nhw % tile) != 0

    def kernel(x_ref, sa_ref, ba_ref, w2a_ref, *out_refs):
        if want_xbn:
            y1_ref, st_ref, xbn_ref = out_refs
        else:
            y1_ref, st_ref = out_refs
        t = jnp.maximum(x_ref[...] * sa_ref[...] + ba_ref[...], 0.0)        # f32
        if want_xbn:
            xbn_ref[...] = t
        y1 = jnp.dot(t.astype(cdtype), w2a_ref[...],
                     preferred_element_type=jnp.float32)                    # (T, C4p) f32
        y1_ref[...] = y1.astype(y1_ref.dtype)
        if need_mask:  # ragged last tile: keep padded rows out of the BN statistics
            rows = (pl.program_id(0) * tile
                    + jax.lax.broadcasted_iota(jnp.int32, (tile, 1), 0))
            y1 = jnp.where(rows < nhw, y1, 0.0)
        st_ref[0, 0:1, :] = jnp.sum(y1, axis=0, keepdims=True)
        st_ref[0, 1:2, :] = jnp.sum(y1 * y1, axis=0, keepdims=True)

    return kernel


# ------ pass B: bn2b1 + relu + dilated 3x3 conv as ky-accumulated matmuls + stats of y2 ------
def _make_passB_kernel(H, W, C4p, d, cdtype):
    HW = H * W

    def kernel(y1_ref, sb_ref, bb_ref, wk_ref, y2_ref, st_ref, pad_ref, acc_ref):
        ky = pl.program_id(1)                                               # 0..2, "arbitrary"

        @pl.when(ky == 0)
        def _():
            z = jnp.maximum(y1_ref[0].astype(jnp.float32) * sb_ref[...] + bb_ref[...], 0.0)
            # Zero only the halo strips of the padded buffer, then write the interior once.
            zeros_row = jnp.zeros((d, W + 2 * d, C4p), jnp.float32)
            zeros_col = jnp.zeros((H, d, C4p), jnp.float32)
            pad_ref[0:d, :, :] = zeros_row
            pad_ref[H + d:H + 2 * d, :, :] = zeros_row
            pad_ref[d:d + H, 0:d, :] = zeros_col
            pad_ref[d:d + H, W + d:W + 2 * d, :] = zeros_col
            pad_ref[d:d + H, d:d + W, :] = z
            acc_ref[...] = jnp.zeros_like(acc_ref)

        # One kernel-row (3 taps) per grid step; weight block for this row is streamed in.
        # Dynamic offset only on the outermost (row) dim; kx offsets stay static.
        row0 = ky * d
        for kx in range(3):
            win = pad_ref[pl.ds(row0, H), kx * d:kx * d + W, :]             # (H, W, C4p)
            acc_ref[...] += jnp.dot(win.reshape(HW, C4p).astype(cdtype),
                                    wk_ref[0, kx],
                                    preferred_element_type=jnp.float32)

        @pl.when(ky == 2)
        def _():
            acc = acc_ref[...]
            y2_ref[0] = acc.astype(y2_ref.dtype)
            st_ref[0, 0:1, :] = jnp.sum(acc, axis=0, keepdims=True)
            st_ref[0, 1:2, :] = jnp.sum(acc * acc, axis=0, keepdims=True)

    return kernel


# --------- pass C: bn2b2+relu + final 1x1 conv + branch1 (recomputed from x) + add ---------
def _make_passC_kernel(cdtype):
    def kernel(x_ref, sa_ref, ba_ref, w1_ref, y2_ref, sc_ref, bc_ref, w2_ref, out_ref):
        t = jnp.maximum(x_ref[...] * sa_ref[...] + ba_ref[...], 0.0).astype(cdtype)
        u = jnp.maximum(y2_ref[...].astype(jnp.float32) * sc_ref[...] + bc_ref[...],
                        0.0).astype(cdtype)
        out_ref[...] = (jnp.dot(t, w1_ref[...], preferred_element_type=jnp.float32)
                        + jnp.dot(u, w2_ref[...], preferred_element_type=jnp.float32))
    return kernel


# --------------------------------- BN finalization helpers ---------------------------------
def _affine_from_stats(mean, var, gamma, beta):
    scale = gamma * jax.lax.rsqrt(var + EPS)
    bias = beta - mean * scale
    return scale.reshape(1, -1), bias.reshape(1, -1)


def _finalize_bn(partials, gamma, beta, count):
    """partials: (G, 8, Cp); rows 0/1 hold per-tile sum / sum-of-squares."""
    s = jnp.sum(partials[:, 0, :], axis=0)
    ss = jnp.sum(partials[:, 1, :], axis=0)
    mean = s / count
    # Single-pass biased variance; clamped against f32 cancellation.
    var = jnp.maximum(ss / count - mean * mean, 0.0)
    return _affine_from_stats(mean, var, gamma, beta)


def resblock_bot_forward(x_nchw, params, *, stride=1, dilation=1,
                         get_x_bn_relu=False, compute_dtype=jnp.bfloat16):
    """ResBlock_bot.forward. x: (N, Cin, H, W) NCHW, returns NCHW like PyTorch."""
    # TODO(synk): stride > 1 and Dropout2d with p > 0 (training-mode RNG) not implemented.
    assert stride == 1, "stride > 1 not implemented"
    f32 = jnp.float32
    N, Cin, H, W = x_nchw.shape
    w2a, w2b1 = params["conv_branch2a"], params["conv_branch2b1"]
    w2b2, w1 = params["conv_branch2b2"], params["conv_branch1"]
    C4, C2, Cout = w2a.shape[0], w2b1.shape[0], w2b2.shape[0]
    d = int(dilation)
    assert d >= 1

    Cin_p, C4_p, C2_p, Cout_p = (_rup(c, LANE) for c in (Cin, C4, C2, Cout))
    NHW, HW = N * H * W, H * W
    TILE = _pick_pixel_tile(NHW)
    G = pl.cdiv(NHW, TILE)
    TCOUT = _pick_channel_tile(Cout_p)
    NJ = Cout_p // TCOUT
    vmem_limit = _vmem_limit_bytes()

    # ------------- layout glue: NCHW -> flattened NHWC, channels lane-padded -------------
    x_flat = jnp.transpose(x_nchw, (0, 2, 3, 1)).astype(f32).reshape(NHW, Cin)
    x_flat = jnp.pad(x_flat, ((0, 0), (0, Cin_p - Cin)))

    def mat(w, rows, cols):  # 1x1 conv (O, I, 1, 1) -> padded (I_p, O_p), compute dtype
        m = jnp.transpose(w[:, :, 0, 0], (1, 0)).astype(compute_dtype)
        return jnp.pad(m, ((0, rows - m.shape[0]), (0, cols - m.shape[1])))

    w2a_m = mat(w2a, Cin_p, C4_p)
    w1_m = mat(w1, Cin_p, Cout_p)
    w2b2_m = mat(w2b2, C2_p, Cout_p)
    w2b1_taps = jnp.transpose(w2b1, (2, 3, 1, 0)).astype(compute_dtype)      # (3,3,C4,C2)
    w2b1_taps = jnp.pad(w2b1_taps, ((0, 0), (0, 0), (0, C4_p - C4), (0, C2_p - C2)))

    def vec(v, cp):
        return jnp.pad(v.astype(f32), (0, cp - v.shape[0]))                  # 1-D (cp,)

    g2a, b2a = vec(params["bn_branch2a_gamma"], Cin_p), vec(params["bn_branch2a_beta"], Cin_p)
    g2b1, b2b1 = vec(params["bn_branch2b1_gamma"], C4_p), vec(params["bn_branch2b1_beta"], C4_p)
    g2b2, b2b2 = vec(params["bn_branch2b2_gamma"], C2_p), vec(params["bn_branch2b2_beta"], C2_p)

    # --------- x statistics in plain JAX (fused by XLA into the transpose/pad producer) ---------
    mean_x = jnp.mean(x_flat, axis=0)
    var_x = jnp.mean(jnp.square(x_flat - mean_x[None, :]), axis=0)           # biased, two-pass
    sa, ba = _affine_from_stats(mean_x, var_x, g2a, b2a)

    # ------------- pass A: bn2a+relu, 1x1 conv_branch2a, partial stats of y1 -------------
    out_shapeA = [jax.ShapeDtypeStruct((NHW, C4_p), compute_dtype),
                  jax.ShapeDtypeStruct((G, 8, C4_p), f32)]
    out_specsA = [pl.BlockSpec((TILE, C4_p), lambda i: (i, 0)),
                  pl.BlockSpec((1, 8, C4_p), lambda i: (i, 0, 0))]
    if get_x_bn_relu:
        out_shapeA.append(jax.ShapeDtypeStruct((NHW, Cin_p), f32))
        out_specsA.append(pl.BlockSpec((TILE, Cin_p), lambda i: (i, 0)))
    resA = pl.pallas_call(
        _make_passA_kernel(compute_dtype, get_x_bn_relu, NHW, TILE),
        out_shape=tuple(out_shapeA),
        grid=(G,),
        in_specs=[pl.BlockSpec((TILE, Cin_p), lambda i: (i, 0)),
                  pl.BlockSpec((1, Cin_p), lambda i: (0, 0)),
                  pl.BlockSpec((1, Cin_p), lambda i: (0, 0)),
                  pl.BlockSpec((Cin_p, C4_p), lambda i: (0, 0))],
        out_specs=tuple(out_specsA),
        compiler_params=pltpu.CompilerParams(
            dimension_semantics=("parallel",), vmem_limit_bytes=vmem_limit),
    )(x_flat, sa, ba, w2a_m)
    y1, st_y1 = resA[0], resA[1]
    xbn = resA[2] if get_x_bn_relu else None
    sb, bb = _finalize_bn(st_y1, g2b1, b2b1, NHW)

    # ----- pass B: bn2b1+relu, dilated 3x3 conv as tap-accumulated matmuls, stats of y2 -----
    # TODO(synk): for very large H*W*C2 on v7x (64 MiB VMEM) also tile this pass over rows.
    y2, st_y2 = pl.pallas_call(
        _make_passB_kernel(H, W, C4_p, d, compute_dtype),
        out_shape=(jax.ShapeDtypeStruct((N, HW, C2_p), compute_dtype),
                   jax.ShapeDtypeStruct((N, 8, C2_p), f32)),
        grid=(N, 3),
        in_specs=[pl.BlockSpec((1, H, W, C4_p), lambda n, k: (n, 0, 0, 0)),
                  pl.BlockSpec((1, C4_p), lambda n, k: (0, 0)),
                  pl.BlockSpec((1, C4_p), lambda n, k: (0, 0)),
                  pl.BlockSpec((1, 3, C4_p, C2_p), lambda n, k: (k, 0, 0, 0))],
        out_specs=(pl.BlockSpec((1, HW, C2_p), lambda n, k: (n, 0, 0)),
                   pl.BlockSpec((1, 8, C2_p), lambda n, k: (n, 0, 0))),
        scratch_shapes=[pltpu.VMEM((H + 2 * d, W + 2 * d, C4_p), f32),
                        pltpu.VMEM((HW, C2_p), f32)],
        compiler_params=pltpu.CompilerParams(
            dimension_semantics=("parallel", "arbitrary"), vmem_limit_bytes=vmem_limit),
    )(y1.reshape(N, H, W, C4_p), sb, bb, w2b1_taps)
    sc, bc = _finalize_bn(st_y2, g2b2, b2b2, NHW)

    # -------- pass C: bn2b2+relu, final 1x1 conv, branch1 recomputed from x, residual add --------
    y2_flat = y2.reshape(NHW, C2_p)
    out_flat = pl.pallas_call(
        _make_passC_kernel(compute_dtype),
        out_shape=jax.ShapeDtypeStruct((NHW, Cout_p), f32),
        grid=(NJ, G),
        in_specs=[pl.BlockSpec((TILE, Cin_p), lambda j, i: (i, 0)),
                  pl.BlockSpec((1, Cin_p), lambda j, i: (0, 0)),
                  pl.BlockSpec((1, Cin_p), lambda j, i: (0, 0)),
                  pl.BlockSpec((Cin_p, TCOUT), lambda j, i: (0, j)),
                  pl.BlockSpec((TILE, C2_p), lambda j, i: (i, 0)),
                  pl.BlockSpec((1, C2_p), lambda j, i: (0, 0)),
                  pl.BlockSpec((1, C2_p), lambda j, i: (0, 0)),
                  pl.BlockSpec((C2_p, TCOUT), lambda j, i: (0, j))],
        out_specs=pl.BlockSpec((TILE, TCOUT), lambda j, i: (i, j)),
        compiler_params=pltpu.CompilerParams(
            dimension_semantics=("parallel", "parallel"), vmem_limit_bytes=vmem_limit),
    )(x_flat, sa, ba, w1_m, y2_flat, sc, bc, w2b2_m)

    out = jnp.transpose(out_flat[:, :Cout].reshape(N, H, W, Cout), (0, 3, 1, 2))
    if get_x_bn_relu:
        xbr = jnp.transpose(xbn[:, :Cin].reshape(N, H, W, Cin), (0, 3, 1, 2))
        return out, xbr
    return out


# --------------------------- pure-JAX reference (sanity check) ---------------------------
def _ref_resblock_bot(x, params, stride=1, dilation=1):
    def bn(v, gamma, beta):
        mean = jnp.mean(v, axis=(0, 2, 3), keepdims=True)
        var = jnp.mean((v - mean) ** 2, axis=(0, 2, 3), keepdims=True)
        return ((v - mean) * jax.lax.rsqrt(var + EPS) * gamma.reshape(1, -1, 1, 1)
                + beta.reshape(1, -1, 1, 1))

    def conv(v, w, stride=1, dilation=1, padding=0):
        return jax.lax.conv_general_dilated(
            v, w, window_strides=(stride, stride),
            padding=((padding, padding), (padding, padding)),
            rhs_dilation=(dilation, dilation),
            dimension_numbers=("NCHW", "OIHW", "NCHW"))

    t = jax.nn.relu(bn(x, params["bn_branch2a_gamma"], params["bn_branch2a_beta"]))
    b1 = conv(t, params["conv_branch1"], stride=stride)
    b2 = conv(t, params["conv_branch2a"], stride=stride)
    b2 = jax.nn.relu(bn(b2, params["bn_branch2b1_gamma"], params["bn_branch2b1_beta"]))
    b2 = conv(b2, params["conv_branch2b1"], dilation=dilation, padding=dilation)
    b2 = jax.nn.relu(bn(b2, params["bn_branch2b2_gamma"], params["bn_branch2b2_beta"]))
    b2 = conv(b2, params["conv_branch2b2"])
    return b1 + b2, t


if __name__ == "__main__":
    key = jax.random.PRNGKey(0)
    ks = jax.random.split(key, 11)
    N, Cin, Cout, H, W = 2, 4, 8, 16, 16
    C4, C2 = Cout // 4, Cout // 2

    x = jax.random.normal(ks[0], (N, Cin, H, W), dtype=jnp.float32)
    params = {
        "bn_branch2a_gamma":  1.0 + 0.1 * jax.random.normal(ks[1], (Cin,), jnp.float32),
        "bn_branch2a_beta":   0.1 * jax.random.normal(ks[2], (Cin,), jnp.float32),
        "conv_branch2a":      0.1 * jax.random.normal(ks[3], (C4, Cin, 1, 1), jnp.float32),
        "bn_branch2b1_gamma": 1.0 + 0.1 * jax.random.normal(ks[4], (C4,), jnp.float32),
        "bn_branch2b1_beta":  0.1 * jax.random.normal(ks[5], (C4,), jnp.float32),
        "conv_branch2b1":     0.1 * jax.random.normal(ks[6], (C2, C4, 3, 3), jnp.float32),
        "bn_branch2b2_gamma": 1.0 + 0.1 * jax.random.normal(ks[7], (C2,), jnp.float32),
        "bn_branch2b2_beta":  0.1 * jax.random.normal(ks[8], (C2,), jnp.float32),
        "conv_branch2b2":     0.1 * jax.random.normal(ks[9], (Cout, C2, 1, 1), jnp.float32),
        "conv_branch1":       0.1 * jax.random.normal(ks[10], (Cout, Cin, 1, 1), jnp.float32),
    }

    fwd = jax.jit(functools.partial(resblock_bot_forward, get_x_bn_relu=True))
    out, x_bn_relu = fwd(x, params)
    out = jax.block_until_ready(out)
    x_bn_relu = jax.block_until_ready(x_bn_relu)

    ref_out, ref_xbr = _ref_resblock_bot(x, params)
    assert out.shape == (N, Cout, H, W) and x_bn_relu.shape == (N, Cin, H, W)
    assert np.allclose(np.asarray(out), np.asarray(ref_out), atol=5e-2, rtol=5e-2), \
        float(np.max(np.abs(np.asarray(out) - np.asarray(ref_out))))
    assert np.allclose(np.asarray(x_bn_relu), np.asarray(ref_xbr), atol=5e-2, rtol=5e-2)

    print("KERNEL_OK")
</pallas_src>

<mosaic_0001>
module attributes {stable_mosaic.version = 11 : i64} {
  func.func @kernel(%arg0: i32, %arg1: memref<512x128xf32, #tpu.memory_space<vmem>>, %arg2: memref<1x128xf32, #tpu.memory_space<vmem>>, %arg3: memref<1x128xf32, #tpu.memory_space<vmem>>, %arg4: memref<128x128xbf16, #tpu.memory_space<vmem>>, %arg5: memref<512x128xbf16, #tpu.memory_space<vmem>>, %arg6: memref<1x8x128xf32, #tpu.memory_space<vmem>>, %arg7: memref<512x128xf32, #tpu.memory_space<vmem>>) attributes {dimension_semantics = [#tpu.dimension_semantics<parallel>], iteration_bounds = array<i64: 1>, scalar_prefetch = 0 : i64, scratch_operands = 0 : i64, tpu.core_type = #tpu.core_type<tc>, window_params = [{transform_indices = @transform_0, window_bounds = array<i64: 512, 128>}, {pipeline_mode = #tpu.pipeline_mode<synchronous>, transform_indices = @transform_1, window_bounds = array<i64: 1, 128>}, {pipeline_mode = #tpu.pipeline_mode<synchronous>, transform_indices = @transform_2, window_bounds = array<i64: 1, 128>}, {pipeline_mode = #tpu.pipeline_mode<synchronous>, transform_indices = @transform_3, window_bounds = array<i64: 128, 128>}, {transform_indices = @transform_4, window_bounds = array<i64: 512, 128>}, {transform_indices = @transform_5, window_bounds = array<i64: 1, 8, 128>}, {transform_indices = @transform_6, window_bounds = array<i64: 512, 128>}]} {
    %c0 = arith.constant 0 : index
    %c0_0 = arith.constant 0 : index
    %0 = vector.load %arg1[%c0, %c0_0] : memref<512x128xf32, #tpu.memory_space<vmem>>, vector<512x128xf32>
    %c0_1 = arith.constant 0 : index
    %c0_2 = arith.constant 0 : index
    %1 = vector.load %arg2[%c0_1, %c0_2] : memref<1x128xf32, #tpu.memory_space<vmem>>, vector<1x128xf32>
    %2 = vector.broadcast %1 : vector<1x128xf32> to vector<512x128xf32>
    %3 = arith.mulf %0, %2 : vector<512x128xf32>
    %c0_3 = arith.constant 0 : index
    %c0_4 = arith.constant 0 : index
    %4 = vector.load %arg3[%c0_3, %c0_4] : memref<1x128xf32, #tpu.memory_space<vmem>>, vector<1x128xf32>
    %5 = vector.broadcast %4 : vector<1x128xf32> to vector<512x128xf32>
    %6 = arith.addf %3, %5 : vector<512x128xf32>
    %cst = arith.constant 0.000000e+00 : f32
    %7 = vector.broadcast %cst : f32 to vector<512x128xf32>
    %8 = arith.maximumf %6, %7 : vector<512x128xf32>
    %c0_5 = arith.constant 0 : index
    %c0_6 = arith.constant 0 : index
    %9 = vector.load %arg7[%c0_5, %c0_6] : memref<512x128xf32, #tpu.memory_space<vmem>>, vector<512x128xf32>
    tpu.vector_store %arg7[%c0_5, %c0_6], %8 {strides = array<i32>} : memref<512x128xf32, #tpu.memory_space<vmem>>, vector<512x128xf32>,
    %10 = arith.truncf %8 : vector<512x128xf32> to vector<512x128xbf16>
    %c0_7 = arith.constant 0 : index
    %c0_8 = arith.constant 0 : index
    %11 = vector.load %arg4[%c0_7, %c0_8] : memref<128x128xbf16, #tpu.memory_space<vmem>>, vector<128x128xbf16>
    %cst_9 = arith.constant dense<0.000000e+00> : vector<512x128xf32>
    %12 = tpu.matmul %10, %11, %cst_9 {dimension_numbers = #tpu.dot_dimension_numbers<[1], [0], [0], [1], [0, 0, 1, 1], [], []>} : vector<512x128xbf16>, vector<128x128xbf16>, vector<512x128xf32> -> vector<512x128xf32>
    %13 = arith.truncf %12 : vector<512x128xf32> to vector<512x128xbf16>
    %c0_10 = arith.constant 0 : index
    %c0_11 = arith.constant 0 : index
    %14 = vector.load %arg5[%c0_10, %c0_11] : memref<512x128xbf16, #tpu.memory_space<vmem>>, vector<512x128xbf16>
    tpu.vector_store %arg5[%c0_10, %c0_11], %13 {strides = array<i32>} : memref<512x128xbf16, #tpu.memory_space<vmem>>, vector<512x128xbf16>,
    %cst_12 = arith.constant dense<0.000000e+00> : vector<128xf32>
    %15 = vector.multi_reduction <add>, %12, %cst_12 [0] : vector<512x128xf32> to vector<128xf32>
    %16 = vector.shape_cast %15 : vector<128xf32> to vector<1x128xf32>
    %c0_13 = arith.constant 0 : index
    %c0_14 = arith.constant 0 : index
    %c0_15 = arith.constant 0 : index
    %17 = vector.load %arg6[%c0_13, %c0_14, %c0_15] : memref<1x8x128xf32, #tpu.memory_space<vmem>>, vector<1x1x128xf32>
    %18 = vector.shape_cast %17 : vector<1x1x128xf32> to vector<1x128xf32>
    %19 = vector.shape_cast %16 : vector<1x128xf32> to vector<1x1x128xf32>
    tpu.vector_store %arg6[%c0_13, %c0_14, %c0_15], %19 {strides = array<i32>} : memref<1x8x128xf32, #tpu.memory_space<vmem>>, vector<1x1x128xf32>,
    %20 = arith.mulf %12, %12 : vector<512x128xf32>
    %cst_16 = arith.constant dense<0.000000e+00> : vector<128xf32>
    %21 = vector.multi_reduction <add>, %20, %cst_16 [0] : vector<512x128xf32> to vector<128xf32>
    %22 = vector.shape_cast %21 : vector<128xf32> to vector<1x128xf32>
    %c0_17 = arith.constant 0 : index
    %c1 = arith.constant 1 : index
    %c0_18 = arith.constant 0 : index
    %23 = vector.load %arg6[%c0_17, %c1, %c0_18] : memref<1x8x128xf32, #tpu.memory_space<vmem>>, vector<1x1x128xf32>
    %24 = vector.shape_cast %23 : vector<1x1x128xf32> to vector<1x128xf32>
    %25 = vector.shape_cast %22 : vector<1x128xf32> to vector<1x1x128xf32>
    tpu.vector_store %arg6[%c0_17, %c1, %c0_18], %25 {strides = array<i32>} : memref<1x8x128xf32, #tpu.memory_space<vmem>>, vector<1x1x128xf32>,
    return
  }
  func.func @transform_0(%arg0: i32) -> (i32, i32) {
    %c0_i32 = arith.constant 0 : i32
    %c0_i32_0 = arith.constant 0 : i32
    return %arg0, %c0_i32 : i32, i32
  }
  func.func @transform_1(%arg0: i32) -> (i32, i32) {
    %c0_i32 = arith.constant 0 : i32
    %c0_i32_0 = arith.constant 0 : i32
    %c0_i32_1 = arith.constant 0 : i32
    return %c0_i32, %c0_i32_0 : i32, i32
  }
  func.func @transform_2(%arg0: i32) -> (i32, i32) {
    %c0_i32 = arith.constant 0 : i32
    %c0_i32_0 = arith.constant 0 : i32
    %c0_i32_1 = arith.constant 0 : i32
    return %c0_i32, %c0_i32_0 : i32, i32
  }
  func.func @transform_3(%arg0: i32) -> (i32, i32) {
    %c0_i32 = arith.constant 0 : i32
    %c0_i32_0 = arith.constant 0 : i32
    %c0_i32_1 = arith.constant 0 : i32
    return %c0_i32, %c0_i32_0 : i32, i32
  }
  func.func @transform_4(%arg0: i32) -> (i32, i32) {
    %c0_i32 = arith.constant 0 : i32
    %c0_i32_0 = arith.constant 0 : i32
    return %arg0, %c0_i32 : i32, i32
  }
  func.func @transform_5(%arg0: i32) -> (i32, i32, i32) {
    %c0_i32 = arith.constant 0 : i32
    %c0_i32_0 = arith.constant 0 : i32
    %c0_i32_1 = arith.constant 0 : i32
    return %arg0, %c0_i32, %c0_i32_0 : i32, i32, i32
  }
  func.func @transform_6(%arg0: i32) -> (i32, i32) {
    %c0_i32 = arith.constant 0 : i32
    %c0_i32_0 = arith.constant 0 : i32
    return %arg0, %c0_i32 : i32, i32
  }
}

module attributes {stable_mosaic.version = 11 : i64} {
  func.func @kernel(%arg0: i32, %arg1: i32, %arg2: memref<1x16x16x128xbf16, #tpu.memory_space<vmem>>, %arg3: memref<1x128xf32, #tpu.memory_space<vmem>>, %arg4: memref<1x128xf32, #tpu.memory_space<vmem>>, %arg5: memref<1x3x128x128xbf16, #tpu.memory_space<vmem>>, %arg6: memref<1x256x128xbf16, #tpu.memory_space<vmem>>, %arg7: memref<1x8x128xf32, #tpu.memory_space<vmem>>, %arg8: memref<18x18x128xf32, #tpu.memory_space<vmem>>, %arg9: memref<256x128xf32, #tpu.memory_space<vmem>>) attributes {dimension_semantics = [#tpu.dimension_semantics<parallel>, #tpu.dimension_semantics<arbitrary>], iteration_bounds = array<i64: 2, 3>, scalar_prefetch = 0 : i64, scratch_operands = 2 : i64, tpu.core_type = #tpu.core_type<tc>, window_params = [{transform_indices = @transform_0, window_bounds = array<i64: 1, 16, 16, 128>}, {pipeline_mode = #tpu.pipeline_mode<synchronous>, transform_indices = @transform_1, window_bounds = array<i64: 1, 128>}, {pipeline_mode = #tpu.pipeline_mode<synchronous>, transform_indices = @transform_2, window_bounds = array<i64: 1, 128>}, {transform_indices = @transform_3, window_bounds = array<i64: 1, 3, 128, 128>}, {transform_indices = @transform_4, window_bounds = array<i64: 1, 256, 128>}, {transform_indices = @transform_5, window_bounds = array<i64: 1, 8, 128>}]} {
    %c0_i32 = arith.constant 0 : i32
    %0 = arith.cmpi eq, %arg1, %c0_i32 : i32
    %1 = arith.extui %0 : i1 to i32
    %c0_i32_0 = arith.constant 0 : i32
    %2 = arith.cmpi ne, %1, %c0_i32_0 : i32
    scf.if %2 {
      %c0_31 = arith.constant 0 : index
      %c0_32 = arith.constant 0 : index
      %c0_33 = arith.constant 0 : index
      %c0_34 = arith.constant 0 : index
      %37 = vector.load %arg2[%c0_31, %c0_32, %c0_33, %c0_34] : memref<1x16x16x128xbf16, #tpu.memory_space<vmem>>, vector<1x16x16x128xbf16>
      %38 = vector.shape_cast %37 : vector<1x16x16x128xbf16> to vector<16x16x128xbf16>
      %39 = arith.extf %38 : vector<16x16x128xbf16> to vector<16x16x128xf32>
      %c0_35 = arith.constant 0 : index
      %c0_36 = arith.constant 0 : index
      %40 = vector.load %arg3[%c0_35, %c0_36] : memref<1x128xf32, #tpu.memory_space<vmem>>, vector<1x128xf32>
      %41 = vector.shape_cast %40 : vector<1x128xf32> to vector<1x1x128xf32>
      %42 = vector.broadcast %41 : vector<1x1x128xf32> to vector<16x16x128xf32>
      %43 = arith.mulf %39, %42 : vector<16x16x128xf32>
      %c0_37 = arith.constant 0 : index
      %c0_38 = arith.constant 0 : index
      %44 = vector.load %arg4[%c0_37, %c0_38] : memref<1x128xf32, #tpu.memory_space<vmem>>, vector<1x128xf32>
      %45 = vector.shape_cast %44 : vector<1x128xf32> to vector<1x1x128xf32>
      %46 = vector.broadcast %45 : vector<1x1x128xf32> to vector<16x16x128xf32>
      %47 = arith.addf %43, %46 : vector<16x16x128xf32>
      %cst_39 = arith.constant 0.000000e+00 : f32
      %48 = vector.broadcast %cst_39 : f32 to vector<16x16x128xf32>
      %49 = arith.maximumf %47, %48 : vector<16x16x128xf32>
      %cst_40 = arith.constant 0.000000e+00 : f32
      %50 = vector.broadcast %cst_40 : f32 to vector<1x18x128xf32>
      %cst_41 = arith.constant 0.000000e+00 : f32
      %51 = vector.broadcast %cst_41 : f32 to vector<16x1x128xf32>
      %c0_42 = arith.constant 0 : index
      %c0_43 = arith.constant 0 : index
      %c0_44 = arith.constant 0 : index
      %52 = vector.load %arg8[%c0_42, %c0_43, %c0_44] : memref<18x18x128xf32, #tpu.memory_space<vmem>>, vector<1x18x128xf32>
      tpu.vector_store %arg8[%c0_42, %c0_43, %c0_44], %50 {strides = array<i32>} : memref<18x18x128xf32, #tpu.memory_space<vmem>>, vector<1x18x128xf32>,
      %c17 = arith.constant 17 : index
      %c0_45 = arith.constant 0 : index
      %c0_46 = arith.constant 0 : index
      %53 = vector.load %arg8[%c17, %c0_45, %c0_46] : memref<18x18x128xf32, #tpu.memory_space<vmem>>, vector<1x18x128xf32>
      tpu.vector_store %arg8[%c17, %c0_45, %c0_46], %50 {strides = array<i32>} : memref<18x18x128xf32, #tpu.memory_space<vmem>>, vector<1x18x128xf32>,
      %c1_47 = arith.constant 1 : index
      %c0_48 = arith.constant 0 : index
      %c0_49 = arith.constant 0 : index
      %54 = vector.load %arg8[%c1_47, %c0_48, %c0_49] : memref<18x18x128xf32, #tpu.memory_space<vmem>>, vector<16x1x128xf32>
      tpu.vector_store %arg8[%c1_47, %c0_48, %c0_49], %51 {strides = array<i32>} : memref<18x18x128xf32, #tpu.memory_space<vmem>>, vector<16x1x128xf32>,
      %c1_50 = arith.constant 1 : index
      %c17_51 = arith.constant 17 : index
      %c0_52 = arith.constant 0 : index
      %55 = vector.load %arg8[%c1_50, %c17_51, %c0_52] : memref<18x18x128xf32, #tpu.memory_space<vmem>>, vector<16x1x128xf32>
      tpu.vector_store %arg8[%c1_50, %c17_51, %c0_52], %51 {strides = array<i32>} : memref<18x18x128xf32, #tpu.memory_space<vmem>>, vector<16x1x128xf32>,
      %c1_53 = arith.constant 1 : index
      %c1_54 = arith.constant 1 : index
      %c0_55 = arith.constant 0 : index
      %56 = vector.load %arg8[%c1_53, %c1_54, %c0_55] : memref<18x18x128xf32, #tpu.memory_space<vmem>>, vector<16x16x128xf32>
      tpu.vector_store %arg8[%c1_53, %c1_54, %c0_55], %49 {strides = array<i32>} : memref<18x18x128xf32, #tpu.memory_space<vmem>>, vector<16x16x128xf32>,
      %cst_56 = arith.constant 0.000000e+00 : f32
      %57 = vector.broadcast %cst_56 : f32 to vector<256x128xf32>
      %c0_57 = arith.constant 0 : index
      %c0_58 = arith.constant 0 : index
      %58 = vector.load %arg9[%c0_57, %c0_58] : memref<256x128xf32, #tpu.memory_space<vmem>>, vector<256x128xf32>
      tpu.vector_store %arg9[%c0_57, %c0_58], %57 {strides = array<i32>} : memref<256x128xf32, #tpu.memory_space<vmem>>, vector<256x128xf32>,
    } else {
    }
    %c1_i32 = arith.constant 1 : i32
    %3 = arith.muli %arg1, %c1_i32 : i32
    %4 = arith.index_cast %3 : i32 to index
    %c0 = arith.constant 0 : index
    %c0_1 = arith.constant 0 : index
    %5 = vector.load %arg8[%4, %c0, %c0_1] : memref<18x18x128xf32, #tpu.memory_space<vmem>>, vector<16x16x128xf32>
    %c0_2 = arith.constant 0 : index
    %c0_3 = arith.constant 0 : index
    %6 = vector.load %arg9[%c0_2, %c0_3] : memref<256x128xf32, #tpu.memory_space<vmem>>, vector<256x128xf32>
    %7 = vector.shape_cast %5 : vector<16x16x128xf32> to vector<256x128xf32>
    %8 = arith.truncf %7 : vector<256x128xf32> to vector<256x128xbf16>
    %c0_4 = arith.constant 0 : index
    %c0_5 = arith.constant 0 : index
    %c0_6 = arith.constant 0 : index
    %c0_7 = arith.constant 0 : index
    %9 = vector.load %arg5[%c0_4, %c0_5, %c0_6, %c0_7] : memref<1x3x128x128xbf16, #tpu.memory_space<vmem>>, vector<1x1x128x128xbf16>
    %10 = vector.shape_cast %9 : vector<1x1x128x128xbf16> to vector<128x128xbf16>
    %cst = arith.constant dense<0.000000e+00> : vector<256x128xf32>
    %11 = tpu.matmul %8, %10, %cst {dimension_numbers = #tpu.dot_dimension_numbers<[1], [0], [0], [1], [0, 0, 1, 1], [], []>} : vector<256x128xbf16>, vector<128x128xbf16>, vector<256x128xf32> -> vector<256x128xf32>
    %12 = arith.addf %6, %11 : vector<256x128xf32>
    %c0_8 = arith.constant 0 : index
    %c0_9 = arith.constant 0 : index
    %13 = vector.load %arg9[%c0_8, %c0_9] : memref<256x128xf32, #tpu.memory_space<vmem>>, vector<256x128xf32>
    tpu.vector_store %arg9[%c0_8, %c0_9], %12 {strides = array<i32>} : memref<256x128xf32, #tpu.memory_space<vmem>>, vector<256x128xf32>,
    %14 = arith.index_cast %3 : i32 to index
    %c1 = arith.constant 1 : index
    %c0_10 = arith.constant 0 : index
    %15 = vector.load %arg8[%14, %c1, %c0_10] : memref<18x18x128xf32, #tpu.memory_space<vmem>>, vector<16x16x128xf32>
    %c0_11 = arith.constant 0 : index
    %c0_12 = arith.constant 0 : index
    %16 = vector.load %arg9[%c0_11, %c0_12] : memref<256x128xf32, #tpu.memory_space<vmem>>, vector<256x128xf32>
    %17 = vector.shape_cast %15 : vector<16x16x128xf32> to vector<256x128xf32>
    %18 = arith.truncf %17 : vector<256x128xf32> to vector<256x128xbf16>
    %c0_13 = arith.constant 0 : index
    %c1_14 = arith.constant 1 : index
    %c0_15 = arith.constant 0 : index
    %c0_16 = arith.constant 0 : index
    %19 = vector.load %arg5[%c0_13, %c1_14, %c0_15, %c0_16] : memref<1x3x128x128xbf16, #tpu.memory_space<vmem>>, vector<1x1x128x128xbf16>
    %20 = vector.shape_cast %19 : vector<1x1x128x128xbf16> to vector<128x128xbf16>
    %cst_17 = arith.constant dense<0.000000e+00> : vector<256x128xf32>
    %21 = tpu.matmul %18, %20, %cst_17 {dimension_numbers = #tpu.dot_dimension_numbers<[1], [0], [0], [1], [0, 0, 1, 1], [], []>} : vector<256x128xbf16>, vector<128x128xbf16>, vector<256x128xf32> -> vector<256x128xf32>
    %22 = arith.addf %16, %21 : vector<256x128xf32>
    %c0_18 = arith.constant 0 : index
    %c0_19 = arith.constant 0 : index
    %23 = vector.load %arg9[%c0_18, %c0_19] : memref<256x128xf32, #tpu.memory_space<vmem>>, vector<256x128xf32>
    tpu.vector_store %arg9[%c0_18, %c0_19], %22 {strides = array<i32>} : memref<256x128xf32, #tpu.memory_space<vmem>>, vector<256x128xf32>,
    %24 = arith.index_cast %3 : i32 to index
    %c2 = arith.constant 2 : index
    %c0_20 = arith.constant 0 : index
    %25 = vector.load %arg8[%24, %c2, %c0_20] : memref<18x18x128xf32, #tpu.memory_space<vmem>>, vector<16x16x128xf32>
    %c0_21 = arith.constant 0 : index
    %c0_22 = arith.constant 0 : index
    %26 = vector.load %arg9[%c0_21, %c0_22] : memref<256x128xf32, #tpu.memory_space<vmem>>, vector<256x128xf32>
    %27 = vector.shape_cast %25 : vector<16x16x128xf32> to vector<256x128xf32>
    %28 = arith.truncf %27 : vector<256x128xf32> to vector<256x128xbf16>
    %c0_23 = arith.constant 0 : index
    %c2_24 = arith.constant 2 : index
    %c0_25 = arith.constant 0 : index
    %c0_26 = arith.constant 0 : index
    %29 = vector.load %arg5[%c0_23, %c2_24, %c0_25, %c0_26] : memref<1x3x128x128xbf16, #tpu.memory_space<vmem>>, vector<1x1x128x128xbf16>
    %30 = vector.shape_cast %29 : vector<1x1x128x128xbf16> to vector<128x128xbf16>
    %cst_27 = arith.constant dense<0.000000e+00> : vector<256x128xf32>
    %31 = tpu.matmul %28, %30, %cst_27 {dimension_numbers = #tpu.dot_dimension_numbers<[1], [0], [0], [1], [0, 0, 1, 1], [], []>} : vector<256x128xbf16>, vector<128x128xbf16>, vector<256x128xf32> -> vector<256x128xf32>
    %32 = arith.addf %26, %31 : vector<256x128xf32>
    %c0_28 = arith.constant 0 : index
    %c0_29 = arith.constant 0 : index
    %33 = vector.load %arg9[%c0_28, %c0_29] : memref<256x128xf32, #tpu.memory_space<vmem>>, vector<256x128xf32>
    tpu.vector_store %arg9[%c0_28, %c0_29], %32 {strides = array<i32>} : memref<256x128xf32, #tpu.memory_space<vmem>>, vector<256x128xf32>,
    %c2_i32 = arith.constant 2 : i32
    %34 = arith.cmpi eq, %arg1, %c2_i32 : i32
    %35 = arith.extui %34 : i1 to i32
    %c0_i32_30 = arith.constant 0 : i32
    %36 = arith.cmpi ne, %35, %c0_i32_30 : i32
    scf.if %36 {
      %c0_31 = arith.constant 0 : index
      %c0_32 = arith.constant 0 : index
      %37 = vector.load %arg9[%c0_31, %c0_32] : memref<256x128xf32, #tpu.memory_space<vmem>>, vector<256x128xf32>
      %38 = arith.truncf %37 : vector<256x128xf32> to vector<256x128xbf16>
      %c0_33 = arith.constant 0 : index
      %c0_34 = arith.constant 0 : index
      %c0_35 = arith.constant 0 : index
      %39 = vector.load %arg6[%c0_33, %c0_34, %c0_35] : memref<1x256x128xbf16, #tpu.memory_space<vmem>>, vector<1x256x128xbf16>
      %40 = vector.shape_cast %39 : vector<1x256x128xbf16> to vector<256x128xbf16>
      %41 = vector.shape_cast %38 : vector<256x128xbf16> to vector<1x256x128xbf16>
      tpu.vector_store %arg6[%c0_33, %c0_34, %c0_35], %41 {strides = array<i32>} : memref<1x256x128xbf16, #tpu.memory_space<vmem>>, vector<1x256x128xbf16>,
      %cst_36 = arith.constant dense<0.000000e+00> : vector<128xf32>
      %42 = vector.multi_reduction <add>, %37, %cst_36 [0] : vector<256x128xf32> to vector<128xf32>
      %43 = vector.shape_cast %42 : vector<128xf32> to vector<1x128xf32>
      %c0_37 = arith.constant 0 : index
      %c0_38 = arith.constant 0 : index
      %c0_39 = arith.constant 0 : index
      %44 = vector.load %arg7[%c0_37, %c0_38, %c0_39] : memref<1x8x128xf32, #tpu.memory_space<vmem>>, vector<1x1x128xf32>
      %45 = vector.shape_cast %44 : vector<1x1x128xf32> to vector<1x128xf32>
      %46 = vector.shape_cast %43 : vector<1x128xf32> to vector<1x1x128xf32>
      tpu.vector_store %arg7[%c0_37, %c0_38, %c0_39], %46 {strides = array<i32>} : memref<1x8x128xf32, #tpu.memory_space<vmem>>, vector<1x1x128xf32>,
      %47 = arith.mulf %37, %37 : vector<256x128xf32>
      %cst_40 = arith.constant dense<0.000000e+00> : vector<128xf32>
      %48 = vector.multi_reduction <add>, %47, %cst_40 [0] : vector<256x128xf32> to vector<128xf32>
      %49 = vector.shape_cast %48 : vector<128xf32> to vector<1x128xf32>
      %c0_41 = arith.constant 0 : index
      %c1_42 = arith.constant 1 : index
      %c0_43 = arith.constant 0 : index
      %50 = vector.load %arg7[%c0_41, %c1_42, %c0_43] : memref<1x8x128xf32, #tpu.memory_space<vmem>>, vector<1x1x128xf32>
      %51 = vector.shape_cast %50 : vector<1x1x128xf32> to vector<1x128xf32>
      %52 = vector.shape_cast %49 : vector<1x128xf32> to vector<1x1x128xf32>
      tpu.vector_store %arg7[%c0_41, %c1_42, %c0_43], %52 {strides = array<i32>} : memref<1x8x128xf32, #tpu.memory_space<vmem>>, vector<1x1x128xf32>,
    } else {
    }
    return
  }
  func.func @transform_0(%arg0: i32, %arg1: i32) -> (i32, i32, i32, i32) {
    %c0_i32 = arith.constant 0 : i32
    %c0_i32_0 = arith.constant 0 : i32
    %c0_i32_1 = arith.constant 0 : i32
    %c0_i32_2 = arith.constant 0 : i32
    return %arg0, %c0_i32, %c0_i32_0, %c0_i32_1 : i32, i32, i32, i32
  }
  func.func @transform_1(%arg0: i32, %arg1: i32) -> (i32, i32) {
    %c0_i32 = arith.constant 0 : i32
    %c0_i32_0 = arith.constant 0 : i32
    %c0_i32_1 = arith.constant 0 : i32
    return %c0_i32, %c0_i32_0 : i32, i32
  }
  func.func @transform_2(%arg0: i32, %arg1: i32) -> (i32, i32) {
    %c0_i32 = arith.constant 0 : i32
    %c0_i32_0 = arith.constant 0 : i32
    %c0_i32_1 = arith.constant 0 : i32
    return %c0_i32, %c0_i32_0 : i32, i32
  }
  func.func @transform_3(%arg0: i32, %arg1: i32) -> (i32, i32, i32, i32) {
    %c0_i32 = arith.constant 0 : i32
    %c0_i32_0 = arith.constant 0 : i32
    %c0_i32_1 = arith.constant 0 : i32
    %c0_i32_2 = arith.constant 0 : i32
    return %arg1, %c0_i32, %c0_i32_0, %c0_i32_1 : i32, i32, i32, i32
  }
  func.func @transform_4(%arg0: i32, %arg1: i32) -> (i32, i32, i32) {
    %c0_i32 = arith.constant 0 : i32
    %c0_i32_0 = arith.constant 0 : i32
    %c0_i32_1 = arith.constant 0 : i32
    return %arg0, %c0_i32, %c0_i32_0 : i32, i32, i32
  }
  func.func @transform_5(%arg0: i32, %arg1: i32) -> (i32, i32, i32) {
    %c0_i32 = arith.constant 0 : i32
    %c0_i32_0 = arith.constant 0 : i32
    %c0_i32_1 = arith.constant 0 : i32
    return %arg0, %c0_i32, %c0_i32_0 : i32, i32, i32
  }
}

module attributes {stable_mosaic.version = 11 : i64} {
  func.func @kernel(%arg0: i32, %arg1: i32, %arg2: memref<512x128xf32, #tpu.memory_space<vmem>>, %arg3: memref<1x128xf32, #tpu.memory_space<vmem>>, %arg4: memref<1x128xf32, #tpu.memory_space<vmem>>, %arg5: memref<128x128xbf16, #tpu.memory_space<vmem>>, %arg6: memref<512x128xbf16, #tpu.memory_space<vmem>>, %arg7: memref<1x128xf32, #tpu.memory_space<vmem>>, %arg8: memref<1x128xf32, #tpu.memory_space<vmem>>, %arg9: memref<128x128xbf16, #tpu.memory_space<vmem>>, %arg10: memref<512x128xf32, #tpu.memory_space<vmem>>) attributes {dimension_semantics = [#tpu.dimension_semantics<parallel>, #tpu.dimension_semantics<parallel>], iteration_bounds = array<i64: 1, 1>, scalar_prefetch = 0 : i64, scratch_operands = 0 : i64, tpu.core_type = #tpu.core_type<tc>, window_params = [{transform_indices = @transform_0, window_bounds = array<i64: 512, 128>}, {pipeline_mode = #tpu.pipeline_mode<synchronous>, transform_indices = @transform_1, window_bounds = array<i64: 1, 128>}, {pipeline_mode = #tpu.pipeline_mode<synchronous>, transform_indices = @transform_2, window_bounds = array<i64: 1, 128>}, {transform_indices = @transform_3, window_bounds = array<i64: 128, 128>}, {transform_indices = @transform_4, window_bounds = array<i64: 512, 128>}, {pipeline_mode = #tpu.pipeline_mode<synchronous>, transform_indices = @transform_5, window_bounds = array<i64: 1, 128>}, {pipeline_mode = #tpu.pipeline_mode<synchronous>, transform_indices = @transform_6, window_bounds = array<i64: 1, 128>}, {transform_indices = @transform_7, window_bounds = array<i64: 128, 128>}, {transform_indices = @transform_8, window_bounds = array<i64: 512, 128>}]} {
    %c0 = arith.constant 0 : index
    %c0_0 = arith.constant 0 : index
    %0 = vector.load %arg2[%c0, %c0_0] : memref<512x128xf32, #tpu.memory_space<vmem>>, vector<512x128xf32>
    %c0_1 = arith.constant 0 : index
    %c0_2 = arith.constant 0 : index
    %1 = vector.load %arg3[%c0_1, %c0_2] : memref<1x128xf32, #tpu.memory_space<vmem>>, vector<1x128xf32>
    %2 = vector.broadcast %1 : vector<1x128xf32> to vector<512x128xf32>
    %3 = arith.mulf %0, %2 : vector<512x128xf32>
    %c0_3 = arith.constant 0 : index
    %c0_4 = arith.constant 0 : index
    %4 = vector.load %arg4[%c0_3, %c0_4] : memref<1x128xf32, #tpu.memory_space<vmem>>, vector<1x128xf32>
    %5 = vector.broadcast %4 : vector<1x128xf32> to vector<512x128xf32>
    %6 = arith.addf %3, %5 : vector<512x128xf32>
    %cst = arith.constant 0.000000e+00 : f32
    %7 = vector.broadcast %cst : f32 to vector<512x128xf32>
    %8 = arith.maximumf %6, %7 : vector<512x128xf32>
    %9 = arith.truncf %8 : vector<512x128xf32> to vector<512x128xbf16>
    %c0_5 = arith.constant 0 : index
    %c0_6 = arith.constant 0 : index
    %10 = vector.load %arg6[%c0_5, %c0_6] : memref<512x128xbf16, #tpu.memory_space<vmem>>, vector<512x128xbf16>
    %11 = arith.extf %10 : vector<512x128xbf16> to vector<512x128xf32>
    %c0_7 = arith.constant 0 : index
    %c0_8 = arith.constant 0 : index
    %12 = vector.load %arg7[%c0_7, %c0_8] : memref<1x128xf32, #tpu.memory_space<vmem>>, vector<1x128xf32>
    %13 = vector.broadcast %12 : vector<1x128xf32> to vector<512x128xf32>
    %14 = arith.mulf %11, %13 : vector<512x128xf32>
    %c0_9 = arith.constant 0 : index
    %c0_10 = arith.constant 0 : index
    %15 = vector.load %arg8[%c0_9, %c0_10] : memref<1x128xf32, #tpu.memory_space<vmem>>, vector<1x128xf32>
    %16 = vector.broadcast %15 : vector<1x128xf32> to vector<512x128xf32>
    %17 = arith.addf %14, %16 : vector<512x128xf32>
    %cst_11 = arith.constant 0.000000e+00 : f32
    %18 = vector.broadcast %cst_11 : f32 to vector<512x128xf32>
    %19 = arith.maximumf %17, %18 : vector<512x128xf32>
    %20 = arith.truncf %19 : vector<512x128xf32> to vector<512x128xbf16>
    %c0_12 = arith.constant 0 : index
    %c0_13 = arith.constant 0 : index
    %21 = vector.load %arg5[%c0_12, %c0_13] : memref<128x128xbf16, #tpu.memory_space<vmem>>, vector<128x128xbf16>
    %cst_14 = arith.constant dense<0.000000e+00> : vector<512x128xf32>
    %22 = tpu.matmul %9, %21, %cst_14 {dimension_numbers = #tpu.dot_dimension_numbers<[1], [0], [0], [1], [0, 0, 1, 1], [], []>} : vector<512x128xbf16>, vector<128x128xbf16>, vector<512x128xf32> -> vector<512x128xf32>
    %c0_15 = arith.constant 0 : index
    %c0_16 = arith.constant 0 : index
    %23 = vector.load %arg9[%c0_15, %c0_16] : memref<128x128xbf16, #tpu.memory_space<vmem>>, vector<128x128xbf16>
    %cst_17 = arith.constant dense<0.000000e+00> : vector<512x128xf32>
    %24 = tpu.matmul %20, %23, %cst_17 {dimension_numbers = #tpu.dot_dimension_numbers<[1], [0], [0], [1], [0, 0, 1, 1], [], []>} : vector<512x128xbf16>, vector<128x128xbf16>, vector<512x128xf32> -> vector<512x128xf32>
    %25 = arith.addf %22, %24 : vector<512x128xf32>
    %c0_18 = arith.constant 0 : index
    %c0_19 = arith.constant 0 : index
    %26 = vector.load %arg10[%c0_18, %c0_19] : memref<512x128xf32, #tpu.memory_space<vmem>>, vector<512x128xf32>
    tpu.vector_store %arg10[%c0_18, %c0_19], %25 {strides = array<i32>} : memref<512x128xf32, #tpu.memory_space<vmem>>, vector<512x128xf32>,
    return
  }
  func.func @transform_0(%arg0: i32, %arg1: i32) -> (i32, i32) {
    %c0_i32 = arith.constant 0 : i32
    %c0_i32_0 = arith.constant 0 : i32
    return %arg1, %c0_i32 : i32, i32
  }
  func.func @transform_1(%arg0: i32, %arg1: i32) -> (i32, i32) {
    %c0_i32 = arith.constant 0 : i32
    %c0_i32_0 = arith.constant 0 : i32
    %c0_i32_1 = arith.constant 0 : i32
    return %c0_i32, %c0_i32_0 : i32, i32
  }
  func.func @transform_2(%arg0: i32, %arg1: i32) -> (i32, i32) {
    %c0_i32 = arith.constant 0 : i32
    %c0_i32_0 = arith.constant 0 : i32
    %c0_i32_1 = arith.constant 0 : i32
    return %c0_i32, %c0_i32_0 : i32, i32
  }
  func.func @transform_3(%arg0: i32, %arg1: i32) -> (i32, i32) {
    %c0_i32 = arith.constant 0 : i32
    %c0_i32_0 = arith.constant 0 : i32
    return %c0_i32, %arg0 : i32, i32
  }
  func.func @transform_4(%arg0: i32, %arg1: i32) -> (i32, i32) {
    %c0_i32 = arith.constant 0 : i32
    %c0_i32_0 = arith.constant 0 : i32
    return %arg1, %c0_i32 : i32, i32
  }
  func.func @transform_5(%arg0: i32, %arg1: i32) -> (i32, i32) {
    %c0_i32 = arith.constant 0 : i32
    %c0_i32_0 = arith.constant 0 : i32
    %c0_i32_1 = arith.constant 0 : i32
    return %c0_i32, %c0_i32_0 : i32, i32
  }
  func.func @transform_6(%arg0: i32, %arg1: i32) -> (i32, i32) {
    %c0_i32 = arith.constant 0 : i32
    %c0_i32_0 = arith.constant 0 : i32
    %c0_i32_1 = arith.constant 0 : i32
    return %c0_i32, %c0_i32_0 : i32, i32
  }
  func.func @transform_7(%arg0: i32, %arg1: i32) -> (i32, i32) {
    %c0_i32 = arith.constant 0 : i32
    %c0_i32_0 = arith.constant 0 : i32
    return %c0_i32, %arg0 : i32, i32
  }
  func.func @transform_8(%arg0: i32, %arg1: i32) -> (i32, i32) {
    %c0_i32 = arith.constant 0 : i32
    return %arg1, %arg0 : i32, i32
  }
}

</mosaic_0001>

<bundles_post_ra>
// kernel: resblock_bot_forward.5
= control target key start
LH: loop header
LB: loop body
LE: loop exit
PB: predicated region body
PF: predicated region fallthrough
CT: control target
= control target key end

     0   :  { %s2780_s7 = inlined_call_operand.vmem [shape: bf16[128,128], index: 7, kind: input, shape index: {}]   ;;  %s2781_s3 = inlined_call_operand.vmem [shape: bf16[128,128], index: 3, kind: input, shape index: {}]   ;;  %s2782_s4 = inlined_call_operand.vmem [shape: bf16[512,128], index: 4, kind: input, shape index: {}]   ;;  %s2783_s5 = inlined_call_operand.vmem [shape: f32[1,128], index: 5, kind: input, shape index: {}]   ;;  %s2784_s6 = inlined_call_operand.vmem [shape: f32[1,128], index: 6, kind: input, shape index: {}]   ;;  %s2785_s0 = inlined_call_operand.vmem [shape: f32[512,128], index: 0, kind: input, shape index: {}]   ;;  %s2786_s1 = inlined_call_operand.vmem [shape: f32[1,128], index: 1, kind: input, shape index: {}]   ;;  %s2787_s2 = inlined_call_operand.vmem [shape: f32[1,128], index: 2, kind: input, shape index: {}]   ;;  %s2788_s8 = inlined_call_operand.vmem [shape: f32[512,128], index: 8, kind: output, shape index: {}]  }
   0x1   :  { %v1891_v0 = vld [vmem:[%s2780_s7 + $0x38] sm:$0xff]   ;;  %v1893_v2 = vld [vmem:[%s2780_s7 + $0x30] sm:$0xff]   ;;  %v1895_v4 = vld [vmem:[%s2780_s7 + $0x28] sm:$0xff]  }
   0x2   :  { %v1892_v1 = vld [vmem:[%s2781_s3 + $0x38] sm:$0xff]   ;;  %1731 = vmatprep.subr.bf16.mxu0 %v1891_v0  ;;  %v1894_v3 = vld [vmem:[%s2781_s3 + $0x30] sm:$0xff]   ;;  %v1896_v5 = vld [vmem:[%s2781_s3 + $0x28] sm:$0xff]  }
   0x3   :  { %1811 = vmatprep.subr.bf16.mxu1 %v1892_v1  ;;  %1732 = vmatpush3.bf16.msra.mxu0 %v1891_v0  ;;  %v1897_v6 = vld [vmem:[%s2780_s7 + $0x20] sm:$0xff]   ;;  %v1899_v8 = vld [vmem:[%s2780_s7 + $0x18] sm:$0xff]   ;;  %v1901_v10 = vld [vmem:[%s2780_s7 + $0x10] sm:$0xff]  }
   0x4   :  { %1812 = vmatpush3.bf16.msra.mxu1 %v1892_v1  ;;  %1733 = vmatprep.subr.bf16.mxu0 %v1893_v2  ;;  %v1898_v7 = vld [vmem:[%s2781_s3 + $0x20] sm:$0xff]   ;;  %v1900_v9 = vld [vmem:[%s2781_s3 + $0x18] sm:$0xff]   ;;  %v1902_v11 = vld [vmem:[%s2781_s3 + $0x10] sm:$0xff]  }
   0x5   :  { %1813 = vmatprep.subr.bf16.mxu1 %v1894_v3  ;;  %v1493_v12 = vld [vmem:[%s2782_s4] sm:$0xff]   ;;  %v31_v18 = vld [vmem:[%s2785_s0 + $0x8] sm:$0xff]  ;;  %v32_v24 = vld [vmem:[%s2785_s0 + $0x10] sm:$0xff] }
   0x6   :  { %v1998_v13 = vld [vmem:[%s2783_s5] ss:$0 sm:$0xff]  ;;  %v1494_v15 = vunpack.c.l.bf16 %v1493_v12  ;;  %v1495_v16 = vunpack.c.h.bf16 %v1493_v12  ;;  %v1620_v23 = vld [vmem:[%s2782_s4 + $0x8] sm:$0xff]   ;;  %v33_v29 = vld [vmem:[%s2785_s0 + $0x18] sm:$0xff] }
   0x7   :  { %1734 = vmatpush3.bf16.msra.mxu0 %v1893_v2  ;;  %v2003_v14 = vld [vmem:[%s2784_s6] ss:$0 sm:$0xff]  ;;  %v1498_v27 = vunpack.c.l.bf16 %v1620_v23  ;;  %v1499_v28 = vunpack.c.h.bf16 %v1620_v23  ;;  %v1621_v30 = vld [vmem:[%s2782_s4 + $0x10] sm:$0xff]   ;;  %v1903_v31 = vld [vmem:[%s2780_s7 + $0x8] sm:$0xff]  }
   0x8   :  { %1814 = vmatpush3.bf16.msra.mxu1 %v1894_v3  ;;  %1735 = vmatprep.subr.bf16.mxu0 %v1895_v4  ;;  %v30_v17 = vld [vmem:[%s2785_s0] sm:$0xff]  ;;  %v467_v25 = vmul.f32 %v1494_v15, %v1998_v13  ;;  %v468_v26 = vmul.f32 %v1495_v16, %v1998_v13  ;;  %v1502_v35 = vunpack.c.l.bf16 %v1621_v30  ;;  %v1904_v36 = vld [vmem:[%s2781_s3 + $0x8] sm:$0xff]   ;;  %v1503_v55 = vunpack.c.h.bf16 %v1621_v30  ;;  %v1622_v56 = vld [vmem:[%s2782_s4 + $0x18] sm:$0xff]  }
   0x9   :  { %1815 = vmatprep.subr.bf16.mxu1 %v1896_v5  ;;  %v2014_v19 = vld [vmem:[%s2786_s1] ss:$0 sm:$0xff]  ;;  %v469_v39 = vmul.f32 %v1498_v27, %v1998_v13  ;;  %v470_v40 = vmul.f32 %v1499_v28, %v1998_v13  ;;  %v35_v50 = vld [vmem:[%s2785_s0 + $0x28] sm:$0xff] }
   0xa   :  { %v101_v20 = vmul.f32 %v2014_v19, %v30_v17  ;;  %v102_v21 = vmul.f32 %v2014_v19, %v31_v18  ;;  %v2021_v22 = vld [vmem:[%s2787_s2] ss:$0 sm:$0xff]  ;;  %v103_v34 = vmul.f32 %v2014_v19, %v32_v24  ;;  %v538_v37 = vadd.f32 %v2003_v14, %v467_v25 }
   0xb   :  { %1736 = vmatpush3.bf16.msra.mxu0 %v1895_v4  ;;  %v539_v38 = vadd.f32 %v2003_v14, %v468_v26  ;;  %v104_v43 = vmul.f32 %v2014_v19, %v33_v29  ;;  %v540_v47 = vadd.f32 %v2003_v14, %v469_v39  ;;  %v541_v48 = vadd.f32 %v2003_v14, %v470_v40  ;;  %v34_v49 = vld [vmem:[%s2785_s0 + $0x20] sm:$0xff] }
   0xc   :  { %1816 = vmatpush3.bf16.msra.mxu1 %v1896_v5  ;;  %1737 = vmatprep.subr.bf16.mxu0 %v1897_v6  ;;  %v172_v32 = vadd.f32 %v2021_v22, %v101_v20  ;;  %v173_v33 = vadd.f32 %v2021_v22, %v102_v21  ;;  %v174_v44 = vadd.f32 %v2021_v22, %v103_v34  ;;  %v602_v45 = vmax.f32 %v538_v37, 0.0  ;;  %v1905_v51 = vld [vmem:[%s2780_s7] sm:$0xff]   ;;  %v39_v34 = vld [vmem:[%s2785_s0 + $0x48] sm:$0xff] }
   0xd   :  { %1817 = vmatprep.subr.bf16.mxu1 %v1898_v7  ;;  %v603_v46 = vmax.f32 %v539_v38, 0.0  ;;  %v175_v53 = vadd.f32 %v2021_v22, %v104_v43  ;;  %v1906_v57 = vld [vmem:[%s2781_s3] sm:$0xff]   ;;  %v604_v59 = vmax.f32 %v540_v47, 0.0  ;;  %v605_v60 = vmax.f32 %v541_v48, 0.0 }
   0xe   :  { %v236_v41 = vmax.f32 %v172_v32, 0.0  ;;  %v237_v42 = vmax.f32 %v173_v33, 0.0  ;;  %v238_v54 = vmax.f32 %v174_v44, 0.0  ;;  %v471_v61 = vmul.f32 %v1502_v35, %v1998_v13  ;;  %v1623_v62 = vld [vmem:[%s2782_s4 + $0x20] sm:$0xff]   ;;  %v1624_v35 = vld [vmem:[%s2782_s4 + $0x28] sm:$0xff]   ;;  %v40_v44 = vld [vmem:[%s2785_s0 + $0x50] sm:$0xff] }
   0xf   :  { %1738 = vmatpush3.bf16.msra.mxu0 %v1897_v6  ;;  %v666_v58 = vpack.c.bf16 %v603_v46, %v602_v45  ;;  %v239_v63 = vmax.f32 %v175_v53, 0.0  ;;  %v472_v0 = vmul.f32 %v1503_v55, %v1998_v13  ;;  %v105_v1 = vmul.f32 %v2014_v19, %v34_v49  ;;  %v38_v29 = vld [vmem:[%s2785_s0 + $0x40] sm:$0xff]  ;;  %v41_v49 = vld [vmem:[%s2785_s0 + $0x58] sm:$0xff] }
  0x10   :  { %1818 = vmatpush3.bf16.msra.mxu1 %v1898_v7  ;;  %1739 = vmatprep.subr.bf16.mxu0 %v1899_v8  ;;  %v300_v52 = vpack.c.bf16 %v237_v42, %v236_v41  ;;  %v106_v2 = vmul.f32 %v2014_v19, %v35_v50  ;;  %v667_v3 = vpack.c.bf16 %v605_v60, %v604_v59  ;;  %v1506_v5 = vunpack.c.l.bf16 %v1622_v56  ;;  %v36_v7 = vld [vmem:[%s2785_s0 + $0x30] sm:$0xff] }
  0x11   :  { %1819 = vmatprep.subr.bf16.mxu1 %v1900_v9  ;;  %1747 = vmatprep.mubr.bf16.mxu0 %v666_v58  ;;  %v542_v4 = vadd.f32 %v2003_v14, %v471_v61  ;;  %v1507_v6 = vunpack.c.h.bf16 %v1622_v56  ;;  %v1510_v12 = vunpack.c.l.bf16 %v1623_v62  ;;  %v107_v23 = vmul.f32 %v2014_v19, %v36_v7  ;;  %v1625_v50 = vld [vmem:[%s2782_s4 + $0x30] sm:$0xff]  }
  0x12   :  { %1827 = vmatprep.mubr.bf16.mxu1 %v300_v52  ;;  %v177_v16 = vadd.f32 %v2021_v22, %v106_v2  ;;  %v473_v17 = vmul.f32 %v1506_v5, %v1998_v13  ;;  %v1511_v28 = vunpack.c.h.bf16 %v1623_v62  ;;  %v109_v43 = vmul.f32 %v2014_v19, %v38_v29 }
  0x13   :  { %1740 = vmatpush3.bf16.msra.mxu0 %v1899_v8  ;;  %v37_v8 = vld [vmem:[%s2785_s0 + $0x38] sm:$0xff]  ;;  %v606_v15 = vmax.f32 %v542_v4, 0.0  ;;  %v474_v18 = vmul.f32 %v1507_v6, %v1998_v13  ;;  %v475_v33 = vmul.f32 %v1510_v12, %v1998_v13  ;;  %v110_v47 = vmul.f32 %v2014_v19, %v39_v34 }
  0x14   :  { %1820 = vmatpush3.bf16.msra.mxu1 %v1900_v9  ;;  %1741 = vmatprep.subr.bf16.mxu0 %v1901_v10  ;;  %v301_v9 = vpack.c.bf16 %v239_v63, %v238_v54  ;;  %v108_v24 = vmul.f32 %v2014_v19, %v37_v8  ;;  %v241_v25 = vmax.f32 %v177_v16, 0.0  ;;  %v544_v26 = vadd.f32 %v2003_v14, %v473_v17  ;;  %v42_v63 = vld [vmem:[%s2785_s0 + $0x60] sm:$0xff]  ;;  %v43_v8 = vld [vmem:[%s2785_s0 + $0x68] sm:$0xff] }
  0x15   :  { %1821 = vmatprep.subr.bf16.mxu1 %v1902_v11  ;;  %v545_v27 = vadd.f32 %v2003_v14, %v474_v18  ;;  %v476_v39 = vmul.f32 %v1511_v28, %v1998_v13  ;;  %v546_v42 = vadd.f32 %v2003_v14, %v475_v33  ;;  %v1514_v48 = vunpack.c.l.bf16 %v1624_v35  ;;  %v1627_v28 = vld [vmem:[%s2782_s4 + $0x40] sm:$0xff]  }
  0x16   :  { %v179_v32 = vadd.f32 %v2021_v22, %v108_v24  ;;  %v608_v37 = vmax.f32 %v544_v26, 0.0  ;;  %v180_v53 = vadd.f32 %v2021_v22, %v109_v43  ;;  %v1515_v54 = vunpack.c.h.bf16 %v1624_v35  ;;  %v44_v26 = vld [vmem:[%s2785_s0 + $0x70] sm:$0xff] }
  0x17   :  { %1742 = vmatpush3.bf16.msra.mxu0 %v1901_v10  ;;  %v543_v10 = vadd.f32 %v2003_v14, %v472_v0  ;;  %v609_v38 = vmax.f32 %v545_v27, 0.0  ;;  %v547_v46 = vadd.f32 %v2003_v14, %v476_v39  ;;  %v610_v52 = vmax.f32 %v546_v42, 0.0  ;;  %v45_v27 = vld [vmem:[%s2785_s0 + $0x78] sm:$0xff] }
  0x18   :  { %1822 = vmatpush3.bf16.msra.mxu1 %v1902_v11  ;;  %1743 = vmatprep.subr.bf16.mxu0 %v1903_v31  ;;  %v176_v11 = vadd.f32 %v2021_v22, %v105_v1  ;;  %v243_v41 = vmax.f32 %v179_v32, 0.0  ;;  %v181_v56 = vadd.f32 %v2021_v22, %v110_v47  ;;  %v111_v58 = vmul.f32 %v2014_v19, %v40_v44 }
  0x19   :  { %1823 = vmatprep.subr.bf16.mxu1 %v1904_v36  ;;  %v607_v20 = vmax.f32 %v543_v10, 0.0  ;;  %v669_v45 = vpack.c.bf16 %v609_v38, %v608_v37  ;;  %v611_v55 = vmax.f32 %v547_v46, 0.0  ;;  %v244_v59 = vmax.f32 %v180_v53, 0.0 }
  0x1a   :  { %v240_v21 = vmax.f32 %v176_v11, 0.0  ;;  %v478_v60 = vmul.f32 %v1515_v54, %v1998_v13  ;;  %v112_v61 = vmul.f32 %v2014_v19, %v41_v49  ;;  %v1518_v62 = vunpack.c.l.bf16 %v1625_v50 }
  0x1b   :  { %1744 = vmatpush3.bf16.msra.mxu0 %v1903_v31  ;;  %v668_v30 = vpack.c.bf16 %v607_v20, %v606_v15  ;;  %v178_v31 = vadd.f32 %v2021_v22, %v107_v23  ;;  %v670_v0 = vpack.c.bf16 %v611_v55, %v610_v52  ;;  %v245_v1 = vmax.f32 %v181_v56, 0.0 }
  0x1c   :  { %1824 = vmatpush3.bf16.msra.mxu1 %v1904_v36  ;;  %1745 = vmatprep.subr.bf16.mxu0 %v1905_v51  ;;  %v302_v36 = vpack.c.bf16 %v241_v25, %v240_v21  ;;  %v549_v4 = vadd.f32 %v2003_v14, %v478_v60  ;;  %v183_v5 = vadd.f32 %v2021_v22, %v112_v61  ;;  %v1519_v6 = vunpack.c.h.bf16 %v1625_v50  ;;  %v47_v50 = vld [vmem:[%s2785_s0 + $0x88] sm:$0xff]  ;;  %v48_v60 = vld [vmem:[%s2785_s0 + $0x90] sm:$0xff] }
  0x1d   :  { %1825 = vmatprep.subr.bf16.mxu1 %v1906_v57  ;;  %v242_v40 = vmax.f32 %v178_v31, 0.0  ;;  %v479_v7 = vmul.f32 %v1518_v62, %v1998_v13  ;;  %v304_v10 = vpack.c.bf16 %v245_v1, %v244_v59  ;;  %v113_v15 = vmul.f32 %v2014_v19, %v42_v63  ;;  %v49_v1 = vld [vmem:[%s2785_s0 + $0x98] sm:$0xff] }
  0x1e   :  { %v613_v16 = vmax.f32 %v549_v4, 0.0  ;;  %v247_v17 = vmax.f32 %v183_v5, 0.0  ;;  %v480_v18 = vmul.f32 %v1519_v6, %v1998_v13  ;;  %v114_v21 = vmul.f32 %v2014_v19, %v43_v8 }
  0x1f   :  { %1746 = vmatpush3.bf16.msra.mxu0 %v1905_v51  ;;  %v303_v51 = vpack.c.bf16 %v243_v41, %v242_v40  ;;  %v550_v20 = vadd.f32 %v2003_v14, %v479_v7  ;;  %v184_v23 = vadd.f32 %v2021_v22, %v113_v15  ;;  %v115_v38 = vmul.f32 %v2014_v19, %v44_v26 }
  0x20   :  { %1826 = vmatpush3.bf16.msra.mxu1 %v1906_v57  ;;  %v477_v57 = vmul.f32 %v1514_v48, %v1998_v13  ;;  %v551_v31 = vadd.f32 %v2003_v14, %v480_v18  ;;  %v185_v33 = vadd.f32 %v2021_v22, %v114_v21  ;;  %v116_v39 = vmul.f32 %v2014_v19, %v45_v27 }
  0x21   :  { %v614_v32 = vmax.f32 %v550_v20, 0.0  ;;  %v248_v34 = vmax.f32 %v184_v23, 0.0  ;;  %v1526_v40 = vunpack.c.l.bf16 %v1627_v28  ;;  %v1527_v44 = vunpack.c.h.bf16 %v1627_v28  ;;  %v51_v28 = vld [vmem:[%s2785_s0 + $0xa8] sm:$0xff] }
  0x22   :  { %1748 = vmatmul.mubr.bf16.vlgmr.msra.gmra.mxu0 %v667_v3  ;;  %v548_v2 = vadd.f32 %v2003_v14, %v477_v57  ;;  %v182_v3 = vadd.f32 %v2021_v22, %v111_v58  ;;  %v615_v37 = vmax.f32 %v551_v31, 0.0  ;;  %v249_v41 = vmax.f32 %v185_v33, 0.0 }
  0x23   :  { %1828 = vmatmul.mubr.bf16.vlgmr.msra.gmra.mxu1 %v301_v9  ;;  %1751 = vmatprep.mubr.bf16.mxu0 %v668_v30  ;;  %v1626_v9 = vld [vmem:[%s2782_s4 + $0x38] sm:$0xff]   ;;  %v186_v47 = vadd.f32 %v2021_v22, %v115_v38  ;;  %v187_v48 = vadd.f32 %v2021_v22, %v116_v39  ;;  %v483_v49 = vmul.f32 %v1526_v40, %v1998_v13 }
  0x24   :  { %1831 = vmatprep.mubr.bf16.mxu1 %v302_v36  ;;  %v612_v11 = vmax.f32 %v548_v2, 0.0  ;;  %v246_v12 = vmax.f32 %v182_v3, 0.0  ;;  %v1522_v24 = vunpack.c.l.bf16 %v1626_v9  ;;  %v1523_v25 = vunpack.c.h.bf16 %v1626_v9  ;;  %v1629_v2 = vld [vmem:[%s2782_s4 + $0x50] sm:$0xff]  }
  0x25   :  { %v672_v46 = vpack.c.bf16 %v615_v37, %v614_v32  ;;  %v306_v52 = vpack.c.bf16 %v249_v41, %v248_v34  ;;  %v484_v55 = vmul.f32 %v1527_v44, %v1998_v13  ;;  %v250_v56 = vmax.f32 %v186_v47, 0.0  ;;  %v1631_v44 = vld [vmem:[%s2782_s4 + $0x60] sm:$0xff]  }
  0x26   :  { %v671_v29 = vpack.c.bf16 %v613_v16, %v612_v11  ;;  %v305_v30 = vpack.c.bf16 %v247_v17, %v246_v12  ;;  %v481_v35 = vmul.f32 %v1522_v24, %v1998_v13  ;;  %v482_v36 = vmul.f32 %v1523_v25, %v1998_v13  ;;  %v50_v17 = vld [vmem:[%s2785_s0 + $0xa0] sm:$0xff] }
  0x27   :  { %v251_v57 = vmax.f32 %v187_v48, 0.0  ;;  %v554_v58 = vadd.f32 %v2003_v14, %v483_v49  ;;  %v555_v62 = vadd.f32 %v2003_v14, %v484_v55  ;;  %v118_v63 = vmul.f32 %v2014_v19, %v47_v50 }
  0x28   :  { %v552_v42 = vadd.f32 %v2003_v14, %v481_v35  ;;  %v553_v43 = vadd.f32 %v2003_v14, %v482_v36  ;;  %v120_v15 = vmul.f32 %v2014_v19, %v49_v1  ;;  %v1534_v16 = vunpack.c.l.bf16 %v1629_v2 }
  0x29   :  { %v307_v3 = vpack.c.bf16 %v251_v57, %v250_v56  ;;  %v618_v4 = vmax.f32 %v554_v58, 0.0  ;;  %v619_v7 = vmax.f32 %v555_v62, 0.0  ;;  %v189_v8 = vadd.f32 %v2021_v22, %v118_v63 }
  0x2a   :  { %1752 = vmatmul.mubr.bf16.gmra.mxu0 %v669_v45  ;;  %v46_v45 = vld [vmem:[%s2785_s0 + $0x80] sm:$0xff]  ;;  %v616_v53 = vmax.f32 %v552_v42, 0.0  ;;  %v617_v54 = vmax.f32 %v553_v43, 0.0  ;;  %v191_v25 = vadd.f32 %v2021_v22, %v120_v15  ;;  %v1535_v26 = vunpack.c.h.bf16 %v1629_v2  ;;  %v52_v42 = vld [vmem:[%s2785_s0 + $0xb0] sm:$0xff]  ;;  %v53_v43 = vld [vmem:[%s2785_s0 + $0xb8] sm:$0xff] }
  0x2b   :  { %1832 = vmatmul.mubr.bf16.gmra.mxu1 %v303_v51  ;;  %1755 = vmatprep.mubr.bf16.mxu0 %v670_v0  ;;  %v1628_v51 = vld [vmem:[%s2782_s4 + $0x48] sm:$0xff]   ;;  %v117_v59 = vmul.f32 %v2014_v19, %v46_v45  ;;  %v674_v18 = vpack.c.bf16 %v619_v7, %v618_v4  ;;  %v253_v20 = vmax.f32 %v189_v8, 0.0  ;;  %v487_v27 = vmul.f32 %v1534_v16, %v1998_v13 }
  0x2c   :  { %1835 = vmatprep.mubr.bf16.mxu1 %v304_v10  ;;  %v673_v61 = vpack.c.bf16 %v617_v54, %v616_v53  ;;  %v1530_v0 = vunpack.c.l.bf16 %v1628_v51  ;;  %v1531_v6 = vunpack.c.h.bf16 %v1628_v51  ;;  %v119_v10 = vmul.f32 %v2014_v19, %v48_v60  ;;  %v55_v2 = vld [vmem:[%s2785_s0 + $0xc8] sm:$0xff] }
  0x2d   :  { %v188_v5 = vadd.f32 %v2021_v22, %v117_v59  ;;  %v121_v33 = vmul.f32 %v2014_v19, %v50_v17  ;;  %v255_v35 = vmax.f32 %v191_v25, 0.0  ;;  %v488_v36 = vmul.f32 %v1535_v26, %v1998_v13 }
  0x2e   :  { %v485_v9 = vmul.f32 %v1530_v0, %v1998_v13  ;;  %v486_v12 = vmul.f32 %v1531_v6, %v1998_v13  ;;  %v190_v23 = vadd.f32 %v2021_v22, %v119_v10  ;;  %v558_v37 = vadd.f32 %v2003_v14, %v487_v27 }
  0x2f   :  { %v252_v11 = vmax.f32 %v188_v5, 0.0  ;;  %v122_v38 = vmul.f32 %v2014_v19, %v51_v28  ;;  %v192_v39 = vadd.f32 %v2021_v22, %v121_v33  ;;  %v559_v47 = vadd.f32 %v2003_v14, %v488_v36 }
  0x30   :  { %v556_v21 = vadd.f32 %v2003_v14, %v485_v9  ;;  %v557_v24 = vadd.f32 %v2003_v14, %v486_v12  ;;  %v254_v32 = vmax.f32 %v190_v23, 0.0  ;;  %v622_v48 = vmax.f32 %v558_v37, 0.0  ;;  %v56_v12 = vld [vmem:[%s2785_s0 + $0xd0] sm:$0xff] }
  0x31   :  { %v193_v49 = vadd.f32 %v2021_v22, %v122_v38  ;;  %v256_v50 = vmax.f32 %v192_v39, 0.0  ;;  %v623_v53 = vmax.f32 %v559_v47, 0.0  ;;  %v123_v54 = vmul.f32 %v2014_v19, %v52_v42 }
  0x32   :  { %1756 = vmatmul.mubr.bf16.gmra.mxu0 %v671_v29  ;;  %v1630_v29 = vld [vmem:[%s2782_s4 + $0x58] sm:$0xff]   ;;  %v620_v31 = vmax.f32 %v556_v21, 0.0  ;;  %v621_v34 = vmax.f32 %v557_v24, 0.0  ;;  %v124_v55 = vmul.f32 %v2014_v19, %v53_v43  ;;  %v1542_v56 = vunpack.c.l.bf16 %v1631_v44  ;;  %v1633_v21 = vld [vmem:[%s2782_s4 + $0x70] sm:$0xff]  }
  0x33   :  { %1836 = vmatmul.mubr.bf16.gmra.mxu1 %v305_v30  ;;  %1759 = vmatprep.mubr.bf16.mxu0 %v672_v46  ;;  %v308_v30 = vpack.c.bf16 %v253_v20, %v252_v11  ;;  %v1538_v40 = vunpack.c.l.bf16 %v1630_v29  ;;  %v1539_v41 = vunpack.c.h.bf16 %v1630_v29  ;;  %v309_v46 = vpack.c.bf16 %v255_v35, %v254_v32  ;;  %v57_v20 = vld [vmem:[%s2785_s0 + $0xd8] sm:$0xff]  ;;  %v58_v35 = vld [vmem:[%s2785_s0 + $0xe0] sm:$0xff] }
  0x34   :  { %1839 = vmatprep.mubr.bf16.mxu1 %v306_v52  ;;  %v675_v45 = vpack.c.bf16 %v621_v34, %v620_v31  ;;  %v257_v57 = vmax.f32 %v193_v49, 0.0  ;;  %v1543_v60 = vunpack.c.h.bf16 %v1631_v44  ;;  %v676_v62 = vpack.c.bf16 %v623_v53, %v622_v48  ;;  %v59_v44 = vld [vmem:[%s2785_s0 + $0xe8] sm:$0xff] }
  0x35   :  { %v489_v51 = vmul.f32 %v1538_v40, %v1998_v13  ;;  %v490_v52 = vmul.f32 %v1539_v41, %v1998_v13  ;;  %v194_v63 = vadd.f32 %v2021_v22, %v123_v54  ;;  %v195_v0 = vadd.f32 %v2021_v22, %v124_v55 }
  0x36   :  { %v491_v1 = vmul.f32 %v1542_v56, %v1998_v13  ;;  %v310_v4 = vpack.c.bf16 %v257_v57, %v256_v50  ;;  %v492_v7 = vmul.f32 %v1543_v60, %v1998_v13  ;;  %v126_v17 = vmul.f32 %v2014_v19, %v55_v2  ;;  %v1635_v60 = vld [vmem:[%s2782_s4 + $0x80] sm:$0xff]  }
  0x37   :  { %v560_v58 = vadd.f32 %v2003_v14, %v489_v51  ;;  %v561_v59 = vadd.f32 %v2003_v14, %v490_v52  ;;  %v258_v8 = vmax.f32 %v194_v63, 0.0  ;;  %v259_v9 = vmax.f32 %v195_v0, 0.0 }
  0x38   :  { %v562_v10 = vadd.f32 %v2003_v14, %v491_v1  ;;  %v563_v16 = vadd.f32 %v2003_v14, %v492_v7  ;;  %v197_v28 = vadd.f32 %v2021_v22, %v126_v17  ;;  %v128_v33 = vmul.f32 %v2014_v19, %v57_v20 }
  0x39   :  { %v624_v5 = vmax.f32 %v560_v58, 0.0  ;;  %v625_v6 = vmax.f32 %v561_v59, 0.0  ;;  %v311_v23 = vpack.c.bf16 %v259_v9, %v258_v8  ;;  %v1550_v34 = vunpack.c.l.bf16 %v1633_v21  ;;  %v60_v58 = vld [vmem:[%s2785_s0 + $0xf0] sm:$0xff]  ;;  %v61_v59 = vld [vmem:[%s2785_s0 + $0xf8] sm:$0xff] }
  0x3a   :  { %1760 = vmatmul.mubr.bf16.gmra.mxu0 %v673_v61  ;;  %v54_v61 = vld [vmem:[%s2785_s0 + $0xc0] sm:$0xff]  ;;  %v626_v24 = vmax.f32 %v562_v10, 0.0  ;;  %v627_v27 = vmax.f32 %v563_v16, 0.0  ;;  %v261_v37 = vmax.f32 %v197_v28, 0.0  ;;  %v199_v41 = vadd.f32 %v2021_v22, %v128_v33 }
  0x3b   :  { %1840 = vmatmul.mubr.bf16.gmra.mxu1 %v307_v3  ;;  %1763 = vmatprep.mubr.bf16.mxu0 %v674_v18  ;;  %v1632_v3 = vld [vmem:[%s2782_s4 + $0x68] sm:$0xff]   ;;  %v125_v11 = vmul.f32 %v2014_v19, %v54_v61  ;;  %v677_v15 = vpack.c.bf16 %v625_v6, %v624_v5  ;;  %v1551_v42 = vunpack.c.h.bf16 %v1633_v21  ;;  %v495_v43 = vmul.f32 %v1550_v34, %v1998_v13 }
  0x3c   :  { %1843 = vmatprep.mubr.bf16.mxu1 %v308_v30  ;;  %v1546_v18 = vunpack.c.l.bf16 %v1632_v3  ;;  %v1547_v26 = vunpack.c.h.bf16 %v1632_v3  ;;  %v127_v30 = vmul.f32 %v2014_v19, %v56_v12  ;;  %v678_v36 = vpack.c.bf16 %v627_v27, %v626_v24  ;;  %v63_v21 = vld [vmem:[%s2785_s0 + $0x108] sm:$0xff] }
  0x3d   :  { %v196_v25 = vadd.f32 %v2021_v22, %v125_v11  ;;  %v129_v49 = vmul.f32 %v2014_v19, %v58_v35  ;;  %v263_v51 = vmax.f32 %v199_v41, 0.0  ;;  %v496_v52 = vmul.f32 %v1551_v42, %v1998_v13 }
  0x3e   :  { %v493_v29 = vmul.f32 %v1546_v18, %v1998_v13  ;;  %v494_v32 = vmul.f32 %v1547_v26, %v1998_v13  ;;  %v198_v39 = vadd.f32 %v2021_v22, %v127_v30  ;;  %v566_v53 = vadd.f32 %v2003_v14, %v495_v43 }
  0x3f   :  { %v260_v31 = vmax.f32 %v196_v25, 0.0  ;;  %v130_v54 = vmul.f32 %v2014_v19, %v59_v44  ;;  %v200_v55 = vadd.f32 %v2021_v22, %v129_v49  ;;  %v567_v63 = vadd.f32 %v2003_v14, %v496_v52 }
  0x40   :  { %v564_v38 = vadd.f32 %v2003_v14, %v493_v29  ;;  %v565_v40 = vadd.f32 %v2003_v14, %v494_v32  ;;  %v262_v48 = vmax.f32 %v198_v39, 0.0  ;;  %v630_v0 = vmax.f32 %v566_v53, 0.0  ;;  %v64_v32 = vld [vmem:[%s2785_s0 + $0x110] sm:$0xff] }
  0x41   :  { %v201_v1 = vadd.f32 %v2021_v22, %v130_v54  ;;  %v264_v2 = vmax.f32 %v200_v55, 0.0  ;;  %v631_v5 = vmax.f32 %v567_v63, 0.0  ;;  %v131_v6 = vmul.f32 %v2014_v19, %v60_v58 }
  0x42   :  { %1764 = vmatmul.mubr.bf16.gmra.mxu0 %v675_v45  ;;  %v1634_v45 = vld [vmem:[%s2782_s4 + $0x78] sm:$0xff]   ;;  %v628_v47 = vmax.f32 %v564_v38, 0.0  ;;  %v629_v50 = vmax.f32 %v565_v40, 0.0  ;;  %v132_v7 = vmul.f32 %v2014_v19, %v61_v59  ;;  %v1558_v8 = vunpack.c.l.bf16 %v1635_v60  ;;  %v1637_v38 = vld [vmem:[%s2782_s4 + $0x90] sm:$0xff]  }
  0x43   :  { %1844 = vmatmul.mubr.bf16.gmra.mxu1 %v309_v46  ;;  %1767 = vmatprep.mubr.bf16.mxu0 %v676_v62  ;;  %v312_v46 = vpack.c.bf16 %v261_v37, %v260_v31  ;;  %v1554_v56 = vunpack.c.l.bf16 %v1634_v45  ;;  %v1555_v57 = vunpack.c.h.bf16 %v1634_v45  ;;  %v313_v62 = vpack.c.bf16 %v263_v51, %v262_v48  ;;  %v65_v37 = vld [vmem:[%s2785_s0 + $0x118] sm:$0xff]  ;;  %v66_v51 = vld [vmem:[%s2785_s0 + $0x120] sm:$0xff] }
  0x44   :  { %1847 = vmatprep.mubr.bf16.mxu1 %v310_v4  ;;  %v679_v61 = vpack.c.bf16 %v629_v50, %v628_v47  ;;  %v265_v9 = vmax.f32 %v201_v1, 0.0  ;;  %v1559_v12 = vunpack.c.h.bf16 %v1635_v60  ;;  %v680_v16 = vpack.c.bf16 %v631_v5, %v630_v0  ;;  %v67_v60 = vld [vmem:[%s2785_s0 + $0x128] sm:$0xff] }
  0x45   :  { %v497_v3 = vmul.f32 %v1554_v56, %v1998_v13  ;;  %v498_v4 = vmul.f32 %v1555_v57, %v1998_v13  ;;  %v202_v17 = vadd.f32 %v2021_v22, %v131_v6  ;;  %v203_v18 = vadd.f32 %v2021_v22, %v132_v7 }
  0x46   :  { %v499_v20 = vmul.f32 %v1558_v8, %v1998_v13  ;;  %v314_v24 = vpack.c.bf16 %v265_v9, %v264_v2  ;;  %v500_v27 = vmul.f32 %v1559_v12, %v1998_v13  ;;  %v134_v35 = vmul.f32 %v2014_v19, %v63_v21  ;;  %v1639_v12 = vld [vmem:[%s2782_s4 + $0xa0] sm:$0xff]  }
  0x47   :  { %v568_v10 = vadd.f32 %v2003_v14, %v497_v3  ;;  %v569_v11 = vadd.f32 %v2003_v14, %v498_v4  ;;  %v266_v28 = vmax.f32 %v202_v17, 0.0  ;;  %v267_v29 = vmax.f32 %v203_v18, 0.0 }
  0x48   :  { %v570_v30 = vadd.f32 %v2003_v14, %v499_v20  ;;  %v571_v34 = vadd.f32 %v2003_v14, %v500_v27  ;;  %v205_v44 = vadd.f32 %v2021_v22, %v134_v35  ;;  %v136_v49 = vmul.f32 %v2014_v19, %v65_v37 }
  0x49   :  { %v632_v25 = vmax.f32 %v568_v10, 0.0  ;;  %v633_v26 = vmax.f32 %v569_v11, 0.0  ;;  %v315_v39 = vpack.c.bf16 %v267_v29, %v266_v28  ;;  %v1566_v50 = vunpack.c.l.bf16 %v1637_v38  ;;  %v68_v10 = vld [vmem:[%s2785_s0 + $0x130] sm:$0xff]  ;;  %v69_v11 = vld [vmem:[%s2785_s0 + $0x138] sm:$0xff] }
  0x4a   :  { %1768 = vmatmul.mubr.bf16.gmra.mxu0 %v677_v15  ;;  %v62_v15 = vld [vmem:[%s2785_s0 + $0x100] sm:$0xff]  ;;  %v634_v40 = vmax.f32 %v570_v30, 0.0  ;;  %v635_v43 = vmax.f32 %v571_v34, 0.0  ;;  %v269_v53 = vmax.f32 %v205_v44, 0.0  ;;  %v207_v57 = vadd.f32 %v2021_v22, %v136_v49 }
  0x4b   :  { %1848 = vmatmul.mubr.bf16.gmra.mxu1 %v311_v23  ;;  %1771 = vmatprep.mubr.bf16.mxu0 %v678_v36  ;;  %v1636_v23 = vld [vmem:[%s2782_s4 + $0x88] sm:$0xff]   ;;  %v133_v31 = vmul.f32 %v2014_v19, %v62_v15  ;;  %v681_v33 = vpack.c.bf16 %v633_v26, %v632_v25  ;;  %v1567_v58 = vunpack.c.h.bf16 %v1637_v38  ;;  %v503_v59 = vmul.f32 %v1566_v50, %v1998_v13 }
  0x4c   :  { %1851 = vmatprep.mubr.bf16.mxu1 %v312_v46  ;;  %v1562_v36 = vunpack.c.l.bf16 %v1636_v23  ;;  %v1563_v42 = vunpack.c.h.bf16 %v1636_v23  ;;  %v135_v46 = vmul.f32 %v2014_v19, %v64_v32  ;;  %v682_v52 = vpack.c.bf16 %v635_v43, %v634_v40  ;;  %v71_v38 = vld [vmem:[%s2785_s0 + $0x148] sm:$0xff] }
  0x4d   :  { %v204_v41 = vadd.f32 %v2021_v22, %v133_v31  ;;  %v137_v1 = vmul.f32 %v2014_v19, %v66_v51  ;;  %v271_v3 = vmax.f32 %v207_v57, 0.0  ;;  %v504_v4 = vmul.f32 %v1567_v58, %v1998_v13 }
  0x4e   :  { %v501_v45 = vmul.f32 %v1562_v36, %v1998_v13  ;;  %v502_v48 = vmul.f32 %v1563_v42, %v1998_v13  ;;  %v206_v55 = vadd.f32 %v2021_v22, %v135_v46  ;;  %v574_v5 = vadd.f32 %v2003_v14, %v503_v59 }
  0x4f   :  { %v268_v47 = vmax.f32 %v204_v41, 0.0  ;;  %v138_v6 = vmul.f32 %v2014_v19, %v67_v60  ;;  %v208_v7 = vadd.f32 %v2021_v22, %v137_v1  ;;  %v575_v17 = vadd.f32 %v2003_v14, %v504_v4 }
  0x50   :  { %v572_v54 = vadd.f32 %v2003_v14, %v501_v45  ;;  %v573_v56 = vadd.f32 %v2003_v14, %v502_v48  ;;  %v270_v0 = vmax.f32 %v206_v55, 0.0  ;;  %v638_v18 = vmax.f32 %v574_v5, 0.0  ;;  %v72_v48 = vld [vmem:[%s2785_s0 + $0x150] sm:$0xff] }
  0x51   :  { %v209_v20 = vadd.f32 %v2021_v22, %v138_v6  ;;  %v272_v21 = vmax.f32 %v208_v7, 0.0  ;;  %v639_v25 = vmax.f32 %v575_v17, 0.0  ;;  %v139_v26 = vmul.f32 %v2014_v19, %v68_v10 }
  0x52   :  { %1772 = vmatmul.mubr.bf16.gmra.mxu0 %v679_v61  ;;  %v1638_v61 = vld [vmem:[%s2782_s4 + $0x98] sm:$0xff]   ;;  %v636_v63 = vmax.f32 %v572_v54, 0.0  ;;  %v637_v2 = vmax.f32 %v573_v56, 0.0  ;;  %v140_v27 = vmul.f32 %v2014_v19, %v69_v11  ;;  %v1574_v28 = vunpack.c.l.bf16 %v1639_v12  ;;  %v1641_v54 = vld [vmem:[%s2782_s4 + $0xb0] sm:$0xff]  }
  0x53   :  { %1852 = vmatmul.mubr.bf16.gmra.mxu1 %v313_v62  ;;  %1775 = vmatprep.mubr.bf16.mxu0 %v680_v16  ;;  %v316_v62 = vpack.c.bf16 %v269_v53, %v268_v47  ;;  %v1570_v8 = vunpack.c.l.bf16 %v1638_v61  ;;  %v1571_v9 = vunpack.c.h.bf16 %v1638_v61  ;;  %v317_v16 = vpack.c.bf16 %v271_v3, %v270_v0  ;;  %v73_v53 = vld [vmem:[%s2785_s0 + $0x158] sm:$0xff]  ;;  %v74_v3 = vld [vmem:[%s2785_s0 + $0x160] sm:$0xff] }
  0x54   :  { %1855 = vmatprep.mubr.bf16.mxu1 %v314_v24  ;;  %v683_v15 = vpack.c.bf16 %v637_v2, %v636_v63  ;;  %v273_v29 = vmax.f32 %v209_v20, 0.0  ;;  %v1575_v32 = vunpack.c.h.bf16 %v1639_v12  ;;  %v684_v34 = vpack.c.bf16 %v639_v25, %v638_v18  ;;  %v75_v12 = vld [vmem:[%s2785_s0 + $0x168] sm:$0xff] }
  0x55   :  { %v505_v23 = vmul.f32 %v1570_v8, %v1998_v13  ;;  %v506_v24 = vmul.f32 %v1571_v9, %v1998_v13  ;;  %v210_v35 = vadd.f32 %v2021_v22, %v139_v26  ;;  %v211_v36 = vadd.f32 %v2021_v22, %v140_v27 }
  0x56   :  { %v507_v37 = vmul.f32 %v1574_v28, %v1998_v13  ;;  %v318_v40 = vpack.c.bf16 %v273_v29, %v272_v21  ;;  %v508_v43 = vmul.f32 %v1575_v32, %v1998_v13  ;;  %v142_v51 = vmul.f32 %v2014_v19, %v71_v38  ;;  %v1643_v32 = vld [vmem:[%s2782_s4 + $0xc0] sm:$0xff]  }
  0x57   :  { %v576_v30 = vadd.f32 %v2003_v14, %v505_v23  ;;  %v577_v31 = vadd.f32 %v2003_v14, %v506_v24  ;;  %v274_v44 = vmax.f32 %v210_v35, 0.0  ;;  %v275_v45 = vmax.f32 %v211_v36, 0.0 }
  0x58   :  { %v578_v46 = vadd.f32 %v2003_v14, %v507_v37  ;;  %v579_v50 = vadd.f32 %v2003_v14, %v508_v43  ;;  %v213_v60 = vadd.f32 %v2021_v22, %v142_v51  ;;  %v144_v1 = vmul.f32 %v2014_v19, %v73_v53  ;;  %v1644_v53 = vld [vmem:[%s2782_s4 + $0xc8] sm:$0xff]  }
  0x59   :  { %v640_v41 = vmax.f32 %v576_v30, 0.0  ;;  %v641_v42 = vmax.f32 %v577_v31, 0.0  ;;  %v319_v55 = vpack.c.bf16 %v275_v45, %v274_v44  ;;  %v1582_v2 = vunpack.c.l.bf16 %v1641_v54  ;;  %v76_v30 = vld [vmem:[%s2785_s0 + $0x170] sm:$0xff]  ;;  %v77_v31 = vld [vmem:[%s2785_s0 + $0x178] sm:$0xff] }
  0x5a   :  { %1776 = vmatmul.mubr.bf16.gmra.mxu0 %v681_v33  ;;  %v70_v33 = vld [vmem:[%s2785_s0 + $0x140] sm:$0xff]  ;;  %v642_v56 = vmax.f32 %v578_v46, 0.0  ;;  %v643_v59 = vmax.f32 %v579_v50, 0.0  ;;  %v277_v5 = vmax.f32 %v213_v60, 0.0  ;;  %v215_v9 = vadd.f32 %v2021_v22, %v144_v1 }
  0x5b   :  { %1856 = vmatmul.mubr.bf16.gmra.mxu1 %v315_v39  ;;  %1779 = vmatprep.mubr.bf16.mxu0 %v682_v52  ;;  %v1640_v39 = vld [vmem:[%s2782_s4 + $0xa8] sm:$0xff]   ;;  %v141_v47 = vmul.f32 %v2014_v19, %v70_v33  ;;  %v685_v49 = vpack.c.bf16 %v641_v42, %v640_v41  ;;  %v1583_v10 = vunpack.c.h.bf16 %v1641_v54  ;;  %v511_v11 = vmul.f32 %v1582_v2, %v1998_v13 }
  0x5c   :  { %1859 = vmatprep.mubr.bf16.mxu1 %v316_v62  ;;  %v1578_v52 = vunpack.c.l.bf16 %v1640_v39  ;;  %v1579_v58 = vunpack.c.h.bf16 %v1640_v39  ;;  %v143_v62 = vmul.f32 %v2014_v19, %v72_v48  ;;  %v686_v4 = vpack.c.bf16 %v643_v59, %v642_v56  ;;  %v2454_v59 = vld [vmem:[%s2784_s6] ss:$0 sm:$0xff] }
  0x5d   :  { %v212_v57 = vadd.f32 %v2021_v22, %v141_v47  ;;  %v145_v20 = vmul.f32 %v2014_v19, %v74_v3  ;;  %v279_v23 = vmax.f32 %v215_v9, 0.0  ;;  %v512_v24 = vmul.f32 %v1583_v10, %v1998_v13 }
  0x5e   :  { %v509_v61 = vmul.f32 %v1578_v52, %v1998_v13  ;;  %v510_v0 = vmul.f32 %v1579_v58, %v1998_v13  ;;  %v214_v7 = vadd.f32 %v2021_v22, %v143_v62  ;;  %v582_v25 = vadd.f32 %v2003_v14, %v511_v11 }
  0x5f   :  { %v276_v63 = vmax.f32 %v212_v57, 0.0  ;;  %v146_v26 = vmul.f32 %v2014_v19, %v75_v12  ;;  %v216_v27 = vadd.f32 %v2021_v22, %v145_v20  ;;  %v583_v35 = vadd.f32 %v2003_v14, %v512_v24 }
  0x60   :  { %v580_v6 = vadd.f32 %v2003_v14, %v509_v61  ;;  %v581_v8 = vadd.f32 %v2003_v14, %v510_v0  ;;  %v278_v18 = vmax.f32 %v214_v7, 0.0  ;;  %v646_v36 = vmax.f32 %v582_v25, 0.0  ;;  %v2460_v61 = vld [vmem:[%s2786_s1] ss:$0 sm:$0xff] }
  0x61   :  { %v217_v37 = vadd.f32 %v2021_v22, %v146_v26  ;;  %v280_v38 = vmax.f32 %v216_v27, 0.0  ;;  %v647_v41 = vmax.f32 %v583_v35, 0.0  ;;  %v147_v42 = vmul.f32 %v2014_v19, %v76_v30 }
  0x62   :  { %1780 = vmatmul.mubr.bf16.gmra.mxu0 %v683_v15  ;;  %v1642_v15 = vld [vmem:[%s2782_s4 + $0xb8] sm:$0xff]   ;;  %v644_v17 = vmax.f32 %v580_v6, 0.0  ;;  %v645_v21 = vmax.f32 %v581_v8, 0.0  ;;  %v148_v43 = vmul.f32 %v2014_v19, %v77_v31  ;;  %v1590_v44 = vunpack.c.l.bf16 %v1643_v32  ;;  %v2441_v19 = vld [vmem:[%s2783_s5] ss:$0 sm:$0xff] }
  0x63   :  { %1860 = vmatmul.mubr.bf16.gmra.mxu1 %v317_v16  ;;  %1783 = vmatprep.mubr.bf16.mxu0 %v684_v34  ;;  %v320_v16 = vpack.c.bf16 %v277_v5, %v276_v63  ;;  %v1586_v28 = vunpack.c.l.bf16 %v1642_v15  ;;  %v1587_v29 = vunpack.c.h.bf16 %v1642_v15  ;;  %v321_v34 = vpack.c.bf16 %v279_v23, %v278_v18  ;;  %v80_v63 = vld [vmem:[%s2785_s0 + $0x190] sm:$0xff]  ;;  %v2477_v8 = vld [vmem:[%s2787_s2] ss:$0 sm:$0xff] }
  0x64   :  { %1863 = vmatprep.mubr.bf16.mxu1 %v318_v40  ;;  %v687_v33 = vpack.c.bf16 %v645_v21, %v644_v17  ;;  %v281_v45 = vmax.f32 %v217_v37, 0.0  ;;  %v1591_v48 = vunpack.c.h.bf16 %v1643_v32  ;;  %v688_v50 = vpack.c.bf16 %v647_v41, %v646_v36  ;;  %v1645_v5 = vld [vmem:[%s2782_s4 + $0xd0] sm:$0xff]   ;;  %v82_v23 = vld [vmem:[%s2785_s0 + $0x1a0] sm:$0xff]  ;;  %v83_v32 = vld [vmem:[%s2785_s0 + $0x1a8] sm:$0xff] }
  0x65   :  { %v513_v39 = vmul.f32 %v1586_v28, %v1998_v13  ;;  %v514_v40 = vmul.f32 %v1587_v29, %v1998_v13  ;;  %v218_v51 = vadd.f32 %v2021_v22, %v147_v42  ;;  %v219_v13 = vadd.f32 %v2021_v22, %v148_v43 }
  0x66   :  { %v515_v52 = vmul.f32 %v2441_v19, %v1590_v44  ;;  %v322_v54 = vpack.c.bf16 %v281_v45, %v280_v38  ;;  %v516_v22 = vmul.f32 %v2441_v19, %v1591_v48  ;;  %v1594_v3 = vunpack.c.l.bf16 %v1644_v53  ;;  %v1647_v48 = vld [vmem:[%s2782_s4 + $0xe0] sm:$0xff]  }
  0x67   :  { %v584_v46 = vadd.f32 %v2003_v14, %v513_v39  ;;  %v585_v47 = vadd.f32 %v2003_v14, %v514_v40  ;;  %v79_v14 = vld [vmem:[%s2785_s0 + $0x188] sm:$0xff]  ;;  %v282_v57 = vmax.f32 %v218_v51, 0.0  ;;  %v283_v58 = vmax.f32 %v219_v13, 0.0 }
  0x68   :  { %v586_v60 = vadd.f32 %v2454_v59, %v515_v52  ;;  %v587_v1 = vadd.f32 %v2454_v59, %v516_v22  ;;  %v150_v2 = vmul.f32 %v2460_v61, %v79_v14  ;;  %v1595_v10 = vunpack.c.h.bf16 %v1644_v53 }
  0x69   :  { %v649_v56 = vmax.f32 %v585_v47, 0.0  ;;  %v323_v6 = vpack.c.bf16 %v283_v58, %v282_v57  ;;  %v517_v15 = vmul.f32 %v2441_v19, %v1594_v3  ;;  %v1598_v21 = vunpack.c.l.bf16 %v1645_v5  ;;  %v85_v47 = vld [vmem:[%s2785_s0 + $0x1b8] sm:$0xff] }
  0x6a   :  { %1784 = vmatmul.mubr.bf16.gmra.mxu0 %v685_v49  ;;  %v78_v49 = vld [vmem:[%s2785_s0 + $0x180] sm:$0xff]  ;;  %v650_v7 = vmax.f32 %v586_v60, 0.0  ;;  %v651_v11 = vmax.f32 %v587_v1, 0.0  ;;  %v221_v12 = vadd.f32 %v2477_v8, %v150_v2  ;;  %v518_v18 = vmul.f32 %v2441_v19, %v1595_v10 }
  0x6b   :  { %1864 = vmatmul.mubr.bf16.gmra.mxu1 %v319_v55  ;;  %1787 = vmatprep.mubr.bf16.mxu0 %v686_v4  ;;  %v648_v55 = vmax.f32 %v584_v46, 0.0  ;;  %v149_v62 = vmul.f32 %v2460_v61, %v78_v49  ;;  %v81_v4 = vld [vmem:[%s2785_s0 + $0x198] sm:$0xff]  ;;  %v588_v26 = vadd.f32 %v2454_v59, %v517_v15  ;;  %v1599_v30 = vunpack.c.h.bf16 %v1645_v5  ;;  %v84_v46 = vld [vmem:[%s2785_s0 + $0x1b0] sm:$0xff]  ;;  %v87_v5 = vld [vmem:[%s2785_s0 + $0x1c8] sm:$0xff] }
  0x6c   :  { %1867 = vmatprep.mubr.bf16.mxu1 %v320_v16  ;;  %v151_v16 = vmul.f32 %v2460_v61, %v80_v63  ;;  %v152_v20 = vmul.f32 %v2460_v61, %v81_v4  ;;  %v690_v24 = vpack.c.bf16 %v651_v11, %v650_v7  ;;  %v285_v25 = vmax.f32 %v221_v12, 0.0 }
  0x6d   :  { %v689_v0 = vpack.c.bf16 %v649_v56, %v648_v55  ;;  %v220_v9 = vadd.f32 %v2477_v8, %v149_v62  ;;  %v589_v28 = vadd.f32 %v2454_v59, %v518_v18  ;;  %v519_v31 = vmul.f32 %v2441_v19, %v1598_v21  ;;  %v88_v18 = vld [vmem:[%s2785_s0 + $0x1d0] sm:$0xff] }
  0x6e   :  { %v222_v27 = vadd.f32 %v2477_v8, %v151_v16  ;;  %v223_v29 = vadd.f32 %v2477_v8, %v152_v20  ;;  %v652_v35 = vmax.f32 %v588_v26, 0.0  ;;  %v153_v37 = vmul.f32 %v2460_v61, %v82_v23  ;;  %v1649_v26 = vld [vmem:[%s2782_s4 + $0xf0] sm:$0xff]  }
  0x6f   :  { %v284_v17 = vmax.f32 %v220_v9, 0.0  ;;  %v653_v38 = vmax.f32 %v589_v28, 0.0  ;;  %v520_v40 = vmul.f32 %v2441_v19, %v1599_v30  ;;  %v590_v41 = vadd.f32 %v2454_v59, %v519_v31 }
  0x70   :  { %v286_v36 = vmax.f32 %v222_v27, 0.0  ;;  %v287_v39 = vmax.f32 %v223_v29, 0.0  ;;  %v154_v42 = vmul.f32 %v2460_v61, %v83_v32  ;;  %v224_v43 = vadd.f32 %v2477_v8, %v153_v37 }
  0x71   :  { %v691_v49 = vpack.c.bf16 %v653_v38, %v652_v35  ;;  %v591_v51 = vadd.f32 %v2454_v59, %v520_v40  ;;  %v654_v13 = vmax.f32 %v590_v41, 0.0  ;;  %v155_v56 = vmul.f32 %v2460_v61, %v84_v46 }
  0x72   :  { %1788 = vmatmul.mubr.bf16.gmra.mxu0 %v687_v33  ;;  %v1646_v33 = vld [vmem:[%s2782_s4 + $0xd8] sm:$0xff]   ;;  %v225_v52 = vadd.f32 %v2477_v8, %v154_v42  ;;  %v288_v14 = vmax.f32 %v224_v43, 0.0  ;;  %v156_v22 = vmul.f32 %v2460_v61, %v85_v47  ;;  %v1606_v57 = vunpack.c.l.bf16 %v1647_v48 }
  0x73   :  { %1868 = vmatmul.mubr.bf16.gmra.mxu1 %v321_v34  ;;  %1791 = vmatprep.mubr.bf16.mxu0 %v688_v50  ;;  %v324_v34 = vpack.c.bf16 %v285_v25, %v284_v17  ;;  %v1602_v44 = vunpack.c.l.bf16 %v1646_v33  ;;  %v1603_v45 = vunpack.c.h.bf16 %v1646_v33  ;;  %v325_v50 = vpack.c.bf16 %v287_v39, %v286_v36  ;;  %v89_v25 = vld [vmem:[%s2785_s0 + $0x1d8] sm:$0xff]  ;;  %v90_v39 = vld [vmem:[%s2785_s0 + $0x1e0] sm:$0xff] }
  0x74   :  { %1871 = vmatprep.mubr.bf16.mxu1 %v322_v54  ;;  %v655_v55 = vmax.f32 %v591_v51, 0.0  ;;  %v289_v58 = vmax.f32 %v225_v52, 0.0  ;;  %v1607_v63 = vunpack.c.h.bf16 %v1647_v48  ;;  %v226_v2 = vadd.f32 %v2477_v8, %v155_v56  ;;  %v91_v48 = vld [vmem:[%s2785_s0 + $0x1e8] sm:$0xff] }
  0x75   :  { %v521_v53 = vmul.f32 %v2441_v19, %v1602_v44  ;;  %v522_v54 = vmul.f32 %v2441_v19, %v1603_v45  ;;  %v227_v3 = vadd.f32 %v2477_v8, %v156_v22  ;;  %v523_v4 = vmul.f32 %v2441_v19, %v1606_v57 }
  0x76   :  { %v692_v1 = vpack.c.bf16 %v655_v55, %v654_v13  ;;  %v326_v7 = vpack.c.bf16 %v289_v58, %v288_v14  ;;  %v524_v11 = vmul.f32 %v2441_v19, %v1607_v63  ;;  %v290_v12 = vmax.f32 %v226_v2, 0.0 }
  0x77   :  { %v592_v60 = vadd.f32 %v2454_v59, %v521_v53  ;;  %v593_v62 = vadd.f32 %v2454_v59, %v522_v54  ;;  %v291_v15 = vmax.f32 %v227_v3, 0.0  ;;  %v594_v16 = vadd.f32 %v2454_v59, %v523_v4 }
  0x78   :  { %v595_v21 = vadd.f32 %v2454_v59, %v524_v11  ;;  %v158_v23 = vmul.f32 %v2460_v61, %v87_v5  ;;  %v160_v37 = vmul.f32 %v2460_v61, %v89_v25  ;;  %v1614_v38 = vunpack.c.l.bf16 %v1649_v26 }
  0x79   :  { %v656_v9 = vmax.f32 %v592_v60, 0.0  ;;  %v657_v10 = vmax.f32 %v593_v62, 0.0  ;;  %v327_v27 = vpack.c.bf16 %v291_v15, %v290_v12  ;;  %v658_v28 = vmax.f32 %v594_v16, 0.0  ;;  %v92_v60 = vld [vmem:[%s2785_s0 + $0x1f0] sm:$0xff]  ;;  %v93_v62 = vld [vmem:[%s2785_s0 + $0x1f8] sm:$0xff] }
  0x7a   :  { %1792 = vmatmul.mubr.bf16.gmra.mxu0 %v689_v0  ;;  %v86_v0 = vld [vmem:[%s2785_s0 + $0x1c0] sm:$0xff]  ;;  %v659_v31 = vmax.f32 %v595_v21, 0.0  ;;  %v229_v32 = vadd.f32 %v2477_v8, %v158_v23  ;;  %v231_v45 = vadd.f32 %v2477_v8, %v160_v37  ;;  %v1615_v46 = vunpack.c.h.bf16 %v1649_v26 }
  0x7b   :  { %1872 = vmatmul.mubr.bf16.gmra.mxu1 %v323_v6  ;;  %1795 = vmatprep.mubr.bf16.mxu0 %v690_v24  ;;  %v1648_v6 = vld [vmem:[%s2782_s4 + $0xe8] sm:$0xff]   ;;  %v157_v17 = vmul.f32 %v2460_v61, %v86_v0  ;;  %v693_v20 = vpack.c.bf16 %v657_v10, %v656_v9  ;;  %v527_v47 = vmul.f32 %v2441_v19, %v1614_v38 }
  0x7c   :  { %1875 = vmatprep.mubr.bf16.mxu1 %v324_v34  ;;  %v1610_v24 = vunpack.c.l.bf16 %v1648_v6  ;;  %v1611_v30 = vunpack.c.h.bf16 %v1648_v6  ;;  %v159_v34 = vmul.f32 %v2460_v61, %v88_v18  ;;  %v694_v40 = vpack.c.bf16 %v659_v31, %v658_v28 }
  0x7d   :  { %v228_v29 = vadd.f32 %v2477_v8, %v157_v17  ;;  %v293_v41 = vmax.f32 %v229_v32, 0.0  ;;  %v161_v52 = vmul.f32 %v2460_v61, %v90_v39  ;;  %v295_v53 = vmax.f32 %v231_v45, 0.0 }
  0x7e   :  { %v525_v33 = vmul.f32 %v2441_v19, %v1610_v24  ;;  %v526_v36 = vmul.f32 %v2441_v19, %v1611_v30  ;;  %v230_v43 = vadd.f32 %v2477_v8, %v159_v34  ;;  %v528_v54 = vmul.f32 %v2441_v19, %v1615_v46 }
  0x7f   :  { %v292_v35 = vmax.f32 %v228_v29, 0.0  ;;  %v598_v55 = vadd.f32 %v2454_v59, %v527_v47  ;;  %v162_v56 = vmul.f32 %v2460_v61, %v91_v48  ;;  %v232_v22 = vadd.f32 %v2477_v8, %v161_v52 }
  0x80   :  { %v596_v42 = vadd.f32 %v2454_v59, %v525_v33  ;;  %v597_v44 = vadd.f32 %v2454_v59, %v526_v36  ;;  %v294_v13 = vmax.f32 %v230_v43, 0.0  ;;  %v599_v63 = vadd.f32 %v2454_v59, %v528_v54 }
  0x81   :  { %v662_v0 = vmax.f32 %v598_v55, 0.0  ;;  %v296_v2 = vmax.f32 %v232_v22, 0.0  ;;  %v164_v9 = vmul.f32 %v2460_v61, %v93_v62 }
  0x82   :  { %1796 = vmatmul.mubr.bf16.gmra.mxu0 %v691_v49  ;;  %v1650_v49 = vld [vmem:[%s2782_s4 + $0xf8] sm:$0xff]   ;;  %v660_v51 = vmax.f32 %v596_v42, 0.0  ;;  %v661_v14 = vmax.f32 %v597_v44, 0.0  ;;  %v663_v6 = vmax.f32 %v599_v63, 0.0  ;;  %v329_v10 = vpack.c.bf16 %v295_v53, %v294_v13 }
  0x83   :  { %1876 = vmatmul.mubr.bf16.gmra.mxu1 %v325_v50  ;;  %1799 = vmatprep.mubr.bf16.mxu0 %v692_v1  ;;  %v328_v50 = vpack.c.bf16 %v293_v41, %v292_v35  ;;  %v1618_v57 = vunpack.c.l.bf16 %v1650_v49  ;;  %v1619_v58 = vunpack.c.h.bf16 %v1650_v49  ;;  %v233_v1 = vadd.f32 %v2477_v8, %v162_v56 }
  0x84   :  { %1879 = vmatprep.mubr.bf16.mxu1 %v326_v7  ;;  %v695_v5 = vpack.c.bf16 %v661_v14, %v660_v51  ;;  %v163_v7 = vmul.f32 %v2460_v61, %v92_v60  ;;  %v696_v16 = vpack.c.bf16 %v663_v6, %v662_v0  ;;  %v235_v18 = vadd.f32 %v2477_v8, %v164_v9 }
  0x85   :  { %v529_v3 = vmul.f32 %v2441_v19, %v1618_v57  ;;  %v530_v4 = vmul.f32 %v2441_v19, %v1619_v58  ;;  %v297_v11 = vmax.f32 %v233_v1, 0.0 }
  0x86   :  { %v234_v17 = vadd.f32 %v2477_v8, %v163_v7  ;;  %v299_v24 = vmax.f32 %v235_v18, 0.0 }
  0x87   :  { %v600_v12 = vadd.f32 %v2454_v59, %v529_v3  ;;  %v601_v15 = vadd.f32 %v2454_v59, %v530_v4 }
  0x88   :  { %v298_v23 = vmax.f32 %v234_v17, 0.0 }
  0x89   :  { %v664_v19 = vmax.f32 %v600_v12, 0.0  ;;  %v665_v21 = vmax.f32 %v601_v15, 0.0 }
  0x8a   :  { %1800 = vmatmul.mubr.bf16.gmra.mxu0 %v693_v20  ;;  %v330_v20 = vpack.c.bf16 %v297_v11, %v296_v2  ;;  %v331_v25 = vpack.c.bf16 %v299_v24, %v298_v23 }
  0x8b   :  { %1880 = vmatmul.mubr.bf16.gmra.mxu1 %v327_v27  ;;  %1803 = vmatprep.mubr.bf16.mxu0 %v694_v40  ;;  %v697_v61 = vpack.c.bf16 %v665_v21, %v664_v19 }
  0x8c   :  { %1883 = vmatprep.mubr.bf16.mxu1 %v328_v50 }
  0x92   :  { %1804 = vmatmul.mubr.bf16.gmra.mxu0 %v695_v5 }
  0x93   :  { %1884 = vmatmul.mubr.bf16.gmra.mxu1 %v329_v10  ;;  %1807 = vmatprep.mubr.bf16.mxu0 %v696_v16 }
  0x94   :  { %1887 = vmatprep.mubr.bf16.mxu1 %v330_v20 }
  0x9a   :  { %1808 = vmatmul.mubr.bf16.gmra.mxu0 %v697_v61 }
  0x9b   :  { %1888 = vmatmul.mubr.bf16.gmra.mxu1 %v331_v25 }
  0xe2   :  { %v1749_v26 = vpop.f32.mrf.mxu0 }
  0xe3   :  { %v1829_v59 = vpop.f32.mrf.mxu1 }
  0xe4   :  { %v1158_v27 = vadd.f32 %v1829_v59, %v1749_v26  ;;  %v812_v28 = vpop.f32.mrf.mxu0 }
  0xe5   :  { %v1149_v29 = vpop.f32.mrf.mxu1 }
  0xe6   :  { %1406 = vst [vmem:[%s2788_s8 + $0x10] sm:$0xff] %v1158_v27  ;;  %v1150_v8 = vadd.f32 %v1149_v29, %v812_v28  ;;  %v1750_v30 = vpop.f32.mrf.mxu0 }
  0xe7   :  { %v1830_v31 = vpop.f32.mrf.mxu1 }
  0xe8   :  { %1404 = vst [vmem:[%s2788_s8] sm:$0xff] %v1150_v8  ;;  %v1161_v32 = vadd.f32 %v1830_v31, %v1750_v30  ;;  %v815_v33 = vpop.f32.mrf.mxu0 }
  0xe9   :  { %v1152_v34 = vpop.f32.mrf.mxu1 }
  0xea   :  { %1407 = vst [vmem:[%s2788_s8 + $0x18] sm:$0xff] %v1161_v32  ;;  %v1153_v35 = vadd.f32 %v1152_v34, %v815_v33  ;;  %v1753_v36 = vpop.f32.mrf.mxu0 }
  0xeb   :  { %v1833_v37 = vpop.f32.mrf.mxu1 }
  0xec   :  { %1405 = vst [vmem:[%s2788_s8 + $0x8] sm:$0xff] %v1153_v35  ;;  %v1174_v38 = vadd.f32 %v1833_v37, %v1753_v36  ;;  %v828_v39 = vpop.f32.mrf.mxu0 }
  0xed   :  { %v1165_v40 = vpop.f32.mrf.mxu1 }
  0xee   :  { %1410 = vst [vmem:[%s2788_s8 + $0x30] sm:$0xff] %v1174_v38  ;;  %v1166_v41 = vadd.f32 %v1165_v40, %v828_v39  ;;  %v1754_v42 = vpop.f32.mrf.mxu0 }
  0xef   :  { %v1834_v43 = vpop.f32.mrf.mxu1 }
  0xf0   :  { %1408 = vst [vmem:[%s2788_s8 + $0x20] sm:$0xff] %v1166_v41  ;;  %v1177_v44 = vadd.f32 %v1834_v43, %v1754_v42  ;;  %v831_v45 = vpop.f32.mrf.mxu0 }
  0xf1   :  { %v1168_v46 = vpop.f32.mrf.mxu1 }
  0xf2   :  { %1411 = vst [vmem:[%s2788_s8 + $0x38] sm:$0xff] %v1177_v44  ;;  %v1169_v47 = vadd.f32 %v1168_v46, %v831_v45  ;;  %v1757_v48 = vpop.f32.mrf.mxu0 }
  0xf3   :  { %v1837_v49 = vpop.f32.mrf.mxu1 }
  0xf4   :  { %1409 = vst [vmem:[%s2788_s8 + $0x28] sm:$0xff] %v1169_v47  ;;  %v1190_v50 = vadd.f32 %v1837_v49, %v1757_v48  ;;  %v844_v51 = vpop.f32.mrf.mxu0 }
  0xf5   :  { %v1181_v13 = vpop.f32.mrf.mxu1 }
  0xf6   :  { %1414 = vst [vmem:[%s2788_s8 + $0x50] sm:$0xff] %v1190_v50  ;;  %v1182_v52 = vadd.f32 %v1181_v13, %v844_v51  ;;  %v1758_v14 = vpop.f32.mrf.mxu0 }
  0xf7   :  { %v1838_v53 = vpop.f32.mrf.mxu1 }
  0xf8   :  { %1412 = vst [vmem:[%s2788_s8 + $0x40] sm:$0xff] %v1182_v52  ;;  %v1193_v54 = vadd.f32 %v1838_v53, %v1758_v14  ;;  %v847_v55 = vpop.f32.mrf.mxu0 }
  0xf9   :  { %v1184_v56 = vpop.f32.mrf.mxu1 }
  0xfa   :  { %1415 = vst [vmem:[%s2788_s8 + $0x58] sm:$0xff] %v1193_v54  ;;  %v1185_v22 = vadd.f32 %v1184_v56, %v847_v55  ;;  %v1761_v57 = vpop.f32.mrf.mxu0 }
  0xfb   :  { %v1841_v58 = vpop.f32.mrf.mxu1 }
  0xfc   :  { %1413 = vst [vmem:[%s2788_s8 + $0x48] sm:$0xff] %v1185_v22  ;;  %v1206_v60 = vadd.f32 %v1841_v58, %v1761_v57  ;;  %v860_v62 = vpop.f32.mrf.mxu0 }
  0xfd   :  { %v1197_v63 = vpop.f32.mrf.mxu1 }
  0xfe   :  { %1418 = vst [vmem:[%s2788_s8 + $0x70] sm:$0xff] %v1206_v60  ;;  %v1198_v0 = vadd.f32 %v1197_v63, %v860_v62  ;;  %v1762_v1 = vpop.f32.mrf.mxu0 }
  0xff   :  { %v1842_v2 = vpop.f32.mrf.mxu1 }
 0x100   :  { %1416 = vst [vmem:[%s2788_s8 + $0x60] sm:$0xff] %v1198_v0  ;;  %v1209_v3 = vadd.f32 %v1842_v2, %v1762_v1  ;;  %v863_v4 = vpop.f32.mrf.mxu0 }
 0x101   :  { %v1200_v5 = vpop.f32.mrf.mxu1 }
 0x102   :  { %1419 = vst [vmem:[%s2788_s8 + $0x78] sm:$0xff] %v1209_v3  ;;  %v1201_v6 = vadd.f32 %v1200_v5, %v863_v4  ;;  %v1765_v7 = vpop.f32.mrf.mxu0 }
 0x103   :  { %v1845_v9 = vpop.f32.mrf.mxu1 }
 0x104   :  { %1417 = vst [vmem:[%s2788_s8 + $0x68] sm:$0xff] %v1201_v6  ;;  %v1222_v10 = vadd.f32 %v1845_v9, %v1765_v7  ;;  %v876_v11 = vpop.f32.mrf.mxu0 }
 0x105   :  { %v1213_v12 = vpop.f32.mrf.mxu1 }
 0x106   :  { %1422 = vst [vmem:[%s2788_s8 + $0x90] sm:$0xff] %v1222_v10  ;;  %v1214_v15 = vadd.f32 %v1213_v12, %v876_v11  ;;  %v1766_v16 = vpop.f32.mrf.mxu0 }
 0x107   :  { %v1846_v17 = vpop.f32.mrf.mxu1 }
 0x108   :  { %1420 = vst [vmem:[%s2788_s8 + $0x80] sm:$0xff] %v1214_v15  ;;  %v1225_v18 = vadd.f32 %v1846_v17, %v1766_v16  ;;  %v879_v20 = vpop.f32.mrf.mxu0 }
 0x109   :  { %v1216_v19 = vpop.f32.mrf.mxu1 }
 0x10a   :  { %1423 = vst [vmem:[%s2788_s8 + $0x98] sm:$0xff] %v1225_v18  ;;  %v1217_v21 = vadd.f32 %v1216_v19, %v879_v20  ;;  %v1769_v23 = vpop.f32.mrf.mxu0 }
 0x10b   :  { %v1849_v24 = vpop.f32.mrf.mxu1 }
 0x10c   :  { %1421 = vst [vmem:[%s2788_s8 + $0x88] sm:$0xff] %v1217_v21  ;;  %v1238_v61 = vadd.f32 %v1849_v24, %v1769_v23  ;;  %v892_v25 = vpop.f32.mrf.mxu0 }
 0x10d   :  { %v1229_v26 = vpop.f32.mrf.mxu1 }
 0x10e   :  { %1426 = vst [vmem:[%s2788_s8 + $0xb0] sm:$0xff] %v1238_v61  ;;  %v1230_v59 = vadd.f32 %v1229_v26, %v892_v25  ;;  %v1770_v27 = vpop.f32.mrf.mxu0 }
 0x10f   :  { %v1850_v28 = vpop.f32.mrf.mxu1 }
 0x110   :  { %1424 = vst [vmem:[%s2788_s8 + $0xa0] sm:$0xff] %v1230_v59  ;;  %v1241_v29 = vadd.f32 %v1850_v28, %v1770_v27  ;;  %v895_v8 = vpop.f32.mrf.mxu0 }
 0x111   :  { %v1232_v30 = vpop.f32.mrf.mxu1 }
 0x112   :  { %1427 = vst [vmem:[%s2788_s8 + $0xb8] sm:$0xff] %v1241_v29  ;;  %v1233_v31 = vadd.f32 %v1232_v30, %v895_v8  ;;  %v1773_v32 = vpop.f32.mrf.mxu0 }
 0x113   :  { %v1853_v33 = vpop.f32.mrf.mxu1 }
 0x114   :  { %1425 = vst [vmem:[%s2788_s8 + $0xa8] sm:$0xff] %v1233_v31  ;;  %v1254_v34 = vadd.f32 %v1853_v33, %v1773_v32  ;;  %v908_v35 = vpop.f32.mrf.mxu0 }
 0x115   :  { %v1245_v36 = vpop.f32.mrf.mxu1 }
 0x116   :  { %1430 = vst [vmem:[%s2788_s8 + $0xd0] sm:$0xff] %v1254_v34  ;;  %v1246_v37 = vadd.f32 %v1245_v36, %v908_v35  ;;  %v1774_v38 = vpop.f32.mrf.mxu0 }
 0x117   :  { %v1854_v39 = vpop.f32.mrf.mxu1 }
 0x118   :  { %1428 = vst [vmem:[%s2788_s8 + $0xc0] sm:$0xff] %v1246_v37  ;;  %v1257_v40 = vadd.f32 %v1854_v39, %v1774_v38  ;;  %v911_v41 = vpop.f32.mrf.mxu0 }
 0x119   :  { %v1248_v42 = vpop.f32.mrf.mxu1 }
 0x11a   :  { %1431 = vst [vmem:[%s2788_s8 + $0xd8] sm:$0xff] %v1257_v40  ;;  %v1249_v43 = vadd.f32 %v1248_v42, %v911_v41  ;;  %v1777_v44 = vpop.f32.mrf.mxu0 }
 0x11b   :  { %v1857_v45 = vpop.f32.mrf.mxu1 }
 0x11c   :  { %1429 = vst [vmem:[%s2788_s8 + $0xc8] sm:$0xff] %v1249_v43  ;;  %v1270_v46 = vadd.f32 %v1857_v45, %v1777_v44  ;;  %v924_v47 = vpop.f32.mrf.mxu0 }
 0x11d   :  { %v1261_v48 = vpop.f32.mrf.mxu1 }
 0x11e   :  { %1434 = vst [vmem:[%s2788_s8 + $0xf0] sm:$0xff] %v1270_v46  ;;  %v1262_v49 = vadd.f32 %v1261_v48, %v924_v47  ;;  %v1778_v50 = vpop.f32.mrf.mxu0 }
 0x11f   :  { %v1858_v51 = vpop.f32.mrf.mxu1 }
 0x120   :  { %1432 = vst [vmem:[%s2788_s8 + $0xe0] sm:$0xff] %v1262_v49  ;;  %v1273_v13 = vadd.f32 %v1858_v51, %v1778_v50  ;;  %v927_v52 = vpop.f32.mrf.mxu0 }
 0x121   :  { %v1264_v14 = vpop.f32.mrf.mxu1 }
 0x122   :  { %1435 = vst [vmem:[%s2788_s8 + $0xf8] sm:$0xff] %v1273_v13  ;;  %v1265_v53 = vadd.f32 %v1264_v14, %v927_v52  ;;  %v1781_v54 = vpop.f32.mrf.mxu0 }
 0x123   :  { %v1861_v55 = vpop.f32.mrf.mxu1 }
 0x124   :  { %1433 = vst [vmem:[%s2788_s8 + $0xe8] sm:$0xff] %v1265_v53  ;;  %v1286_v56 = vadd.f32 %v1861_v55, %v1781_v54  ;;  %v940_v22 = vpop.f32.mrf.mxu0 }
 0x125   :  { %v1277_v57 = vpop.f32.mrf.mxu1 }
 0x126   :  { %1438 = vst [vmem:[%s2788_s8 + $0x110] sm:$0xff] %v1286_v56  ;;  %v1278_v58 = vadd.f32 %v1277_v57, %v940_v22  ;;  %v1782_v60 = vpop.f32.mrf.mxu0 }
 0x127   :  { %v1862_v62 = vpop.f32.mrf.mxu1 }
 0x128   :  { %1436 = vst [vmem:[%s2788_s8 + $0x100] sm:$0xff] %v1278_v58  ;;  %v1289_v63 = vadd.f32 %v1862_v62, %v1782_v60  ;;  %v943_v0 = vpop.f32.mrf.mxu0 }
 0x129   :  { %v1280_v1 = vpop.f32.mrf.mxu1 }
 0x12a   :  { %1439 = vst [vmem:[%s2788_s8 + $0x118] sm:$0xff] %v1289_v63  ;;  %v1281_v2 = vadd.f32 %v1280_v1, %v943_v0  ;;  %v1785_v3 = vpop.f32.mrf.mxu0 }
 0x12b   :  { %v1865_v4 = vpop.f32.mrf.mxu1 }
 0x12c   :  { %1437 = vst [vmem:[%s2788_s8 + $0x108] sm:$0xff] %v1281_v2  ;;  %v1302_v5 = vadd.f32 %v1865_v4, %v1785_v3  ;;  %v956_v6 = vpop.f32.mrf.mxu0 }
 0x12d   :  { %v1293_v7 = vpop.f32.mrf.mxu1 }
 0x12e   :  { %1442 = vst [vmem:[%s2788_s8 + $0x130] sm:$0xff] %v1302_v5  ;;  %v1294_v9 = vadd.f32 %v1293_v7, %v956_v6  ;;  %v1786_v10 = vpop.f32.mrf.mxu0 }
 0x12f   :  { %v1866_v11 = vpop.f32.mrf.mxu1 }
 0x130   :  { %1440 = vst [vmem:[%s2788_s8 + $0x120] sm:$0xff] %v1294_v9  ;;  %v1305_v12 = vadd.f32 %v1866_v11, %v1786_v10  ;;  %v959_v15 = vpop.f32.mrf.mxu0 }
 0x131   :  { %v1296_v16 = vpop.f32.mrf.mxu1 }
 0x132   :  { %1443 = vst [vmem:[%s2788_s8 + $0x138] sm:$0xff] %v1305_v12  ;;  %v1297_v17 = vadd.f32 %v1296_v16, %v959_v15  ;;  %v1789_v18 = vpop.f32.mrf.mxu0 }
 0x133   :  { %v1869_v20 = vpop.f32.mrf.mxu1 }
 0x134   :  { %1441 = vst [vmem:[%s2788_s8 + $0x128] sm:$0xff] %v1297_v17  ;;  %v1318_v19 = vadd.f32 %v1869_v20, %v1789_v18  ;;  %v972_v21 = vpop.f32.mrf.mxu0 }
 0x135   :  { %v1309_v23 = vpop.f32.mrf.mxu1 }
 0x136   :  { %1446 = vst [vmem:[%s2788_s8 + $0x150] sm:$0xff] %v1318_v19  ;;  %v1310_v24 = vadd.f32 %v1309_v23, %v972_v21  ;;  %v1790_v61 = vpop.f32.mrf.mxu0 }
 0x137   :  { %v1870_v25 = vpop.f32.mrf.mxu1 }
 0x138   :  { %1444 = vst [vmem:[%s2788_s8 + $0x140] sm:$0xff] %v1310_v24  ;;  %v1321_v26 = vadd.f32 %v1870_v25, %v1790_v61  ;;  %v975_v59 = vpop.f32.mrf.mxu0 }
 0x139   :  { %v1312_v27 = vpop.f32.mrf.mxu1 }
 0x13a   :  { %1447 = vst [vmem:[%s2788_s8 + $0x158] sm:$0xff] %v1321_v26  ;;  %v1313_v28 = vadd.f32 %v1312_v27, %v975_v59  ;;  %v1793_v29 = vpop.f32.mrf.mxu0 }
 0x13b   :  { %v1873_v8 = vpop.f32.mrf.mxu1 }
 0x13c   :  { %1445 = vst [vmem:[%s2788_s8 + $0x148] sm:$0xff] %v1313_v28  ;;  %v1334_v30 = vadd.f32 %v1873_v8, %v1793_v29  ;;  %v988_v31 = vpop.f32.mrf.mxu0 }
 0x13d   :  { %v1325_v32 = vpop.f32.mrf.mxu1 }
 0x13e   :  { %1450 = vst [vmem:[%s2788_s8 + $0x170] sm:$0xff] %v1334_v30  ;;  %v1326_v33 = vadd.f32 %v1325_v32, %v988_v31  ;;  %v1794_v34 = vpop.f32.mrf.mxu0 }
 0x13f   :  { %v1874_v35 = vpop.f32.mrf.mxu1 }
 0x140   :  { %1448 = vst [vmem:[%s2788_s8 + $0x160] sm:$0xff] %v1326_v33  ;;  %v1337_v36 = vadd.f32 %v1874_v35, %v1794_v34  ;;  %v991_v37 = vpop.f32.mrf.mxu0 }
 0x141   :  { %v1328_v38 = vpop.f32.mrf.mxu1 }
 0x142   :  { %1451 = vst [vmem:[%s2788_s8 + $0x178] sm:$0xff] %v1337_v36  ;;  %v1329_v39 = vadd.f32 %v1328_v38, %v991_v37  ;;  %v1797_v40 = vpop.f32.mrf.mxu0 }
 0x143   :  { %v1877_v41 = vpop.f32.mrf.mxu1 }
 0x144   :  { %1449 = vst [vmem:[%s2788_s8 + $0x168] sm:$0xff] %v1329_v39  ;;  %v1350_v42 = vadd.f32 %v1877_v41, %v1797_v40  ;;  %v1004_v43 = vpop.f32.mrf.mxu0 }
 0x145   :  { %v1341_v44 = vpop.f32.mrf.mxu1 }
 0x146   :  { %1454 = vst [vmem:[%s2788_s8 + $0x190] sm:$0xff] %v1350_v42  ;;  %v1342_v45 = vadd.f32 %v1341_v44, %v1004_v43  ;;  %v1798_v46 = vpop.f32.mrf.mxu0 }
 0x147   :  { %v1878_v47 = vpop.f32.mrf.mxu1 }
 0x148   :  { %1452 = vst [vmem:[%s2788_s8 + $0x180] sm:$0xff] %v1342_v45  ;;  %v1353_v48 = vadd.f32 %v1878_v47, %v1798_v46  ;;  %v1007_v49 = vpop.f32.mrf.mxu0 }
 0x149   :  { %v1344_v50 = vpop.f32.mrf.mxu1 }
 0x14a   :  { %1455 = vst [vmem:[%s2788_s8 + $0x198] sm:$0xff] %v1353_v48  ;;  %v1345_v51 = vadd.f32 %v1344_v50, %v1007_v49  ;;  %v1801_v13 = vpop.f32.mrf.mxu0 }
 0x14b   :  { %v1881_v52 = vpop.f32.mrf.mxu1 }
 0x14c   :  { %1453 = vst [vmem:[%s2788_s8 + $0x188] sm:$0xff] %v1345_v51  ;;  %v1366_v14 = vadd.f32 %v1881_v52, %v1801_v13  ;;  %v1020_v53 = vpop.f32.mrf.mxu0 }
 0x14d   :  { %v1357_v54 = vpop.f32.mrf.mxu1 }
 0x14e   :  { %1458 = vst [vmem:[%s2788_s8 + $0x1b0] sm:$0xff] %v1366_v14  ;;  %v1358_v55 = vadd.f32 %v1357_v54, %v1020_v53  ;;  %v1802_v56 = vpop.f32.mrf.mxu0 }
 0x14f   :  { %v1882_v22 = vpop.f32.mrf.mxu1 }
 0x150   :  { %1456 = vst [vmem:[%s2788_s8 + $0x1a0] sm:$0xff] %v1358_v55  ;;  %v1369_v57 = vadd.f32 %v1882_v22, %v1802_v56  ;;  %v1023_v58 = vpop.f32.mrf.mxu0 }
 0x151   :  { %v1360_v60 = vpop.f32.mrf.mxu1 }
 0x152   :  { %1459 = vst [vmem:[%s2788_s8 + $0x1b8] sm:$0xff] %v1369_v57  ;;  %v1361_v62 = vadd.f32 %v1360_v60, %v1023_v58  ;;  %v1805_v63 = vpop.f32.mrf.mxu0 }
 0x153   :  { %v1885_v0 = vpop.f32.mrf.mxu1 }
 0x154   :  { %1457 = vst [vmem:[%s2788_s8 + $0x1a8] sm:$0xff] %v1361_v62  ;;  %v1382_v1 = vadd.f32 %v1885_v0, %v1805_v63  ;;  %v1036_v2 = vpop.f32.mrf.mxu0 }
 0x155   :  { %v1373_v3 = vpop.f32.mrf.mxu1 }
 0x156   :  { %1462 = vst [vmem:[%s2788_s8 + $0x1d0] sm:$0xff] %v1382_v1  ;;  %v1374_v4 = vadd.f32 %v1373_v3, %v1036_v2  ;;  %v1806_v5 = vpop.f32.mrf.mxu0 }
 0x157   :  { %v1886_v6 = vpop.f32.mrf.mxu1 }
 0x158   :  { %1460 = vst [vmem:[%s2788_s8 + $0x1c0] sm:$0xff] %v1374_v4  ;;  %v1385_v7 = vadd.f32 %v1886_v6, %v1806_v5  ;;  %v1039_v9 = vpop.f32.mrf.mxu0 }
 0x159   :  { %v1376_v10 = vpop.f32.mrf.mxu1 }
 0x15a   :  { %1463 = vst [vmem:[%s2788_s8 + $0x1d8] sm:$0xff] %v1385_v7  ;;  %v1377_v11 = vadd.f32 %v1376_v10, %v1039_v9  ;;  %v1809_v12 = vpop.f32.mrf.mxu0 }
 0x15b   :  { %v1889_v15 = vpop.f32.mrf.mxu1 }
 0x15c   :  { %1461 = vst [vmem:[%s2788_s8 + $0x1c8] sm:$0xff] %v1377_v11  ;;  %v1398_v16 = vadd.f32 %v1889_v15, %v1809_v12  ;;  %v1052_v17 = vpop.f32.mrf.mxu0 }
 0x15d   :  { %v1389_v18 = vpop.f32.mrf.mxu1 }
 0x15e   :  { %1466 = vst [vmem:[%s2788_s8 + $0x1f0] sm:$0xff] %v1398_v16  ;;  %v1390_v20 = vadd.f32 %v1389_v18, %v1052_v17  ;;  %v1810_v19 = vpop.f32.mrf.mxu0 }
 0x15f   :  { %v1890_v21 = vpop.f32.mrf.mxu1 }
 0x160   :  { %1464 = vst [vmem:[%s2788_s8 + $0x1e0] sm:$0xff] %v1390_v20  ;;  %v1401_v23 = vadd.f32 %v1890_v21, %v1810_v19  ;;  %v1055_v24 = vpop.f32.mrf.mxu0 }
 0x161   :  { %v1392_v61 = vpop.f32.mrf.mxu1 }
 0x162   :  { %1467 = vst [vmem:[%s2788_s8 + $0x1f8] sm:$0xff] %v1401_v23  ;;  %v1393_v25 = vadd.f32 %v1392_v61, %v1055_v24 }
 0x164   :  { %1465 = vst [vmem:[%s2788_s8 + $0x1e8] sm:$0xff] %v1393_v25 }

// kernel: resblock_bot_forward.3
= control target key start
LH: loop header
LB: loop body
LE: loop exit
PB: predicated region body
PF: predicated region fallthrough
CT: control target
= control target key end

     0   :  { %s2944_s3 = inlined_call_operand.vmem [shape: bf16[128,128], index: 3, kind: input, shape index: {}]   ;;  %s2945_s0 = inlined_call_operand.vmem [shape: f32[512,128], index: 0, kind: input, shape index: {}]   ;;  %s2946_s1 = inlined_call_operand.vmem [shape: f32[1,128], index: 1, kind: input, shape index: {}]   ;;  %s2947_s2 = inlined_call_operand.vmem [shape: f32[1,128], index: 2, kind: input, shape index: {}]   ;;  %s2948_s6 = inlined_call_operand.vmem [shape: f32[512,128], index: 6, kind: output, shape index: {2}]   ;;  %s2949_s4 = inlined_call_operand.vmem [shape: bf16[512,128], index: 4, kind: output, shape index: {0}]   ;;  %s2950_s5 = inlined_call_operand.vmem [shape: f32[1,8,128], index: 5, kind: output, shape index: {1}]  }
   0x1   :  { %v1741_v0 = vld [vmem:[%s2944_s3 + $0x38] sm:$0xff]   ;;  %v1742_v1 = vld [vmem:[%s2944_s3 + $0x30] sm:$0xff]   ;;  %v1743_v2 = vld [vmem:[%s2944_s3 + $0x28] sm:$0xff]  }
   0x2   :  { %1645 = vmatprep.subr.bf16.mxu0 %v1741_v0  ;;  %1725 = vmatprep.subr.bf16.mxu1 %v1741_v0  ;;  %v1796_v3 = vld [vmem:[%s2944_s3 + $0x20] sm:$0xff]   ;;  %v22_v5 = vld [vmem:[%s2945_s0 + $0x8] sm:$0xff]  ;;  %v23_v10 = vld [vmem:[%s2945_s0 + $0x10] sm:$0xff] }
   0x3   :  { %1646 = vmatpush3.bf16.msra.mxu0 %v1741_v0  ;;  %1733 = vmatpush3.bf16.msra.mxu1 %v1741_v0  ;;  %v21_v4 = vld [vmem:[%s2945_s0] sm:$0xff]  ;;  %v24_v11 = vld [vmem:[%s2945_s0 + $0x18] sm:$0xff]  ;;  %v26_v15 = vld [vmem:[%s2945_s0 + $0x28] sm:$0xff] }
   0x4   :  { %1647 = vmatprep.subr.bf16.mxu0 %v1742_v1  ;;  %1726 = vmatprep.subr.bf16.mxu1 %v1742_v1  ;;  %v1807_v6 = vld [vmem:[%s2946_s1] ss:$0 sm:$0xff]  ;;  %v27_v16 = vld [vmem:[%s2945_s0 + $0x30] sm:$0xff]  ;;  %v28_v21 = vld [vmem:[%s2945_s0 + $0x38] sm:$0xff] }
   0x5   :  { %v92_v7 = vmul.f32 %v1807_v6, %v21_v4  ;;  %v93_v8 = vmul.f32 %v1807_v6, %v22_v5  ;;  %v1814_v9 = vld [vmem:[%s2947_s2] ss:$0 sm:$0xff]  ;;  %v94_v12 = vmul.f32 %v1807_v6, %v23_v10  ;;  %v95_v13 = vmul.f32 %v1807_v6, %v24_v11  ;;  %v1844_v22 = vld [vmem:[%s2944_s3 + $0x18] sm:$0xff]   ;;  %v30_v32 = vld [vmem:[%s2945_s0 + $0x48] sm:$0xff] }
   0x6   :  { %v25_v14 = vld [vmem:[%s2945_s0 + $0x20] sm:$0xff]  ;;  %v97_v20 = vmul.f32 %v1807_v6, %v26_v15  ;;  %v98_v25 = vmul.f32 %v1807_v6, %v27_v16  ;;  %v99_v26 = vmul.f32 %v1807_v6, %v28_v21  ;;  %v31_v37 = vld [vmem:[%s2945_s0 + $0x50] sm:$0xff]  ;;  %v32_v38 = vld [vmem:[%s2945_s0 + $0x58] sm:$0xff]  ;;  %v101_v48 = vmul.f32 %v1807_v6, %v30_v32 }
   0x7   :  { %1648 = vmatpush3.bf16.msra.mxu0 %v1742_v1  ;;  %1734 = vmatpush3.bf16.msra.mxu1 %v1742_v1  ;;  %v163_v17 = vadd.f32 %v1814_v9, %v92_v7  ;;  %v164_v18 = vadd.f32 %v1814_v9, %v93_v8  ;;  %v96_v19 = vmul.f32 %v1807_v6, %v25_v14  ;;  %v29_v27 = vld [vmem:[%s2945_s0 + $0x40] sm:$0xff]  ;;  %v34_v44 = vld [vmem:[%s2945_s0 + $0x68] sm:$0xff]  ;;  %v1901_v45 = vld [vmem:[%s2944_s3 + $0x10] sm:$0xff]  }
   0x8   :  { %1649 = vmatprep.subr.bf16.mxu0 %v1743_v2  ;;  %1727 = vmatprep.subr.bf16.mxu1 %v1743_v2  ;;  %v1847_v23 = vadd.f32 %v1814_v9, %v94_v12  ;;  %v1850_v24 = vadd.f32 %v1814_v9, %v95_v13  ;;  %v1861_v31 = vadd.f32 %v1814_v9, %v97_v20  ;;  %v33_v43 = vld [vmem:[%s2945_s0 + $0x60] sm:$0xff]  ;;  %v35_v49 = vld [vmem:[%s2945_s0 + $0x70] sm:$0xff]  ;;  %v36_v53 = vld [vmem:[%s2945_s0 + $0x78] sm:$0xff] }
   0x9   :  { %v227_v28 = vmax.f32 %v163_v17, 0.0  ;;  %v228_v29 = vmax.f32 %v164_v18, 0.0  ;;  %v1858_v30 = vadd.f32 %v1814_v9, %v96_v19  ;;  %v1869_v35 = vadd.f32 %v1814_v9, %v98_v25  ;;  %v37_v57 = vld [vmem:[%s2945_s0 + $0x80] sm:$0xff]  ;;  %v1970_v62 = vld [vmem:[%s2944_s3 + $0x8] sm:$0xff]   ;;  %v39_v10 = vld [vmem:[%s2945_s0 + $0x90] sm:$0xff] }
   0xa   :  { %v229_v33 = vmax.f32 %v1847_v23, 0.0  ;;  %v230_v34 = vmax.f32 %v1850_v24, 0.0  ;;  %v1872_v36 = vadd.f32 %v1814_v9, %v99_v26  ;;  %v232_v41 = vmax.f32 %v1861_v31, 0.0  ;;  %v40_v11 = vld [vmem:[%s2945_s0 + $0x98] sm:$0xff]  ;;  %v41_v15 = vld [vmem:[%s2945_s0 + $0xa0] sm:$0xff]  ;;  %v42_v16 = vld [vmem:[%s2945_s0 + $0xa8] sm:$0xff] }
   0xb   :  { %1650 = vmatpush3.bf16.msra.mxu0 %v1743_v2  ;;  %1735 = vmatpush3.bf16.msra.mxu1 %v1743_v2  ;;  %291 = vst [vmem:[%s2948_s6] sm:$0xff] %v227_v28  ;;  %292 = vst [vmem:[%s2948_s6 + $0x8] sm:$0xff] %v228_v29  ;;  %v355_v39 = vpack.c.bf16 %v228_v29, %v227_v28  ;;  %v231_v40 = vmax.f32 %v1858_v30, 0.0  ;;  %v100_v42 = vmul.f32 %v1807_v6, %v29_v27  ;;  %v43_v20 = vld [vmem:[%s2945_s0 + $0xb0] sm:$0xff]  ;;  %v2041_v21 = vld [vmem:[%s2944_s3] sm:$0xff]  }
   0xc   :  { %1651 = vmatprep.subr.bf16.mxu0 %v1796_v3  ;;  %1728 = vmatprep.subr.bf16.mxu1 %v1796_v3  ;;  %293 = vst [vmem:[%s2948_s6 + $0x10] sm:$0xff] %v229_v33  ;;  %294 = vst [vmem:[%s2948_s6 + $0x18] sm:$0xff] %v230_v34  ;;  %v233_v46 = vmax.f32 %v1869_v35, 0.0  ;;  %v234_v47 = vmax.f32 %v1872_v36, 0.0  ;;  %v102_v51 = vmul.f32 %v1807_v6, %v31_v37  ;;  %v44_v27 = vld [vmem:[%s2945_s0 + $0xb8] sm:$0xff]  ;;  %v51_v24 = vld [vmem:[%s2945_s0 + $0xf0] sm:$0xff] }
   0xd   :  { %1661 = vmatprep.mubr.bf16.mxu0 %v355_v39  ;;  %295 = vst [vmem:[%s2948_s6 + $0x20] sm:$0xff] %v231_v40  ;;  %296 = vst [vmem:[%s2948_s6 + $0x28] sm:$0xff] %v232_v41  ;;  %v1930_v50 = vadd.f32 %v1814_v9, %v100_v42  ;;  %v103_v52 = vmul.f32 %v1807_v6, %v32_v38  ;;  %v1948_v54 = vadd.f32 %v1814_v9, %v101_v48  ;;  %v45_v38 = vld [vmem:[%s2945_s0 + $0xc0] sm:$0xff]  ;;  %v52_v31 = vld [vmem:[%s2945_s0 + $0xf8] sm:$0xff] }
   0xe   :  { %297 = vst [vmem:[%s2948_s6 + $0x30] sm:$0xff] %v233_v46  ;;  %298 = vst [vmem:[%s2948_s6 + $0x38] sm:$0xff] %v234_v47  ;;  %v104_v55 = vmul.f32 %v1807_v6, %v33_v43  ;;  %v105_v56 = vmul.f32 %v1807_v6, %v34_v44  ;;  %v1959_v59 = vadd.f32 %v1814_v9, %v102_v51  ;;  %v59_v36 = vld [vmem:[%s2945_s0 + $0x130] sm:$0xff] }
   0xf   :  { %1652 = vmatpush3.bf16.msra.mxu0 %v1796_v3  ;;  %1736 = vmatpush3.bf16.msra.mxu1 %v1796_v3  ;;  %v235_v58 = vmax.f32 %v1930_v50, 0.0  ;;  %v1962_v60 = vadd.f32 %v1814_v9, %v103_v52  ;;  %v106_v61 = vmul.f32 %v1807_v6, %v35_v49  ;;  %v236_v63 = vmax.f32 %v1948_v54, 0.0  ;;  %v38_v3 = vld [vmem:[%s2945_s0 + $0x88] sm:$0xff]  ;;  %v60_v54 = vld [vmem:[%s2945_s0 + $0x138] sm:$0xff] }
  0x10   :  { %1653 = vmatprep.subr.bf16.mxu0 %v1844_v22  ;;  %1729 = vmatprep.subr.bf16.mxu1 %v1844_v22  ;;  %v1974_v0 = vadd.f32 %v1814_v9, %v104_v55  ;;  %v1977_v1 = vadd.f32 %v1814_v9, %v105_v56  ;;  %v107_v2 = vmul.f32 %v1807_v6, %v36_v53  ;;  %v237_v4 = vmax.f32 %v1959_v59, 0.0 }
  0x11   :  { %299 = vst [vmem:[%s2948_s6 + $0x40] sm:$0xff] %v235_v58  ;;  %v238_v5 = vmax.f32 %v1962_v60, 0.0  ;;  %v1991_v7 = vadd.f32 %v1814_v9, %v106_v61  ;;  %v108_v8 = vmul.f32 %v1807_v6, %v37_v57  ;;  %300 = vst [vmem:[%s2948_s6 + $0x48] sm:$0xff] %v236_v63  ;;  %v109_v18 = vmul.f32 %v1807_v6, %v38_v3  ;;  %v47_v57 = vld [vmem:[%s2945_s0 + $0xd0] sm:$0xff]  ;;  %v48_v61 = vld [vmem:[%s2945_s0 + $0xd8] sm:$0xff] }
  0x12   :  { %v239_v12 = vmax.f32 %v1974_v0, 0.0  ;;  %v240_v13 = vmax.f32 %v1977_v1, 0.0  ;;  %v2008_v14 = vadd.f32 %v1814_v9, %v107_v2  ;;  %301 = vst [vmem:[%s2948_s6 + $0x50] sm:$0xff] %v237_v4  ;;  %v110_v25 = vmul.f32 %v1807_v6, %v39_v10  ;;  %v49_v10 = vld [vmem:[%s2945_s0 + $0xe0] sm:$0xff] }
  0x13   :  { %1654 = vmatpush3.bf16.msra.mxu0 %v1844_v22  ;;  %1737 = vmatpush3.bf16.msra.mxu1 %v1844_v22  ;;  %302 = vst [vmem:[%s2948_s6 + $0x58] sm:$0xff] %v238_v5  ;;  %v241_v17 = vmax.f32 %v1991_v7, 0.0  ;;  %v2031_v19 = vadd.f32 %v1814_v9, %v108_v8  ;;  %v111_v26 = vmul.f32 %v1807_v6, %v40_v11  ;;  %v50_v11 = vld [vmem:[%s2945_s0 + $0xe8] sm:$0xff]  ;;  %v76_v7 = vld [vmem:[%s2945_s0 + $0x1b8] sm:$0xff] }
  0x14   :  { %1655 = vmatprep.subr.bf16.mxu0 %v1901_v45  ;;  %1730 = vmatprep.subr.bf16.mxu1 %v1901_v45  ;;  %303 = vst [vmem:[%s2948_s6 + $0x60] sm:$0xff] %v239_v12  ;;  %304 = vst [vmem:[%s2948_s6 + $0x68] sm:$0xff] %v240_v13  ;;  %v242_v22 = vmax.f32 %v2008_v14, 0.0  ;;  %v2065_v28 = vadd.f32 %v1814_v9, %v109_v18  ;;  %v112_v32 = vmul.f32 %v1807_v6, %v41_v15 }
  0x15   :  { %305 = vst [vmem:[%s2948_s6 + $0x70] sm:$0xff] %v241_v17  ;;  %v243_v29 = vmax.f32 %v2031_v19, 0.0  ;;  %v113_v37 = vmul.f32 %v1807_v6, %v42_v16  ;;  %v2079_v39 = vadd.f32 %v1814_v9, %v110_v25  ;;  %v2082_v42 = vadd.f32 %v1814_v9, %v111_v26  ;;  %v53_v26 = vld [vmem:[%s2945_s0 + $0x100] sm:$0xff] }
  0x16   :  { %306 = vst [vmem:[%s2948_s6 + $0x78] sm:$0xff] %v242_v22  ;;  %v114_v43 = vmul.f32 %v1807_v6, %v43_v20  ;;  %v244_v44 = vmax.f32 %v2065_v28, 0.0  ;;  %v2094_v48 = vadd.f32 %v1814_v9, %v112_v32  ;;  %v115_v51 = vmul.f32 %v1807_v6, %v44_v27 }
  0x17   :  { %1656 = vmatpush3.bf16.msra.mxu0 %v1901_v45  ;;  %1738 = vmatpush3.bf16.msra.mxu1 %v1901_v45  ;;  %307 = vst [vmem:[%s2948_s6 + $0x80] sm:$0xff] %v243_v29  ;;  %v2097_v49 = vadd.f32 %v1814_v9, %v113_v37  ;;  %v46_v45 = vld [vmem:[%s2945_s0 + $0xc8] sm:$0xff]  ;;  %v245_v52 = vmax.f32 %v2079_v39, 0.0  ;;  %v246_v53 = vmax.f32 %v2082_v42, 0.0  ;;  %v116_v56 = vmul.f32 %v1807_v6, %v45_v38 }
  0x18   :  { %1657 = vmatprep.subr.bf16.mxu0 %v1970_v62  ;;  %1731 = vmatprep.subr.bf16.mxu1 %v1970_v62  ;;  %v2108_v55 = vadd.f32 %v1814_v9, %v114_v43  ;;  %308 = vst [vmem:[%s2948_s6 + $0x88] sm:$0xff] %v244_v44  ;;  %v247_v2 = vmax.f32 %v2094_v48, 0.0  ;;  %v2125_v8 = vadd.f32 %v1814_v9, %v115_v51 }
  0x19   :  { %v248_v3 = vmax.f32 %v2097_v49, 0.0  ;;  %v356_v15 = vpack.c.bf16 %v230_v34, %v229_v33  ;;  %309 = vst [vmem:[%s2948_s6 + $0x90] sm:$0xff] %v245_v52  ;;  %310 = vst [vmem:[%s2948_s6 + $0x98] sm:$0xff] %v246_v53  ;;  %v117_v18 = vmul.f32 %v1807_v6, %v46_v45  ;;  %v2150_v23 = vadd.f32 %v1814_v9, %v116_v56  ;;  %v54_v56 = vld [vmem:[%s2945_s0 + $0x108] sm:$0xff] }
  0x1a   :  { %v249_v16 = vmax.f32 %v2108_v55, 0.0  ;;  %v357_v33 = vpack.c.bf16 %v232_v41, %v231_v40  ;;  %311 = vst [vmem:[%s2948_s6 + $0xa0] sm:$0xff] %v247_v2  ;;  %v250_v34 = vmax.f32 %v2125_v8, 0.0  ;;  %v119_v30 = vmul.f32 %v1807_v6, %v48_v61 }
  0x1b   :  { %1658 = vmatpush3.bf16.msra.mxu0 %v1970_v62  ;;  %1739 = vmatpush3.bf16.msra.mxu1 %v1970_v62  ;;  %312 = vst [vmem:[%s2948_s6 + $0xa8] sm:$0xff] %v248_v3  ;;  %v118_v62 = vmul.f32 %v1807_v6, %v47_v57  ;;  %v2184_v40 = vadd.f32 %v1814_v9, %v117_v18  ;;  %v251_v41 = vmax.f32 %v2150_v23, 0.0 }
  0x1c   :  { %1659 = vmatprep.subr.bf16.mxu0 %v2041_v21  ;;  %1732 = vmatprep.subr.bf16.mxu1 %v2041_v21  ;;  %313 = vst [vmem:[%s2948_s6 + $0xb0] sm:$0xff] %v249_v16  ;;  %v120_v20 = vmul.f32 %v1807_v6, %v49_v10  ;;  %v121_v25 = vmul.f32 %v1807_v6, %v50_v11  ;;  %314 = vst [vmem:[%s2948_s6 + $0xb8] sm:$0xff] %v250_v34  ;;  %v55_v11 = vld [vmem:[%s2945_s0 + $0x110] sm:$0xff] }
  0x1d   :  { %v2198_v27 = vadd.f32 %v1814_v9, %v118_v62  ;;  %v2201_v32 = vadd.f32 %v1814_v9, %v119_v30  ;;  %v122_v37 = vmul.f32 %v1807_v6, %v51_v24  ;;  %v252_v38 = vmax.f32 %v2184_v40, 0.0  ;;  %315 = vst [vmem:[%s2948_s6 + $0xc0] sm:$0xff] %v251_v41  ;;  %v57_v62 = vld [vmem:[%s2945_s0 + $0x120] sm:$0xff]  ;;  %v58_v30 = vld [vmem:[%s2945_s0 + $0x128] sm:$0xff] }
  0x1e   :  { %v2212_v43 = vadd.f32 %v1814_v9, %v120_v20  ;;  %v2215_v51 = vadd.f32 %v1814_v9, %v121_v25  ;;  %v123_v45 = vmul.f32 %v1807_v6, %v52_v31  ;;  %v358_v31 = vpack.c.bf16 %v234_v47, %v233_v46 }
  0x1f   :  { %1660 = vmatpush3.bf16.msra.mxu0 %v2041_v21  ;;  %1740 = vmatpush3.bf16.msra.mxu1 %v2041_v21  ;;  %v253_v57 = vmax.f32 %v2198_v27, 0.0  ;;  %v254_v61 = vmax.f32 %v2201_v32, 0.0  ;;  %v2224_v10 = vadd.f32 %v1814_v9, %v122_v37  ;;  %v124_v21 = vmul.f32 %v1807_v6, %v53_v26  ;;  %316 = vst [vmem:[%s2948_s6 + $0xc8] sm:$0xff] %v252_v38 }
  0x20   :  { %v255_v18 = vmax.f32 %v2212_v43, 0.0  ;;  %v256_v24 = vmax.f32 %v2215_v51, 0.0  ;;  %v125_v25 = vmul.f32 %v1807_v6, %v54_v56  ;;  %v359_v46 = vpack.c.bf16 %v236_v63, %v235_v58  ;;  %v61_v56 = vld [vmem:[%s2945_s0 + $0x140] sm:$0xff] }
  0x21   :  { %317 = vst [vmem:[%s2948_s6 + $0xd0] sm:$0xff] %v253_v57  ;;  %318 = vst [vmem:[%s2948_s6 + $0xd8] sm:$0xff] %v254_v61  ;;  %v257_v20 = vmax.f32 %v2224_v10, 0.0  ;;  %v195_v35 = vadd.f32 %v1814_v9, %v124_v21  ;;  %v126_v26 = vmul.f32 %v1807_v6, %v55_v11  ;;  %v128_v37 = vmul.f32 %v1807_v6, %v57_v62 }
  0x22   :  { %1662 = vmatmul.mubr.bf16.vlgmr.msra.gmra.mxu0 %v356_v15  ;;  %v56_v15 = vld [vmem:[%s2945_s0 + $0x118] sm:$0xff]  ;;  %319 = vst [vmem:[%s2948_s6 + $0xe0] sm:$0xff] %v255_v18  ;;  %320 = vst [vmem:[%s2948_s6 + $0xe8] sm:$0xff] %v256_v24  ;;  %v196_v58 = vadd.f32 %v1814_v9, %v125_v25  ;;  %v2304_v21 = vpack.c.bf16 %v238_v5, %v237_v4  ;;  %v130_v62 = vmul.f32 %v1807_v6, %v59_v36  ;;  %v62_v5 = vld [vmem:[%s2945_s0 + $0x148] sm:$0xff] }
  0x23   :  { %1665 = vmatprep.mubr.bf16.mxu0 %v357_v33  ;;  %v2241_v33 = vadd.f32 %v1814_v9, %v123_v45  ;;  %v127_v50 = vmul.f32 %v1807_v6, %v56_v15  ;;  %321 = vst [vmem:[%s2948_s6 + $0xf0] sm:$0xff] %v257_v20  ;;  %v259_v63 = vmax.f32 %v195_v35, 0.0  ;;  %v129_v45 = vmul.f32 %v1807_v6, %v58_v30 }
  0x24   :  { %v197_v11 = vadd.f32 %v1814_v9, %v126_v26  ;;  %v260_v30 = vmax.f32 %v196_v58, 0.0  ;;  %v199_v59 = vadd.f32 %v1814_v9, %v128_v37  ;;  %v131_v4 = vmul.f32 %v1807_v6, %v60_v54  ;;  %v64_v58 = vld [vmem:[%s2945_s0 + $0x158] sm:$0xff] }
  0x25   :  { %v2951_v47 = vmax.f32 %v2241_v33, 0.0  ;;  %v198_v15 = vadd.f32 %v1814_v9, %v127_v50  ;;  %323 = vst [vmem:[%s2948_s6 + $0x100] sm:$0xff] %v259_v63  ;;  %v200_v60 = vadd.f32 %v1814_v9, %v129_v45  ;;  %v201_v36 = vadd.f32 %v1814_v9, %v130_v62  ;;  %v63_v50 = vld [vmem:[%s2945_s0 + $0x150] sm:$0xff] }
  0x26   :  { %v261_v25 = vmax.f32 %v197_v11, 0.0  ;;  %v132_v26 = vmul.f32 %v1807_v6, %v61_v56  ;;  %324 = vst [vmem:[%s2948_s6 + $0x108] sm:$0xff] %v260_v30  ;;  %v263_v54 = vmax.f32 %v199_v59, 0.0  ;;  %v202_v45 = vadd.f32 %v1814_v9, %v131_v4  ;;  %v65_v56 = vld [vmem:[%s2945_s0 + $0x160] sm:$0xff]  ;;  %v66_v11 = vld [vmem:[%s2945_s0 + $0x168] sm:$0xff] }
  0x27   :  { %322 = vst [vmem:[%s2948_s6 + $0xf8] sm:$0xff] %v2951_v47  ;;  %v262_v35 = vmax.f32 %v198_v15, 0.0  ;;  %v264_v37 = vmax.f32 %v200_v60, 0.0  ;;  %v133_v15 = vmul.f32 %v1807_v6, %v62_v5  ;;  %v134_v4 = vmul.f32 %v1807_v6, %v63_v50  ;;  %v69_v50 = vld [vmem:[%s2945_s0 + $0x180] sm:$0xff] }
  0x28   :  { %325 = vst [vmem:[%s2948_s6 + $0x110] sm:$0xff] %v261_v25  ;;  %v203_v62 = vadd.f32 %v1814_v9, %v132_v26  ;;  %327 = vst [vmem:[%s2948_s6 + $0x120] sm:$0xff] %v263_v54  ;;  %v266_v60 = vmax.f32 %v202_v45, 0.0  ;;  %v135_v5 = vmul.f32 %v1807_v6, %v64_v58  ;;  %v136_v26 = vmul.f32 %v1807_v6, %v65_v56 }
  0x29   :  { %326 = vst [vmem:[%s2948_s6 + $0x118] sm:$0xff] %v262_v35  ;;  %328 = vst [vmem:[%s2948_s6 + $0x128] sm:$0xff] %v264_v37  ;;  %v373_v59 = vpack.c.bf16 %v264_v37, %v263_v54  ;;  %v361_v58 = vpack.c.bf16 %v240_v13, %v239_v12  ;;  %v2380_v54 = vadd.f32 %v1814_v9, %v134_v4  ;;  %v70_v13 = vld [vmem:[%s2945_s0 + $0x188] sm:$0xff]  ;;  %v2952_v40 = vmax.f32 %v2241_v33, 0.0 }
  0x2a   :  { %1666 = vmatmul.mubr.bf16.gmra.mxu0 %v358_v31  ;;  %v371_v31 = vpack.c.bf16 %v260_v30, %v259_v63  ;;  %v265_v63 = vmax.f32 %v201_v36, 0.0  ;;  %v67_v30 = vld [vmem:[%s2945_s0 + $0x170] sm:$0xff]  ;;  %v267_v36 = vmax.f32 %v203_v62, 0.0  ;;  %330 = vst [vmem:[%s2948_s6 + $0x138] sm:$0xff] %v266_v60  ;;  %v2383_v37 = vadd.f32 %v1814_v9, %v135_v5 }
  0x2b   :  { %1669 = vmatprep.mubr.bf16.mxu0 %v359_v46  ;;  %v372_v46 = vpack.c.bf16 %v262_v35, %v261_v25  ;;  %v68_v25 = vld [vmem:[%s2945_s0 + $0x178] sm:$0xff]  ;;  %v204_v35 = vadd.f32 %v1814_v9, %v133_v15  ;;  %v138_v45 = vmul.f32 %v1807_v6, %v67_v30  ;;  %v2390_v0 = vadd.f32 %v1814_v9, %v136_v26  ;;  %v71_v30 = vld [vmem:[%s2945_s0 + $0x190] sm:$0xff]  ;;  %v73_v26 = vld [vmem:[%s2945_s0 + $0x1a0] sm:$0xff] }
  0x2c   :  { %1693 = vmatprep.mubr.bf16.mxu1 %v371_v31  ;;  %329 = vst [vmem:[%s2948_s6 + $0x130] sm:$0xff] %v265_v63  ;;  %v137_v31 = vmul.f32 %v1807_v6, %v66_v11  ;;  %331 = vst [vmem:[%s2948_s6 + $0x140] sm:$0xff] %v267_v36  ;;  %v139_v12 = vmul.f32 %v1807_v6, %v68_v25  ;;  %v269_v11 = vmax.f32 %v2380_v54, 0.0 }
  0x2d   :  { %1694 = vmatmul.mubr.bf16.vlgmr.msra.gmra.mxu1 %v372_v46  ;;  %v268_v56 = vmax.f32 %v204_v35, 0.0  ;;  %v270_v46 = vmax.f32 %v2383_v37, 0.0  ;;  %v2402_v15 = vadd.f32 %v1814_v9, %v138_v45  ;;  %v140_v62 = vmul.f32 %v1807_v6, %v69_v50 }
  0x2e   :  { %1697 = vmatprep.mubr.bf16.mxu1 %v373_v59  ;;  %v2393_v1 = vadd.f32 %v1814_v9, %v137_v31  ;;  %v72_v59 = vld [vmem:[%s2945_s0 + $0x198] sm:$0xff]  ;;  %v374_v4 = vpack.c.bf16 %v266_v60, %v265_v63  ;;  %v271_v5 = vmax.f32 %v2390_v0, 0.0  ;;  %v2418_v35 = vadd.f32 %v1814_v9, %v139_v12  ;;  %333 = vst [vmem:[%s2948_s6 + $0x150] sm:$0xff] %v269_v11  ;;  %v77_v0 = vld [vmem:[%s2945_s0 + $0x1c0] sm:$0xff] }
  0x2f   :  { %332 = vst [vmem:[%s2948_s6 + $0x148] sm:$0xff] %v268_v56  ;;  %v375_v63 = vpack.c.bf16 %v268_v56, %v267_v36  ;;  %334 = vst [vmem:[%s2948_s6 + $0x158] sm:$0xff] %v270_v46  ;;  %v273_v60 = vmax.f32 %v2402_v15, 0.0  ;;  %v141_v31 = vmul.f32 %v1807_v6, %v70_v13  ;;  %v2435_v50 = vadd.f32 %v1814_v9, %v140_v62 }
  0x30   :  { %v272_v25 = vmax.f32 %v2393_v1, 0.0  ;;  %v362_v36 = vpack.c.bf16 %v242_v22, %v241_v17  ;;  %335 = vst [vmem:[%s2948_s6 + $0x160] sm:$0xff] %v271_v5  ;;  %v274_v54 = vmax.f32 %v2418_v35, 0.0  ;;  %v142_v37 = vmul.f32 %v1807_v6, %v71_v30  ;;  %v78_v30 = vld [vmem:[%s2945_s0 + $0x1c8] sm:$0xff] }
  0x31   :  { %v143_v45 = vmul.f32 %v1807_v6, %v72_v59  ;;  %337 = vst [vmem:[%s2948_s6 + $0x170] sm:$0xff] %v273_v60  ;;  %v2462_v14 = vadd.f32 %v1814_v9, %v141_v31  ;;  %v275_v17 = vmax.f32 %v2435_v50, 0.0  ;;  %v144_v22 = vmul.f32 %v1807_v6, %v73_v26  ;;  %v80_v31 = vld [vmem:[%s2945_s0 + $0x1d8] sm:$0xff] }
  0x32   :  { %1670 = vmatmul.mubr.bf16.gmra.mxu0 %v2304_v21  ;;  %v74_v21 = vld [vmem:[%s2945_s0 + $0x1a8] sm:$0xff]  ;;  %336 = vst [vmem:[%s2948_s6 + $0x168] sm:$0xff] %v272_v25  ;;  %v363_v1 = vpack.c.bf16 %v244_v44, %v243_v29  ;;  %338 = vst [vmem:[%s2948_s6 + $0x178] sm:$0xff] %v274_v54  ;;  %v2480_v12 = vadd.f32 %v1814_v9, %v142_v37  ;;  %v147_v44 = vmul.f32 %v1807_v6, %v76_v7  ;;  %v81_v7 = vld [vmem:[%s2945_s0 + $0x1e0] sm:$0xff] }
  0x33   :  { %1673 = vmatprep.mubr.bf16.mxu0 %v361_v58  ;;  %v75_v58 = vld [vmem:[%s2945_s0 + $0x1b0] sm:$0xff]  ;;  %v145_v56 = vmul.f32 %v1807_v6, %v74_v21  ;;  %v2483_v13 = vadd.f32 %v1814_v9, %v143_v45  ;;  %v276_v19 = vmax.f32 %v2462_v14, 0.0  ;;  %339 = vst [vmem:[%s2948_s6 + $0x180] sm:$0xff] %v275_v17  ;;  %v2493_v28 = vadd.f32 %v1814_v9, %v144_v22  ;;  %v82_v22 = vld [vmem:[%s2945_s0 + $0x1e8] sm:$0xff] }
  0x34   :  { %v146_v62 = vmul.f32 %v1807_v6, %v75_v58  ;;  %v277_v59 = vmax.f32 %v2480_v12, 0.0  ;;  %v148_v21 = vmul.f32 %v1807_v6, %v77_v0  ;;  %v2522_v45 = vadd.f32 %v1814_v9, %v147_v44 }
  0x35   :  { %1698 = vmatmul.mubr.bf16.gmra.mxu1 %v374_v4  ;;  %v2496_v29 = vadd.f32 %v1814_v9, %v145_v56  ;;  %v278_v4 = vmax.f32 %v2483_v13, 0.0  ;;  %340 = vst [vmem:[%s2948_s6 + $0x188] sm:$0xff] %v276_v19  ;;  %v279_v58 = vmax.f32 %v2493_v28, 0.0  ;;  %v376_v56 = vpack.c.bf16 %v270_v46, %v269_v11  ;;  %v83_v11 = vld [vmem:[%s2945_s0 + $0x1f0] sm:$0xff] }
  0x36   :  { %1701 = vmatprep.mubr.bf16.mxu1 %v375_v63  ;;  %v2505_v26 = vadd.f32 %v1814_v9, %v146_v62  ;;  %v79_v63 = vld [vmem:[%s2945_s0 + $0x1d0] sm:$0xff]  ;;  %341 = vst [vmem:[%s2948_s6 + $0x190] sm:$0xff] %v277_v59  ;;  %v149_v62 = vmul.f32 %v1807_v6, %v78_v30  ;;  %v2543_v44 = vadd.f32 %v1814_v9, %v148_v21 }
  0x37   :  { %v280_v37 = vmax.f32 %v2496_v29, 0.0  ;;  %342 = vst [vmem:[%s2948_s6 + $0x198] sm:$0xff] %v278_v4  ;;  %v377_v46 = vpack.c.bf16 %v272_v25, %v271_v5  ;;  %343 = vst [vmem:[%s2948_s6 + $0x1a0] sm:$0xff] %v279_v58  ;;  %v150_v30 = vmul.f32 %v1807_v6, %v79_v63  ;;  %v84_v5 = vld [vmem:[%s2945_s0 + $0x1f8] sm:$0xff]  ;;  %v152_v21 = vmul.f32 %v1807_v6, %v81_v7 }
  0x38   :  { %v281_v0 = vmax.f32 %v2505_v26, 0.0  ;;  %v151_v26 = vmul.f32 %v1807_v6, %v80_v31  ;;  %v220_v25 = vadd.f32 %v1814_v9, %v149_v62  ;;  %v364_v63 = vpack.c.bf16 %v246_v53, %v245_v52 }
  0x39   :  { %344 = vst [vmem:[%s2948_s6 + $0x1a8] sm:$0xff] %v280_v37  ;;  %v221_v31 = vadd.f32 %v1814_v9, %v150_v30  ;;  %v154_v62 = vmul.f32 %v1807_v6, %v83_v11  ;;  %v223_v39 = vadd.f32 %v1814_v9, %v152_v21  ;;  %v155_v52 = vmul.f32 %v1807_v6, %v84_v5 }
  0x3a   :  { %1674 = vmatmul.mubr.bf16.gmra.mxu0 %v362_v36  ;;  %v282_v36 = vmax.f32 %v2522_v45, 0.0  ;;  %345 = vst [vmem:[%s2948_s6 + $0x1b0] sm:$0xff] %v281_v0  ;;  %v153_v45 = vmul.f32 %v1807_v6, %v82_v22  ;;  %v222_v47 = vadd.f32 %v1814_v9, %v151_v26  ;;  %v365_v53 = vpack.c.bf16 %v248_v3, %v247_v2 }
  0x3b   :  { %1677 = vmatprep.mubr.bf16.mxu0 %v363_v1  ;;  %v283_v1 = vmax.f32 %v2543_v44, 0.0  ;;  %v284_v44 = vmax.f32 %v220_v25, 0.0  ;;  %v285_v7 = vmax.f32 %v221_v31, 0.0  ;;  %v287_v11 = vmax.f32 %v223_v39, 0.0 }
  0x3c   :  { %346 = vst [vmem:[%s2948_s6 + $0x1b8] sm:$0xff] %v282_v36  ;;  %v224_v42 = vadd.f32 %v1814_v9, %v153_v45  ;;  %v286_v22 = vmax.f32 %v222_v47, 0.0  ;;  %v226_v26 = vadd.f32 %v1814_v9, %v155_v52  ;;  %v378_v48 = vpack.c.bf16 %v274_v54, %v273_v60 }
  0x3d   :  { %1702 = vmatmul.mubr.bf16.gmra.mxu1 %v376_v56  ;;  %347 = vst [vmem:[%s2948_s6 + $0x1c0] sm:$0xff] %v283_v1  ;;  %v225_v56 = vadd.f32 %v1814_v9, %v154_v62  ;;  %348 = vst [vmem:[%s2948_s6 + $0x1c8] sm:$0xff] %v284_v44  ;;  %v379_v49 = vpack.c.bf16 %v276_v19, %v275_v17  ;;  %v366_v2 = vpack.c.bf16 %v250_v34, %v249_v16 }
  0x3e   :  { %1705 = vmatprep.mubr.bf16.mxu1 %v377_v46  ;;  %v288_v30 = vmax.f32 %v224_v42, 0.0  ;;  %349 = vst [vmem:[%s2948_s6 + $0x1d0] sm:$0xff] %v285_v7  ;;  %350 = vst [vmem:[%s2948_s6 + $0x1d8] sm:$0xff] %v286_v22  ;;  %v290_v9 = vmax.f32 %v226_v26, 0.0  ;;  %v367_v3 = vpack.c.bf16 %v252_v38, %v251_v41  ;;  %v380_v47 = vpack.c.bf16 %v278_v4, %v277_v59 }
  0x3f   :  { %v289_v6 = vmax.f32 %v225_v56, 0.0  ;;  %351 = vst [vmem:[%s2948_s6 + $0x1e0] sm:$0xff] %v287_v11  ;;  %v381_v55 = vpack.c.bf16 %v280_v37, %v279_v58  ;;  %v368_v8 = vpack.c.bf16 %v254_v61, %v253_v57  ;;  %v369_v16 = vpack.c.bf16 %v256_v24, %v255_v18 }
  0x40   :  { %352 = vst [vmem:[%s2948_s6 + $0x1e8] sm:$0xff] %v288_v30  ;;  %354 = vst [vmem:[%s2948_s6 + $0x1f8] sm:$0xff] %v290_v9  ;;  %v382_v23 = vpack.c.bf16 %v282_v36, %v281_v0  ;;  %v383_v34 = vpack.c.bf16 %v284_v44, %v283_v1  ;;  %v370_v41 = vpack.c.bf16 %v2952_v40, %v257_v20 }
  0x41   :  { %353 = vst [vmem:[%s2948_s6 + $0x1f0] sm:$0xff] %v289_v6  ;;  %v384_v27 = vpack.c.bf16 %v286_v22, %v285_v7  ;;  %v385_v32 = vpack.c.bf16 %v288_v30, %v287_v11  ;;  %v386_v38 = vpack.c.bf16 %v290_v9, %v289_v6 }
  0x42   :  { %1678 = vmatmul.mubr.bf16.gmra.mxu0 %v364_v63 }
  0x43   :  { %1681 = vmatprep.mubr.bf16.mxu0 %v365_v53 }
  0x45   :  { %1706 = vmatmul.mubr.bf16.gmra.mxu1 %v378_v48 }
  0x46   :  { %1709 = vmatprep.mubr.bf16.mxu1 %v379_v49 }
  0x4a   :  { %1682 = vmatmul.mubr.bf16.gmra.mxu0 %v366_v2 }
  0x4b   :  { %1685 = vmatprep.mubr.bf16.mxu0 %v367_v3 }
  0x4d   :  { %1710 = vmatmul.mubr.bf16.gmra.mxu1 %v380_v47 }
  0x4e   :  { %1713 = vmatprep.mubr.bf16.mxu1 %v381_v55 }
  0x52   :  { %1686 = vmatmul.mubr.bf16.gmra.mxu0 %v368_v8 }
  0x53   :  { %1689 = vmatprep.mubr.bf16.mxu0 %v369_v16 }
  0x55   :  { %1714 = vmatmul.mubr.bf16.gmra.mxu1 %v382_v23 }
  0x56   :  { %1717 = vmatprep.mubr.bf16.mxu1 %v383_v34 }
  0x5a   :  { %1690 = vmatmul.mubr.bf16.gmra.mxu0 %v370_v41 }
  0x5d   :  { %1718 = vmatmul.mubr.bf16.gmra.mxu1 %v384_v27 }
  0x5e   :  { %1721 = vmatprep.mubr.bf16.mxu1 %v385_v32 }
  0x65   :  { %1722 = vmatmul.mubr.bf16.gmra.mxu1 %v386_v38 }
  0xe2   :  { %v1663_v43 = vpop.f32.mrf.mxu0 }
  0xe3   :  { %v1132_v35 = vmul.f32 %v1663_v43, %v1663_v43 }
  0xe4   :  { %v485_v51 = vpop.f32.mrf.mxu0 }
  0xe5   :  { %v1130_v24 = vmul.f32 %v485_v51, %v485_v51 }
  0xe6   :  { %v1664_v57 = vpop.f32.mrf.mxu0 }
  0xe7   :  { %v1422_v61 = vpack.c.bf16 %v1664_v57, %v1663_v43  ;;  %v1133_v14 = vmul.f32 %v1664_v57, %v1664_v57 }
  0xe8   :  { %v488_v18 = vpop.f32.mrf.mxu0 }
  0xe9   :  { %1574 = vst [vmem:[%s2949_s4 + $0x8] sm:$0xff] %v1422_v61   ;;  %v1417_v10 = vpack.c.bf16 %v488_v18, %v485_v51  ;;  %v1060_v33 = vadd.f32 %v488_v18, %v485_v51  ;;  %v1131_v20 = vmul.f32 %v488_v18, %v488_v18 }
  0xea   :  { %v1667_v15 = vpop.f32.mrf.mxu0 }
  0xeb   :  { %1418 = vst [vmem:[%s2949_s4] sm:$0xff] %v1417_v10   ;;  %v1061_v60 = vadd.f32 %v1663_v43, %v1060_v33  ;;  %v1194_v50 = vadd.f32 %v1131_v20, %v1130_v24  ;;  %v1136_v21 = vmul.f32 %v1667_v15, %v1667_v15 }
  0xec   :  { %v501_v54 = vpop.f32.mrf.mxu0 }
  0xed   :  { %v1195_v17 = vadd.f32 %v1194_v50, %v1132_v35  ;;  %v1062_v12 = vadd.f32 %v1664_v57, %v1061_v60  ;;  %v2656_v19 = vpop.f32.mrf.mxu1  ;;  %v1134_v29 = vmul.f32 %v501_v54, %v501_v54 }
  0xee   :  { %v1668_v13 = vpop.f32.mrf.mxu0 }
  0xef   :  { %v1063_v28 = vadd.f32 %v1062_v12, %v501_v54  ;;  %v1196_v59 = vadd.f32 %v1195_v17, %v1133_v14  ;;  %v1432_v4 = vpack.c.bf16 %v1668_v13, %v1667_v15  ;;  %v2658_v37 = vpop.f32.mrf.mxu1  ;;  %v1137_v39 = vmul.f32 %v1668_v13, %v1668_v13 }
  0xf0   :  { %v504_v58 = vpop.f32.mrf.mxu0 }
  0xf1   :  { %v1197_v0 = vadd.f32 %v1196_v59, %v1134_v29  ;;  %1576 = vst [vmem:[%s2949_s4 + $0x18] sm:$0xff] %v1432_v4   ;;  %v1427_v46 = vpack.c.bf16 %v504_v58, %v501_v54  ;;  %v1064_v36 = vadd.f32 %v1063_v28, %v504_v58  ;;  %v1135_v5 = vmul.f32 %v504_v58, %v504_v58  ;;  %v2663_v1 = vpop.f32.mrf.mxu1 }
  0xf2   :  { %v1671_v25 = vpop.f32.mrf.mxu0  ;;  %v1502_v31 = vpack.c.bf16 %v2663_v1, %v2656_v19 }
  0xf3   :  { %1575 = vst [vmem:[%s2949_s4 + $0x10] sm:$0xff] %v1427_v46   ;;  %v1065_v45 = vadd.f32 %v1667_v15, %v1064_v36  ;;  %v1198_v63 = vadd.f32 %v1197_v0, %v1135_v5  ;;  %v2670_v44 = vpop.f32.mrf.mxu1  ;;  %v1140_v8 = vmul.f32 %v1671_v25, %v1671_v25 }
  0xf4   :  { %v517_v62 = vpop.f32.mrf.mxu0  ;;  %1590 = vst [vmem:[%s2949_s4 + $0x88] sm:$0xff] %v1502_v31   ;;  %v1497_v53 = vpack.c.bf16 %v2670_v44, %v2658_v37 }
  0xf5   :  { %v1199_v42 = vadd.f32 %v1198_v63, %v1136_v21  ;;  %v1066_v52 = vadd.f32 %v1668_v13, %v1065_v45  ;;  %v2677_v22 = vpop.f32.mrf.mxu1  ;;  %v1138_v11 = vmul.f32 %v517_v62, %v517_v62 }
  0xf6   :  { %v1672_v7 = vpop.f32.mrf.mxu0  ;;  %1589 = vst [vmem:[%s2949_s4 + $0x80] sm:$0xff] %v1497_v53  }
  0xf7   :  { %v1067_v56 = vadd.f32 %v1066_v52, %v517_v62  ;;  %v1200_v30 = vadd.f32 %v1199_v42, %v1137_v39  ;;  %v1442_v26 = vpack.c.bf16 %v1672_v7, %v1671_v25  ;;  %v2682_v48 = vpop.f32.mrf.mxu1  ;;  %v1141_v27 = vmul.f32 %v1672_v7, %v1672_v7 }
  0xf8   :  { %v520_v6 = vpop.f32.mrf.mxu0 }
  0xf9   :  { %v1201_v9 = vadd.f32 %v1200_v30, %v1138_v11  ;;  %1578 = vst [vmem:[%s2949_s4 + $0x28] sm:$0xff] %v1442_v26   ;;  %v1437_v49 = vpack.c.bf16 %v520_v6, %v517_v62  ;;  %v1068_v2 = vadd.f32 %v1067_v56, %v520_v6  ;;  %v1139_v3 = vmul.f32 %v520_v6, %v520_v6  ;;  %v2687_v55 = vpop.f32.mrf.mxu1 }
  0xfa   :  { %v1675_v47 = vpop.f32.mrf.mxu0  ;;  %v1512_v34 = vpack.c.bf16 %v2687_v55, %v2677_v22 }
  0xfb   :  { %1577 = vst [vmem:[%s2949_s4 + $0x20] sm:$0xff] %v1437_v49   ;;  %v1069_v16 = vadd.f32 %v1671_v25, %v1068_v2  ;;  %v1202_v23 = vadd.f32 %v1201_v9, %v1139_v3  ;;  %v2694_v41 = vpop.f32.mrf.mxu1  ;;  %v1144_v17 = vmul.f32 %v1675_v47, %v1675_v47 }
  0xfc   :  { %v533_v40 = vpop.f32.mrf.mxu0  ;;  %1592 = vst [vmem:[%s2949_s4 + $0x98] sm:$0xff] %v1512_v34   ;;  %v1507_v43 = vpack.c.bf16 %v2694_v41, %v2682_v48 }
  0xfd   :  { %v1203_v32 = vadd.f32 %v1202_v23, %v1140_v8  ;;  %v1070_v38 = vadd.f32 %v1672_v7, %v1069_v16  ;;  %v2701_v57 = vpop.f32.mrf.mxu1  ;;  %v1142_v18 = vmul.f32 %v533_v40, %v533_v40 }
  0xfe   :  { %v1676_v51 = vpop.f32.mrf.mxu0  ;;  %1591 = vst [vmem:[%s2949_s4 + $0x90] sm:$0xff] %v1507_v43  }
  0xff   :  { %v1071_v61 = vadd.f32 %v1070_v38, %v533_v40  ;;  %v1204_v24 = vadd.f32 %v1203_v32, %v1141_v27  ;;  %v1452_v10 = vpack.c.bf16 %v1676_v51, %v1675_v47  ;;  %v2706_v20 = vpop.f32.mrf.mxu1  ;;  %v1145_v4 = vmul.f32 %v1676_v51, %v1676_v51 }
 0x100   :  { %v536_v33 = vpop.f32.mrf.mxu0 }
 0x101   :  { %v1205_v15 = vadd.f32 %v1204_v24, %v1142_v18  ;;  %1580 = vst [vmem:[%s2949_s4 + $0x38] sm:$0xff] %v1452_v10   ;;  %v1447_v35 = vpack.c.bf16 %v536_v33, %v533_v40  ;;  %v1072_v60 = vadd.f32 %v1071_v61, %v536_v33  ;;  %v1143_v50 = vmul.f32 %v536_v33, %v536_v33  ;;  %v2711_v14 = vpop.f32.mrf.mxu1 }
 0x102   :  { %v1679_v54 = vpop.f32.mrf.mxu0  ;;  %v1522_v28 = vpack.c.bf16 %v2711_v14, %v2701_v57 }
 0x103   :  { %1579 = vst [vmem:[%s2949_s4 + $0x30] sm:$0xff] %v1447_v35   ;;  %v1073_v12 = vadd.f32 %v1675_v47, %v1072_v60  ;;  %v1206_v13 = vadd.f32 %v1205_v15, %v1143_v50  ;;  %v2718_v59 = vpop.f32.mrf.mxu1  ;;  %v1148_v11 = vmul.f32 %v1679_v54, %v1679_v54 }
 0x104   :  { %v549_v29 = vpop.f32.mrf.mxu0  ;;  %1594 = vst [vmem:[%s2949_s4 + $0xa8] sm:$0xff] %v1522_v28   ;;  %v1517_v46 = vpack.c.bf16 %v2718_v59, %v2706_v20 }
 0x105   :  { %v1207_v58 = vadd.f32 %v1206_v13, %v1144_v17  ;;  %v1074_v0 = vadd.f32 %v1676_v51, %v1073_v12  ;;  %v2725_v5 = vpop.f32.mrf.mxu1  ;;  %v1146_v21 = vmul.f32 %v549_v29, %v549_v29 }
 0x106   :  { %v1680_v36 = vpop.f32.mrf.mxu0  ;;  %1593 = vst [vmem:[%s2949_s4 + $0xa0] sm:$0xff] %v1517_v46  }
 0x107   :  { %v1075_v25 = vadd.f32 %v1074_v0, %v549_v29  ;;  %v1208_v45 = vadd.f32 %v1207_v58, %v1145_v4  ;;  %v1462_v63 = vpack.c.bf16 %v1680_v36, %v1679_v54  ;;  %v2730_v62 = vpop.f32.mrf.mxu1  ;;  %v1149_v2 = vmul.f32 %v1680_v36, %v1680_v36 }
 0x108   :  { %v552_v31 = vpop.f32.mrf.mxu0 }
 0x109   :  { %v1209_v39 = vadd.f32 %v1208_v45, %v1146_v21  ;;  %1582 = vst [vmem:[%s2949_s4 + $0x48] sm:$0xff] %v1462_v63   ;;  %v1457_v42 = vpack.c.bf16 %v552_v31, %v549_v29  ;;  %v1076_v52 = vadd.f32 %v1075_v25, %v552_v31  ;;  %v1147_v53 = vmul.f32 %v552_v31, %v552_v31  ;;  %v2735_v56 = vpop.f32.mrf.mxu1 }
 0x10a   :  { %v1683_v7 = vpop.f32.mrf.mxu0  ;;  %v1532_v6 = vpack.c.bf16 %v2735_v56, %v2725_v5 }
 0x10b   :  { %1581 = vst [vmem:[%s2949_s4 + $0x40] sm:$0xff] %v1457_v42   ;;  %v1077_v30 = vadd.f32 %v1679_v54, %v1076_v52  ;;  %v1210_v26 = vadd.f32 %v1209_v39, %v1147_v53  ;;  %v2742_v49 = vpop.f32.mrf.mxu1  ;;  %v1152_v15 = vmul.f32 %v1683_v7, %v1683_v7 }
 0x10c   :  { %v565_v9 = vpop.f32.mrf.mxu0  ;;  %1596 = vst [vmem:[%s2949_s4 + $0xb8] sm:$0xff] %v1532_v6   ;;  %v1527_v8 = vpack.c.bf16 %v2742_v49, %v2730_v62 }
 0x10d   :  { %v1211_v3 = vadd.f32 %v1210_v26, %v1148_v11  ;;  %v1078_v47 = vadd.f32 %v1680_v36, %v1077_v30  ;;  %v2749_v23 = vpop.f32.mrf.mxu1  ;;  %v1150_v40 = vmul.f32 %v565_v9, %v565_v9 }
 0x10e   :  { %v1684_v16 = vpop.f32.mrf.mxu0  ;;  %1595 = vst [vmem:[%s2949_s4 + $0xb0] sm:$0xff] %v1527_v8  }
 0x10f   :  { %v1079_v34 = vadd.f32 %v1078_v47, %v565_v9  ;;  %v1212_v27 = vadd.f32 %v1211_v3, %v1149_v2  ;;  %v1472_v32 = vpack.c.bf16 %v1684_v16, %v1683_v7  ;;  %v2754_v43 = vpop.f32.mrf.mxu1  ;;  %v1153_v12 = vmul.f32 %v1684_v16, %v1684_v16 }
 0x110   :  { %v568_v38 = vpop.f32.mrf.mxu0 }
 0x111   :  { %v1213_v51 = vadd.f32 %v1212_v27, %v1150_v40  ;;  %1584 = vst [vmem:[%s2949_s4 + $0x58] sm:$0xff] %v1472_v32   ;;  %v1467_v61 = vpack.c.bf16 %v568_v38, %v565_v9  ;;  %v1080_v18 = vadd.f32 %v1079_v34, %v568_v38  ;;  %v1151_v24 = vmul.f32 %v568_v38, %v568_v38  ;;  %v2759_v33 = vpop.f32.mrf.mxu1 }
 0x112   :  { %v1687_v10 = vpop.f32.mrf.mxu0  ;;  %v1542_v50 = vpack.c.bf16 %v2759_v33, %v2749_v23 }
 0x113   :  { %1583 = vst [vmem:[%s2949_s4 + $0x50] sm:$0xff] %v1467_v61   ;;  %v1081_v35 = vadd.f32 %v1683_v7, %v1080_v18  ;;  %v1214_v60 = vadd.f32 %v1213_v51, %v1151_v24  ;;  %v2766_v17 = vpop.f32.mrf.mxu1  ;;  %v1156_v7 = vmul.f32 %v1687_v10, %v1687_v10 }
 0x114   :  { %v581_v54 = vpop.f32.mrf.mxu0  ;;  %1598 = vst [vmem:[%s2949_s4 + $0xc8] sm:$0xff] %v1542_v50   ;;  %v1537_v29 = vpack.c.bf16 %v2766_v17, %v2754_v43 }
 0x115   :  { %v1215_v13 = vadd.f32 %v1214_v60, %v1152_v15  ;;  %v1082_v28 = vadd.f32 %v1684_v16, %v1081_v35  ;;  %v2773_v58 = vpop.f32.mrf.mxu1  ;;  %v1154_v46 = vmul.f32 %v581_v54, %v581_v54 }
 0x116   :  { %v1688_v4 = vpop.f32.mrf.mxu0  ;;  %1597 = vst [vmem:[%s2949_s4 + $0xc0] sm:$0xff] %v1537_v29  }
 0x117   :  { %v1083_v0 = vadd.f32 %v1082_v28, %v581_v54  ;;  %v1216_v36 = vadd.f32 %v1215_v13, %v1153_v12  ;;  %v1482_v25 = vpack.c.bf16 %v1688_v4, %v1687_v10  ;;  %v2778_v45 = vpop.f32.mrf.mxu1  ;;  %v1157_v2 = vmul.f32 %v1688_v4, %v1688_v4 }
 0x118   :  { %v584_v21 = vpop.f32.mrf.mxu0 }
 0x119   :  { %v1217_v63 = vadd.f32 %v1216_v36, %v1154_v46  ;;  %1586 = vst [vmem:[%s2949_s4 + $0x68] sm:$0xff] %v1482_v25   ;;  %v1477_v31 = vpack.c.bf16 %v584_v21, %v581_v54  ;;  %v1084_v39 = vadd.f32 %v1083_v0, %v584_v21  ;;  %v1155_v42 = vmul.f32 %v584_v21, %v584_v21  ;;  %v2783_v53 = vpop.f32.mrf.mxu1 }
 0x11a   :  { %v1691_v52 = vpop.f32.mrf.mxu0  ;;  %v1552_v26 = vpack.c.bf16 %v2783_v53, %v2773_v58  ;;  %v1162_v36 = vmul.f32 %v2658_v37, %v2658_v37 }
 0x11b   :  { %1585 = vst [vmem:[%s2949_s4 + $0x60] sm:$0xff] %v1477_v31   ;;  %v1085_v11 = vadd.f32 %v1687_v10, %v1084_v39  ;;  %v1218_v30 = vadd.f32 %v1217_v63, %v1155_v42  ;;  %v2790_v9 = vpop.f32.mrf.mxu1  ;;  %v1160_v60 = vmul.f32 %v1691_v52, %v1691_v52  ;;  %v1163_v39 = vmul.f32 %v2670_v44, %v2670_v44 }
 0x11c   :  { %v597_v6 = vpop.f32.mrf.mxu0  ;;  %1600 = vst [vmem:[%s2949_s4 + $0xd8] sm:$0xff] %v1552_v26   ;;  %v1547_v8 = vpack.c.bf16 %v2790_v9, %v2778_v45 }
 0x11d   :  { %v1219_v3 = vadd.f32 %v1218_v30, %v1156_v7  ;;  %v1086_v47 = vadd.f32 %v1688_v4, %v1085_v11  ;;  %v2797_v34 = vpop.f32.mrf.mxu1  ;;  %v1158_v27 = vmul.f32 %v597_v6, %v597_v6  ;;  %v1164_v7 = vmul.f32 %v2656_v19, %v2656_v19 }
 0x11e   :  { %v1692_v16 = vpop.f32.mrf.mxu0  ;;  %1599 = vst [vmem:[%s2949_s4 + $0xd0] sm:$0xff] %v1547_v8  }
 0x11f   :  { %v1087_v40 = vadd.f32 %v1086_v47, %v597_v6  ;;  %v1220_v32 = vadd.f32 %v1219_v3, %v1157_v2  ;;  %v1492_v38 = vpack.c.bf16 %v1692_v16, %v1691_v52  ;;  %v2802_v61 = vpop.f32.mrf.mxu1  ;;  %v1161_v28 = vmul.f32 %v1692_v16, %v1692_v16 }
 0x120   :  { %v600_v51 = vpop.f32.mrf.mxu0  ;;  %v1166_v47 = vmul.f32 %v2682_v48, %v2682_v48 }
 0x121   :  { %v1221_v18 = vadd.f32 %v1220_v32, %v1158_v27  ;;  %1588 = vst [vmem:[%s2949_s4 + $0x78] sm:$0xff] %v1492_v38   ;;  %v1487_v24 = vpack.c.bf16 %v600_v51, %v597_v6  ;;  %v1088_v10 = vadd.f32 %v1087_v40, %v600_v51  ;;  %v1159_v15 = vmul.f32 %v600_v51, %v600_v51  ;;  %v2807_v35 = vpop.f32.mrf.mxu1 }
 0x122   :  { %v1562_v12 = vpack.c.bf16 %v2807_v35, %v2797_v34  ;;  %v1165_v6 = vmul.f32 %v2663_v1, %v2663_v1  ;;  %v1167_v40 = vmul.f32 %v2694_v41, %v2694_v41  ;;  %v1168_v27 = vmul.f32 %v2677_v22, %v2677_v22 }
 0x123   :  { %1587 = vst [vmem:[%s2949_s4 + $0x70] sm:$0xff] %v1487_v24   ;;  %v1089_v50 = vadd.f32 %v1691_v52, %v1088_v10  ;;  %v1222_v54 = vadd.f32 %v1221_v18, %v1159_v15  ;;  %v2814_v13 = vpop.f32.mrf.mxu1  ;;  %v1170_v10 = vmul.f32 %v2706_v20, %v2706_v20 }
 0x124   :  { %1602 = vst [vmem:[%s2949_s4 + $0xe8] sm:$0xff] %v1562_v12   ;;  %v1557_v0 = vpack.c.bf16 %v2814_v13, %v2802_v61 }
 0x125   :  { %v1090_v29 = vadd.f32 %v1692_v16, %v1089_v50  ;;  %v1223_v4 = vadd.f32 %v1222_v54, %v1160_v60  ;;  %v2821_v46 = vpop.f32.mrf.mxu1  ;;  %v1171_v50 = vmul.f32 %v2718_v59, %v2718_v59 }
 0x126   :  { %1601 = vst [vmem:[%s2949_s4 + $0xe0] sm:$0xff] %v1557_v0  }
 0x127   :  { %v1224_v25 = vadd.f32 %v1223_v4, %v1161_v28  ;;  %v1091_v21 = vadd.f32 %v1090_v29, %v2658_v37  ;;  %v2829_v63 = vpop.f32.mrf.mxu1  ;;  %v1174_v4 = vmul.f32 %v2730_v62, %v2730_v62 }
 0x129   :  { %v1092_v31 = vadd.f32 %v1091_v21, %v2670_v44  ;;  %v1225_v42 = vadd.f32 %v1224_v25, %v1162_v36  ;;  %v2834_v52 = vpop.f32.mrf.mxu1  ;;  %v1175_v25 = vmul.f32 %v2742_v49, %v2742_v49 }
 0x12a   :  { %v1572_v30 = vpack.c.bf16 %v2834_v52, %v2821_v46 }
 0x12b   :  { %v1093_v11 = vadd.f32 %v2656_v19, %v1092_v31  ;;  %v1226_v37 = vadd.f32 %v1225_v42, %v1163_v39  ;;  %v2841_v26 = vpop.f32.mrf.mxu1 }
 0x12c   :  { %1604 = vst [vmem:[%s2949_s4 + $0xf8] sm:$0xff] %v1572_v30   ;;  %v1567_v3 = vpack.c.bf16 %v2841_v26, %v2829_v63  ;;  %v1179_v30 = vmul.f32 %v2766_v17, %v2766_v17 }
 0x12d   :  { %v1227_v2 = vadd.f32 %v1226_v37, %v1164_v7  ;;  %v1094_v44 = vadd.f32 %v2663_v1, %v1093_v11  ;;  %v1178_v7 = vmul.f32 %v2754_v43, %v2754_v43 }
 0x12e   :  { %1603 = vst [vmem:[%s2949_s4 + $0xf0] sm:$0xff] %v1567_v3  }
 0x12f   :  { %v1095_v19 = vadd.f32 %v1094_v44, %v2682_v48  ;;  %v1228_v8 = vadd.f32 %v1227_v2, %v1165_v6  ;;  %v1169_v48 = vmul.f32 %v2687_v55, %v2687_v55 }
 0x131   :  { %v1229_v16 = vadd.f32 %v1228_v8, %v1166_v47  ;;  %v1096_v1 = vadd.f32 %v1095_v19, %v2694_v41  ;;  %v1182_v19 = vmul.f32 %v2778_v45, %v2778_v45 }
 0x133   :  { %v1097_v32 = vadd.f32 %v2677_v22, %v1096_v1  ;;  %v1230_v38 = vadd.f32 %v1229_v16, %v1167_v40  ;;  %v1172_v22 = vmul.f32 %v2701_v57, %v2701_v57  ;;  %v1183_v16 = vmul.f32 %v2790_v9, %v2790_v9 }
 0x135   :  { %v1231_v51 = vadd.f32 %v1230_v38, %v1168_v27  ;;  %v1098_v18 = vadd.f32 %v2687_v55, %v1097_v32  ;;  %v1173_v55 = vmul.f32 %v2711_v14, %v2711_v14  ;;  %v1186_v38 = vmul.f32 %v2802_v61, %v2802_v61 }
 0x137   :  { %v1099_v24 = vadd.f32 %v1098_v18, %v2706_v20  ;;  %v1232_v15 = vadd.f32 %v1231_v51, %v1169_v48  ;;  %v1187_v18 = vmul.f32 %v2814_v13, %v2814_v13 }
 0x139   :  { %v1233_v60 = vadd.f32 %v1232_v15, %v1170_v10  ;;  %v1100_v41 = vadd.f32 %v1099_v24, %v2718_v59 }
 0x13b   :  { %v1101_v54 = vadd.f32 %v2701_v57, %v1100_v41  ;;  %v1234_v12 = vadd.f32 %v1233_v60, %v1171_v50  ;;  %v1176_v57 = vmul.f32 %v2725_v5, %v2725_v5  ;;  %v1190_v41 = vmul.f32 %v2829_v63, %v2829_v63 }
 0x13d   :  { %v1235_v28 = vadd.f32 %v1234_v12, %v1172_v22  ;;  %v1102_v29 = vadd.f32 %v2711_v14, %v1101_v54  ;;  %v1177_v14 = vmul.f32 %v2735_v56, %v2735_v56  ;;  %v1191_v54 = vmul.f32 %v2841_v26, %v2841_v26 }
 0x13f   :  { %v1103_v20 = vadd.f32 %v1102_v29, %v2730_v62  ;;  %v1236_v0 = vadd.f32 %v1235_v28, %v1173_v55 }
 0x141   :  { %v1237_v36 = vadd.f32 %v1236_v0, %v1174_v4  ;;  %v1104_v59 = vadd.f32 %v1103_v20, %v2742_v49 }
 0x143   :  { %v1105_v21 = vadd.f32 %v2725_v5, %v1104_v59  ;;  %v1238_v31 = vadd.f32 %v1237_v36, %v1175_v25  ;;  %v1180_v5 = vmul.f32 %v2749_v23, %v2749_v23 }
 0x145   :  { %v1239_v39 = vadd.f32 %v1238_v31, %v1176_v57  ;;  %v1106_v42 = vadd.f32 %v2735_v56, %v1105_v21  ;;  %v1181_v56 = vmul.f32 %v2759_v33, %v2759_v33 }
 0x147   :  { %v1107_v62 = vadd.f32 %v1106_v42, %v2754_v43  ;;  %v1240_v11 = vadd.f32 %v1239_v39, %v1177_v14 }
 0x149   :  { %v1241_v37 = vadd.f32 %v1240_v11, %v1178_v7  ;;  %v1108_v49 = vadd.f32 %v1107_v62, %v2766_v17 }
 0x14b   :  { %v1109_v6 = vadd.f32 %v2749_v23, %v1108_v49  ;;  %v1242_v2 = vadd.f32 %v1241_v37, %v1179_v30  ;;  %v1184_v23 = vmul.f32 %v2773_v58, %v2773_v58 }
 0x14d   :  { %v1243_v44 = vadd.f32 %v1242_v2, %v1180_v5  ;;  %v1110_v3 = vadd.f32 %v2759_v33, %v1109_v6  ;;  %v1185_v33 = vmul.f32 %v2783_v53, %v2783_v53 }
 0x14f   :  { %v1111_v43 = vadd.f32 %v1110_v3, %v2778_v45  ;;  %v1244_v47 = vadd.f32 %v1243_v44, %v1181_v56 }
 0x151   :  { %v1245_v8 = vadd.f32 %v1244_v47, %v1182_v19  ;;  %v1112_v17 = vadd.f32 %v1111_v43, %v2790_v9 }
 0x153   :  { %v1113_v1 = vadd.f32 %v2773_v58, %v1112_v17  ;;  %v1246_v40 = vadd.f32 %v1245_v8, %v1183_v16  ;;  %v1188_v58 = vmul.f32 %v2797_v34, %v2797_v34 }
 0x155   :  { %v1247_v27 = vadd.f32 %v1246_v40, %v1184_v23  ;;  %v1114_v32 = vadd.f32 %v2783_v53, %v1113_v1  ;;  %v1189_v53 = vmul.f32 %v2807_v35, %v2807_v35 }
 0x157   :  { %v1115_v45 = vadd.f32 %v1114_v32, %v2802_v61  ;;  %v1248_v48 = vadd.f32 %v1247_v27, %v1185_v33 }
 0x159   :  { %v1249_v51 = vadd.f32 %v1248_v48, %v1186_v38  ;;  %v1116_v9 = vadd.f32 %v1115_v45, %v2814_v13 }
 0x15b   :  { %v1117_v24 = vadd.f32 %v2797_v34, %v1116_v9  ;;  %v1250_v10 = vadd.f32 %v1249_v51, %v1187_v18  ;;  %v1192_v34 = vmul.f32 %v2821_v46, %v2821_v46 }
 0x15d   :  { %v1251_v15 = vadd.f32 %v1250_v10, %v1188_v58  ;;  %v1118_v60 = vadd.f32 %v2807_v35, %v1117_v24  ;;  %v1193_v35 = vmul.f32 %v2834_v52, %v2834_v52 }
 0x15f   :  { %v1119_v61 = vadd.f32 %v1118_v60, %v2829_v63  ;;  %v1252_v50 = vadd.f32 %v1251_v15, %v1189_v53 }
 0x161   :  { %v1253_v22 = vadd.f32 %v1252_v50, %v1190_v41  ;;  %v1120_v13 = vadd.f32 %v1119_v61, %v2841_v26 }
 0x163   :  { %v1121_v12 = vadd.f32 %v2821_v46, %v1120_v13  ;;  %v1254_v55 = vadd.f32 %v1253_v22, %v1191_v54 }
 0x165   :  { %v1122_v28 = vadd.f32 %v2834_v52, %v1121_v12  ;;  %v1255_v29 = vadd.f32 %v1254_v55, %v1192_v34 }
 0x167   :  { %v1123_v63 = vrot.slane %v1122_v28, 4  ;;  %v1256_v20 = vadd.f32 %v1255_v29, %v1193_v35 }
 0x169   :  { %v1124_v4 = vadd.f32 %v1123_v63, %v1122_v28  ;;  %v1257_v0 = vrot.slane %v1256_v20, 4 }
 0x16b   :  { %v1125_v36 = vrot.slane %v1124_v4, 2  ;;  %v1258_v59 = vadd.f32 %v1257_v0, %v1256_v20 }
 0x16d   :  { %v1126_v25 = vadd.f32 %v1125_v36, %v1124_v4  ;;  %v1259_v26 = vrot.slane %v1258_v59, 2 }
 0x16f   :  { %v1127_v57 = vrot.slane %v1126_v25, 1  ;;  %v1260_v21 = vadd.f32 %v1259_v26, %v1258_v59 }
 0x171   :  { %v1128_v31 = vadd.f32 %v1127_v57, %v1126_v25  ;;  %v1261_v14 = vrot.slane %v1260_v21, 1 }
 0x173   :  { %1129 = vst [vmem:[%s2950_s5] sm:$0x1] %v1128_v31  ;;  %v1262_v46 = vadd.f32 %v1261_v14, %v1260_v21 }
 0x175   :  { %1263 = vst [vmem:[%s2950_s5 + $0x1] sm:$0x1] %v1262_v46 }

// kernel: resblock_bot_forward.4
= control target key start
LH: loop header
LB: loop body
LE: loop exit
PB: predicated region body
PF: predicated region fallthrough
CT: control target
= control target key end

     0   :  { %s2759_s18 = smov 0   ;;  %s2761_s19 = smov 0   ;;  %s3345_s0 = inlined_call_operand.vmem [shape: bf16[2,16,16,128], index: 0, kind: input, shape index: {}]   ;;  %s3346_s1 = inlined_call_operand.vmem [shape: f32[1,128], index: 1, kind: input, shape index: {}]   ;;  %s3347_s2 = inlined_call_operand.vmem [shape: f32[1,128], index: 2, kind: input, shape index: {}]   ;;  %s3348_s3 = inlined_call_operand.vmem [shape: bf16[3,3,128,128], index: 3, kind: input, shape index: {}]   ;;  %s3349_s4 = inlined_call_operand.vmem [shape: bf16[2,256,128], index: 4, kind: output, shape index: {0}]   ;;  %s3350_s5 = inlined_call_operand.vmem [shape: f32[2,8,128], index: 5, kind: output, shape index: {1}]  }
   0x1   :  { %s2763_s20 = smov 0   ;;  %s2765_s21 = smov 0  }
   0x2   :  { %s2767_s22 = smov 0  }
   0x3 LB: > { %s25_s23 = sadd.s32 1, %s2718_s20  ;;  %s28_s24 = sadd.s32 1, %s2722_s21  ;;  %s2726_s22 = sphi %s2767_s22, %s16_s22   ;;  %s2722_s21 = sphi %s2765_s21, %s3354_s21   ;;  %s2718_s20 = sphi %s2763_s20, %s3353_s20   ;;  %s2714_s19 = sphi %s2761_s19, %s3352_s19   ;;  %s2710_s18 = sphi %s2759_s18, %s3351_s18  }
   0x4   : > { %p26_p0 = scmp.ge.s32.totalorder %s25_s23, 3  ;;  %p2081_p1 = scmp.ge.s32.totalorder %s2726_s22, 1 }
   0x5   : > { %p212_p2 = scmp.lt.s32.totalorder %s2726_s22, 7 }
   0x6   : > { %s3356_s23 = smov (%p26_p0, %s25_s23), 0  ;;  %s3358_s24 = smov (!%p26_p0, %s28_s24), %s2722_s21 }
   0x7   : > { %p213_p3 = pnand %p2081_p1, %p212_p2  ;;  %p30_p4 = scmp.ge.s32.totalorder %s3358_s24, 2 }
   0x8   : > { %p249_p5 = scmp.lt.s32.totalorder (!%p213_p3), %s2714_s19, 1  ;;  %p254_p6 = scmp.lt.s32.totalorder (!%p213_p3), %s2710_s18, 2 }
   0x9   : > { %s3360_s24 = smov (%p30_p4, %s3358_s24), 0  ;;  %216 = sbr.rel (%p213_p3) target bundleno = 479 (0x1df), region = 36 }
   0xa   : > { %p2088_p7 = scmp.ne.s32.totalorder (!%p213_p3), %s2710_s18, 0 }
   0xe   : > { %s3362_s19 = smov (!%p249_p5, %s2714_s19), 1 }
   0xf   : > { %s255_s25 = scalar_select %p254_p6, %s2710_s18, 2 }
  0x10   : > { %s2182_s26 = sshll.u32 %s3362_s19, 7  ;;  %s2087_s27 = sshll.u32 %s3362_s19, 3 }
  0x11   : > { %s2796_s30 = scalar_lea.vmem %s3345_s0, %s2182_s26  ;;  %s2622_s6 = smul.u32 192, %s255_s25 }
  0x12   : > { %s2801_s9 = scalar_lea.vmem %s3349_s4, %s2182_s26  ;;  %s2806_s12 = scalar_lea.vmem %s3350_s5, %s2087_s27 }
  0x13   : > { %s2811_s15 = scalar_lea.vmem %s3348_s3, %s2622_s6  ;;  %272 = sbr.rel (%p2088_p7) target bundleno = 76 (0x4c), region = 40 }
  0x18   : > { %v2815_v0 = vld [vmem:[%s2796_s30] sm:$0xff]   ;;  %v2728_v2 = vmov 0.0   ;;  %v2360_v5 = vld [vmem:[%s2796_s30 + $0x8] sm:$0xff]   ;;  %v2361_v6 = vld [vmem:[%s2796_s30 + $0x10] sm:$0xff]  }
  0x19   : > { %v2820_v1 = vld [vmem:[%s3346_s1] ss:$0 sm:$0xff]  ;;  %447 = vst [vmem:[#allocation2] sm:$0xff] %v2728_v2  ;;  %448 = vst [vmem:[#allocation2 + $0x8] sm:$0xff] %v2728_v2  ;;  %v2218_v3 = vunpack.c.l.bf16 %v2815_v0  ;;  %v2219_v4 = vunpack.c.h.bf16 %v2815_v0  ;;  %v2362_v7 = vld [vmem:[%s2796_s30 + $0x18] sm:$0xff]   ;;  %v2222_v9 = vunpack.c.l.bf16 %v2360_v5  ;;  %v2223_v10 = vunpack.c.h.bf16 %v2360_v5 }
  0x1a   : > { %449 = vst [vmem:[#allocation2 + $0x10] sm:$0x3] %v2728_v2  ;;  %451 = vst [vmem:[#allocation2 + $0x198] sm:$0xff] %v2728_v2  ;;  %v2900_v8 = vld [vmem:[%s3347_s2] ss:$0 sm:$0xff]  ;;  %v2226_v11 = vunpack.c.l.bf16 %v2361_v6  ;;  %v2227_v12 = vunpack.c.h.bf16 %v2361_v6  ;;  %v2230_v15 = vunpack.c.l.bf16 %v2362_v7  ;;  %v2231_v16 = vunpack.c.h.bf16 %v2362_v7  ;;  %v2364_v34 = vld [vmem:[%s2796_s30 + $0x28] sm:$0xff]  }
  0x1b   : > { %452 = vst [vmem:[#allocation2 + $0x1a0] sm:$0xff] %v2728_v2  ;;  %453 = vst [vmem:[#allocation2 + $0x1a8] sm:$0x3] %v2728_v2  ;;  %v344_v13 = vmul.f32 %v2218_v3, %v2820_v1  ;;  %v345_v14 = vmul.f32 %v2219_v4, %v2820_v1  ;;  %v346_v17 = vmul.f32 %v2222_v9, %v2820_v1  ;;  %v2363_v29 = vld [vmem:[%s2796_s30 + $0x20] sm:$0xff]   ;;  %v2365_v35 = vld [vmem:[%s2796_s30 + $0x30] sm:$0xff]   ;;  %v2238_v45 = vunpack.c.l.bf16 %v2364_v34 }
  0x1c   : > { %455 = vst [vmem:[#allocation2 + $0x18] sm:$0x1] %v2728_v2  ;;  %456 = vst [vmem:[#allocation2 + $0x30] sm:$0x1] %v2728_v2  ;;  %v347_v18 = vmul.f32 %v2223_v10, %v2820_v1  ;;  %v348_v19 = vmul.f32 %v2226_v11, %v2820_v1  ;;  %v349_v20 = vmul.f32 %v2227_v12, %v2820_v1  ;;  %v2366_v40 = vld [vmem:[%s2796_s30 + $0x38] sm:$0xff]   ;;  %v2234_v43 = vunpack.c.l.bf16 %v2363_v29  ;;  %v2368_v7 = vld [vmem:[%s2796_s30 + $0x48] sm:$0xff]  }
  0x1d   : > { %457 = vst [vmem:[#allocation2 + $0x48] sm:$0x1] %v2728_v2  ;;  %458 = vst [vmem:[#allocation2 + $0x60] sm:$0x1] %v2728_v2  ;;  %v383_v21 = vadd.f32 %v2900_v8, %v344_v13  ;;  %v384_v22 = vadd.f32 %v2900_v8, %v345_v14  ;;  %v350_v23 = vmul.f32 %v2230_v15, %v2820_v1  ;;  %v2235_v44 = vunpack.c.h.bf16 %v2363_v29  ;;  %v2369_v9 = vld [vmem:[%s2796_s30 + $0x50] sm:$0xff]   ;;  %v2370_v14 = vld [vmem:[%s2796_s30 + $0x58] sm:$0xff]  }
  0x1e   : > { %459 = vst [vmem:[#allocation2 + $0x78] sm:$0x1] %v2728_v2  ;;  %460 = vst [vmem:[#allocation2 + $0x90] sm:$0x1] %v2728_v2  ;;  %v351_v24 = vmul.f32 %v2231_v16, %v2820_v1  ;;  %v385_v25 = vadd.f32 %v2900_v8, %v346_v17  ;;  %v386_v26 = vadd.f32 %v2900_v8, %v347_v18  ;;  %v2239_v46 = vunpack.c.h.bf16 %v2364_v34 }
  0x1f   : > { %461 = vst [vmem:[#allocation2 + $0xa8] sm:$0x1] %v2728_v2  ;;  %462 = vst [vmem:[#allocation2 + $0xc0] sm:$0x1] %v2728_v2  ;;  %v387_v27 = vadd.f32 %v2900_v8, %v348_v19  ;;  %v388_v28 = vadd.f32 %v2900_v8, %v349_v20  ;;  %v415_v30 = vmax.f32 %v383_v21, 0.0  ;;  %v416_v31 = vmax.f32 %v384_v22, 0.0 }
  0x20   : > { %463 = vst [vmem:[#allocation2 + $0xd8] sm:$0x1] %v2728_v2  ;;  %464 = vst [vmem:[#allocation2 + $0xf0] sm:$0x1] %v2728_v2  ;;  %v389_v32 = vadd.f32 %v2900_v8, %v350_v23  ;;  %v390_v33 = vadd.f32 %v2900_v8, %v351_v24  ;;  %v417_v36 = vmax.f32 %v385_v25, 0.0  ;;  %v418_v37 = vmax.f32 %v386_v26, 0.0 }
  0x21   : > { %465 = vst [vmem:[#allocation2 + $0x108] sm:$0x1] %v2728_v2  ;;  %466 = vst [vmem:[#allocation2 + $0x120] sm:$0x1] %v2728_v2  ;;  %v419_v38 = vmax.f32 %v387_v27, 0.0  ;;  %v420_v39 = vmax.f32 %v388_v28, 0.0  ;;  %v2242_v47 = vunpack.c.l.bf16 %v2365_v35  ;;  %v2243_v48 = vunpack.c.h.bf16 %v2365_v35 }
  0x22   : > { %467 = vst [vmem:[#allocation2 + $0x138] sm:$0x1] %v2728_v2  ;;  %468 = vst [vmem:[#allocation2 + $0x150] sm:$0x1] %v2728_v2  ;;  %v421_v41 = vmax.f32 %v389_v32, 0.0  ;;  %v422_v42 = vmax.f32 %v390_v33, 0.0  ;;  %v352_v49 = vmul.f32 %v2234_v43, %v2820_v1  ;;  %v353_v50 = vmul.f32 %v2235_v44, %v2820_v1 }
  0x23   : > { %469 = vst [vmem:[#allocation2 + $0x168] sm:$0x1] %v2728_v2  ;;  %470 = vst [vmem:[#allocation2 + $0x180] sm:$0x1] %v2728_v2  ;;  %v2246_v51 = vunpack.c.l.bf16 %v2366_v40  ;;  %v2247_v52 = vunpack.c.h.bf16 %v2366_v40  ;;  %v354_v53 = vmul.f32 %v2238_v45, %v2820_v1  ;;  %v355_v54 = vmul.f32 %v2239_v46, %v2820_v1  ;;  %v2372_v44 = vld [vmem:[%s2796_s30 + $0x68] sm:$0xff]   ;;  %v2373_v45 = vld [vmem:[%s2796_s30 + $0x70] sm:$0xff]  }
  0x24   : > { %471 = vst [vmem:[#allocation2 + $0x29] sm:$0x1] %v2728_v2  ;;  %472 = vst [vmem:[#allocation2 + $0x41] sm:$0x1] %v2728_v2  ;;  %v356_v55 = vmul.f32 %v2242_v47, %v2820_v1  ;;  %v357_v56 = vmul.f32 %v2243_v48, %v2820_v1  ;;  %v391_v57 = vadd.f32 %v2900_v8, %v352_v49  ;;  %v2254_v19 = vunpack.c.l.bf16 %v2368_v7 }
  0x25   : > { %473 = vst [vmem:[#allocation2 + $0x59] sm:$0x1] %v2728_v2  ;;  %474 = vst [vmem:[#allocation2 + $0x71] sm:$0x1] %v2728_v2  ;;  %v392_v58 = vadd.f32 %v2900_v8, %v353_v50  ;;  %v358_v59 = vmul.f32 %v2246_v51, %v2820_v1  ;;  %v359_v60 = vmul.f32 %v2247_v52, %v2820_v1  ;;  %v2255_v20 = vunpack.c.h.bf16 %v2368_v7  ;;  %v2374_v50 = vld [vmem:[%s2796_s30 + $0x78] sm:$0xff]  }
  0x26   : > { %475 = vst [vmem:[#allocation2 + $0x89] sm:$0x1] %v2728_v2  ;;  %476 = vst [vmem:[#allocation2 + $0xa1] sm:$0x1] %v2728_v2  ;;  %v393_v61 = vadd.f32 %v2900_v8, %v354_v53  ;;  %v394_v62 = vadd.f32 %v2900_v8, %v355_v54  ;;  %v395_v63 = vadd.f32 %v2900_v8, %v356_v55  ;;  %v423_v3 = vmax.f32 %v391_v57, 0.0 }
  0x27   : > { %477 = vst [vmem:[#allocation2 + $0xb9] sm:$0x1] %v2728_v2  ;;  %478 = vst [vmem:[#allocation2 + $0xd1] sm:$0x1] %v2728_v2  ;;  %v396_v0 = vadd.f32 %v2900_v8, %v357_v56  ;;  %v424_v4 = vmax.f32 %v392_v58, 0.0  ;;  %v397_v5 = vadd.f32 %v2900_v8, %v358_v59  ;;  %v398_v6 = vadd.f32 %v2900_v8, %v359_v60 }
  0x28   : > { %479 = vst [vmem:[#allocation2 + $0xe9] sm:$0x1] %v2728_v2  ;;  %480 = vst [vmem:[#allocation2 + $0x101] sm:$0x1] %v2728_v2  ;;  %v425_v10 = vmax.f32 %v393_v61, 0.0  ;;  %v426_v11 = vmax.f32 %v394_v62, 0.0  ;;  %v2258_v21 = vunpack.c.l.bf16 %v2369_v9  ;;  %v2259_v22 = vunpack.c.h.bf16 %v2369_v9 }
  0x29   : > { %481 = vst [vmem:[#allocation2 + $0x119] sm:$0x1] %v2728_v2  ;;  %482 = vst [vmem:[#allocation2 + $0x131] sm:$0x1] %v2728_v2  ;;  %v427_v12 = vmax.f32 %v395_v63, 0.0  ;;  %v428_v13 = vmax.f32 %v396_v0, 0.0  ;;  %v2262_v25 = vunpack.c.l.bf16 %v2370_v14  ;;  %v2263_v26 = vunpack.c.h.bf16 %v2370_v14 }
  0x2a   : > { %483 = vst [vmem:[#allocation2 + $0x149] sm:$0x1] %v2728_v2  ;;  %484 = vst [vmem:[#allocation2 + $0x161] sm:$0x1] %v2728_v2  ;;  %v429_v15 = vmax.f32 %v397_v5, 0.0  ;;  %v430_v16 = vmax.f32 %v398_v6, 0.0  ;;  %v362_v27 = vmul.f32 %v2254_v19, %v2820_v1  ;;  %v363_v28 = vmul.f32 %v2255_v20, %v2820_v1 }
  0x2b   : > { %485 = vst [vmem:[#allocation2 + $0x179] sm:$0x1] %v2728_v2  ;;  %486 = vst [vmem:[#allocation2 + $0x191] sm:$0x1] %v2728_v2  ;;  %v364_v29 = vmul.f32 %v2258_v21, %v2820_v1  ;;  %v366_v33 = vmul.f32 %v2262_v25, %v2820_v1  ;;  %v367_v34 = vmul.f32 %v2263_v26, %v2820_v1  ;;  %v2270_v55 = vunpack.c.l.bf16 %v2372_v44 }
  0x2c   : > { %519 = vst [vmem:[#allocation3 + $0xb0] sm:$0xff] %v2728_v2  ;;  %520 = vst [vmem:[#allocation3] sm:$0xff] %v2728_v2  ;;  %v401_v35 = vadd.f32 %v2900_v8, %v362_v27  ;;  %v2271_v56 = vunpack.c.h.bf16 %v2372_v44  ;;  %v2274_v57 = vunpack.c.l.bf16 %v2373_v45  ;;  %v2275_v58 = vunpack.c.h.bf16 %v2373_v45 }
  0x2d   : > { %521 = vst [vmem:[#allocation3 + $0xd8] sm:$0xff] %v2728_v2  ;;  %522 = vst [vmem:[#allocation3 + $0x18] sm:$0xff] %v2728_v2  ;;  %v406_v43 = vadd.f32 %v2900_v8, %v367_v34  ;;  %v2278_v61 = vunpack.c.l.bf16 %v2374_v50  ;;  %v2279_v62 = vunpack.c.h.bf16 %v2374_v50  ;;  %v370_v63 = vmul.f32 %v2270_v55, %v2820_v1 }
  0x2e   : > { %523 = vst [vmem:[#allocation3 + $0x50] sm:$0xff] %v2728_v2  ;;  %524 = vst [vmem:[#allocation3 + $0x68] sm:$0xff] %v2728_v2  ;;  %v433_v46 = vmax.f32 %v401_v35, 0.0  ;;  %v371_v0 = vmul.f32 %v2271_v56, %v2820_v1 }
  0x2f   : > { %525 = vst [vmem:[#allocation3 + $0x30] sm:$0xff] %v2728_v2  ;;  %526 = vst [vmem:[#allocation3 + $0x48] sm:$0xff] %v2728_v2  ;;  %v438_v52 = vmax.f32 %v406_v43, 0.0  ;;  %v374_v6 = vmul.f32 %v2278_v61, %v2820_v1  ;;  %v375_v7 = vmul.f32 %v2279_v62, %v2820_v1  ;;  %v409_v9 = vadd.f32 %v2900_v8, %v370_v63 }
  0x30   : > { %527 = vst [vmem:[#allocation3 + $0x80] sm:$0xff] %v2728_v2  ;;  %528 = vst [vmem:[#allocation3 + $0x88] sm:$0xff] %v2728_v2 }
  0x31   : > { %529 = vst [vmem:[#allocation3 + $0xe8] sm:$0xff] %v2728_v2  ;;  %530 = vst [vmem:[#allocation3 + $0xb8] sm:$0xff] %v2728_v2 }
  0x32   : > { %531 = vst [vmem:[#allocation3 + $0x60] sm:$0xff] %v2728_v2  ;;  %532 = vst [vmem:[#allocation3 + $0xf0] sm:$0xff] %v2728_v2 }
  0x33   : > { %533 = vst [vmem:[#allocation3 + $0x8] sm:$0xff] %v2728_v2  ;;  %534 = vst [vmem:[#allocation3 + $0x78] sm:$0xff] %v2728_v2 }
  0x34   : > { %535 = vst [vmem:[#allocation3 + $0x38] sm:$0xff] %v2728_v2  ;;  %536 = vst [vmem:[#allocation3 + $0x58] sm:$0xff] %v2728_v2 }
  0x35   : > { %537 = vst [vmem:[#allocation3 + $0x40] sm:$0xff] %v2728_v2  ;;  %538 = vst [vmem:[#allocation3 + $0xc8] sm:$0xff] %v2728_v2 }
  0x36   : > { %539 = vst [vmem:[#allocation3 + $0xe0] sm:$0xff] %v2728_v2  ;;  %540 = vst [vmem:[#allocation3 + $0x90] sm:$0xff] %v2728_v2 }
  0x37   : > { %541 = vst [vmem:[#allocation3 + $0x70] sm:$0xff] %v2728_v2  ;;  %542 = vst [vmem:[#allocation3 + $0xc0] sm:$0xff] %v2728_v2 }
  0x38   : > { %543 = vst [vmem:[#allocation3 + $0xa8] sm:$0xff] %v2728_v2  ;;  %544 = vst [vmem:[#allocation3 + $0xd0] sm:$0xff] %v2728_v2 }
  0x39   : > { %545 = vst [vmem:[#allocation3 + $0x10] sm:$0xff] %v2728_v2  ;;  %546 = vst [vmem:[#allocation3 + $0x28] sm:$0xff] %v2728_v2 }
  0x3a   : > { %547 = vst [vmem:[#allocation3 + $0xa0] sm:$0xff] %v2728_v2  ;;  %548 = vst [vmem:[#allocation3 + $0xf8] sm:$0xff] %v2728_v2 }
  0x3b   : > { %549 = vst [vmem:[#allocation3 + $0x20] sm:$0xff] %v2728_v2  ;;  %550 = vst [vmem:[#allocation3 + $0x98] sm:$0xff] %v2728_v2  ;;  %v2367_v2 = vld [vmem:[%s2796_s30 + $0x40] sm:$0xff]  }
  0x3c   : > { %487 = vst [vmem:[#allocation2 + $0x19] sm:$0xff] %v415_v30  ;;  %488 = vst [vmem:[#allocation2 + $0x21] sm:$0xff] %v416_v31  ;;  %v2250_v17 = vunpack.c.l.bf16 %v2367_v2  ;;  %v2251_v18 = vunpack.c.h.bf16 %v2367_v2  ;;  %v365_v30 = vmul.f32 %v2259_v22, %v2820_v1  ;;  %v372_v2 = vmul.f32 %v2274_v57, %v2820_v1 }
  0x3d   : > { %489 = vst [vmem:[#allocation2 + $0x31] sm:$0xff] %v417_v36  ;;  %490 = vst [vmem:[#allocation2 + $0x39] sm:$0xff] %v418_v37  ;;  %v402_v36 = vadd.f32 %v2900_v8, %v363_v28  ;;  %v403_v37 = vadd.f32 %v2900_v8, %v364_v29 }
  0x3e   : > { %491 = vst [vmem:[#allocation2 + $0x49] sm:$0xff] %v419_v38  ;;  %492 = vst [vmem:[#allocation2 + $0x51] sm:$0xff] %v420_v39  ;;  %v360_v23 = vmul.f32 %v2250_v17, %v2820_v1  ;;  %v361_v24 = vmul.f32 %v2251_v18, %v2820_v1  ;;  %v404_v38 = vadd.f32 %v2900_v8, %v365_v30  ;;  %v2371_v39 = vld [vmem:[%s2796_s30 + $0x60] sm:$0xff]   ;;  %v441_v17 = vmax.f32 %v409_v9, 0.0 }
  0x3f   : > { %493 = vst [vmem:[#allocation2 + $0x61] sm:$0xff] %v421_v41  ;;  %494 = vst [vmem:[#allocation2 + $0x69] sm:$0xff] %v422_v42  ;;  %v405_v42 = vadd.f32 %v2900_v8, %v366_v33  ;;  %v434_v47 = vmax.f32 %v402_v36, 0.0  ;;  %v435_v48 = vmax.f32 %v403_v37, 0.0  ;;  %v2266_v53 = vunpack.c.l.bf16 %v2371_v39 }
  0x40   : > { %495 = vst [vmem:[#allocation2 + $0x79] sm:$0xff] %v423_v3  ;;  %496 = vst [vmem:[#allocation2 + $0x81] sm:$0xff] %v424_v4  ;;  %v399_v31 = vadd.f32 %v2900_v8, %v360_v23  ;;  %v400_v32 = vadd.f32 %v2900_v8, %v361_v24  ;;  %v436_v49 = vmax.f32 %v404_v38, 0.0  ;;  %v2267_v54 = vunpack.c.h.bf16 %v2371_v39 }
  0x41   : > { %497 = vst [vmem:[#allocation2 + $0x91] sm:$0xff] %v425_v10  ;;  %498 = vst [vmem:[#allocation2 + $0x99] sm:$0xff] %v426_v11  ;;  %v437_v51 = vmax.f32 %v405_v42, 0.0  ;;  %v368_v59 = vmul.f32 %v2266_v53, %v2820_v1  ;;  %v373_v3 = vmul.f32 %v2275_v58, %v2820_v1  ;;  %v410_v10 = vadd.f32 %v2900_v8, %v371_v0 }
  0x42   : > { %499 = vst [vmem:[#allocation2 + $0xa9] sm:$0xff] %v427_v12  ;;  %500 = vst [vmem:[#allocation2 + $0xb1] sm:$0xff] %v428_v13  ;;  %v431_v40 = vmax.f32 %v399_v31, 0.0  ;;  %v432_v41 = vmax.f32 %v400_v32, 0.0  ;;  %v369_v60 = vmul.f32 %v2267_v54, %v2820_v1  ;;  %v411_v11 = vadd.f32 %v2900_v8, %v372_v2 }
  0x43   : > { %501 = vst [vmem:[#allocation2 + $0xc1] sm:$0xff] %v429_v15  ;;  %502 = vst [vmem:[#allocation2 + $0xc9] sm:$0xff] %v430_v16  ;;  %v407_v4 = vadd.f32 %v2900_v8, %v368_v59  ;;  %v412_v12 = vadd.f32 %v2900_v8, %v373_v3  ;;  %v413_v15 = vadd.f32 %v2900_v8, %v374_v6  ;;  %v442_v18 = vmax.f32 %v410_v10, 0.0 }
  0x44   : > { %503 = vst [vmem:[#allocation2 + $0xd9] sm:$0xff] %v431_v40  ;;  %504 = vst [vmem:[#allocation2 + $0xe1] sm:$0xff] %v432_v41  ;;  %v408_v5 = vadd.f32 %v2900_v8, %v369_v60  ;;  %v414_v16 = vadd.f32 %v2900_v8, %v375_v7  ;;  %v443_v19 = vmax.f32 %v411_v11, 0.0 }
  0x45   : > { %505 = vst [vmem:[#allocation2 + $0xf1] sm:$0xff] %v433_v46  ;;  %506 = vst [vmem:[#allocation2 + $0xf9] sm:$0xff] %v434_v47  ;;  %v439_v13 = vmax.f32 %v407_v4, 0.0  ;;  %v444_v20 = vmax.f32 %v412_v12, 0.0  ;;  %v445_v1 = vmax.f32 %v413_v15, 0.0 }
  0x46   : > { %507 = vst [vmem:[#allocation2 + $0x109] sm:$0xff] %v435_v48  ;;  %508 = vst [vmem:[#allocation2 + $0x111] sm:$0xff] %v436_v49  ;;  %v440_v14 = vmax.f32 %v408_v5, 0.0  ;;  %v446_v21 = vmax.f32 %v414_v16, 0.0 }
  0x47   : > { %509 = vst [vmem:[#allocation2 + $0x121] sm:$0xff] %v437_v51  ;;  %510 = vst [vmem:[#allocation2 + $0x129] sm:$0xff] %v438_v52 }
  0x48   : > { %511 = vst [vmem:[#allocation2 + $0x139] sm:$0xff] %v439_v13  ;;  %512 = vst [vmem:[#allocation2 + $0x141] sm:$0xff] %v440_v14 }
  0x49   : > { %513 = vst [vmem:[#allocation2 + $0x151] sm:$0xff] %v441_v17  ;;  %514 = vst [vmem:[#allocation2 + $0x159] sm:$0xff] %v442_v18 }
  0x4a   : > { %515 = vst [vmem:[#allocation2 + $0x169] sm:$0xff] %v443_v19  ;;  %516 = vst [vmem:[#allocation2 + $0x171] sm:$0xff] %v444_v20 }
  0x4b   : > { %517 = vst [vmem:[#allocation2 + $0x181] sm:$0xff] %v445_v1  ;;  %518 = vst [vmem:[#allocation2 + $0x189] sm:$0xff] %v446_v21 }
  0x4c PF: > { %v2664_v8 = vld [vmem:[%s2811_s15 + $0x38] sm:$0xff]   ;;  %v2665_v22 = vld [vmem:[%s2811_s15 + $0x30] sm:$0xff]   ;;  %s551_s26 = smul.u32 24, %s2710_s18  ;;  %v2666_v23 = vld [vmem:[%s2811_s15 + $0x28] sm:$0xff]   ;;  %p2147_p8 = scmp.ne.s32.totalorder %s2710_s18, 2 }
  0x4d   : > { %2606 = vmatprep.subr.bf16.mxu1 %v2664_v8  ;;  %2462 = vmatprep.subr.bf16.mxu0 %v2664_v8  ;;  %v2667_v24 = vld [vmem:[%s2811_s15 + $0x20] sm:$0xff]   ;;  %v2668_v31 = vld [vmem:[%s2811_s15 + $0x18] sm:$0xff]   ;;  %v2669_v32 = vld [vmem:[%s2811_s15 + $0x10] sm:$0xff]  }
  0x4e   : > { %2614 = vmatpush3.bf16.msra.mxu1 %v2664_v8  ;;  %2463 = vmatpush3.bf16.msra.mxu0 %v2664_v8  ;;  %s2983_s27 = scalar_lea.vmem [#allocation2], %s551_s26  ;;  %v2670_v33 = vld [vmem:[%s2811_s15 + $0x8] sm:$0xff]   ;;  %v2671_v34 = vld [vmem:[%s2811_s15] sm:$0xff]   ;;  %v2672_v37 = vld [vmem:[%s2811_s15 + $0x78] sm:$0xff]  }
  0x4f   : > { %2607 = vmatprep.subr.bf16.mxu1 %v2665_v22  ;;  %2464 = vmatprep.subr.bf16.mxu0 %v2665_v22  ;;  %v2674_v40 = vld [vmem:[%s2811_s15 + $0xb8] sm:$0xff]   ;;  %v2673_v47 = vld [vmem:[%s2811_s15 + $0x70] sm:$0xff]   ;;  %v2675_v55 = vld [vmem:[%s2811_s15 + $0x68] sm:$0xff]  }
  0x50   : > { %v2676_v49 = vld [vmem:[%s2811_s15 + $0xb0] sm:$0xff]   ;;  %v2678_v56 = vld [vmem:[%s2811_s15 + $0xa8] sm:$0xff]   ;;  %v2677_v63 = vld [vmem:[%s2811_s15 + $0x60] sm:$0xff]  }
  0x51   : > { %v2680_v2 = vld [vmem:[%s2811_s15 + $0xa0] sm:$0xff]   ;;  %v2679_v9 = vld [vmem:[%s2811_s15 + $0x58] sm:$0xff]   ;;  %v2681_v17 = vld [vmem:[%s2811_s15 + $0x50] sm:$0xff]  }
  0x52   : > { %2615 = vmatpush3.bf16.msra.mxu1 %v2665_v22  ;;  %2465 = vmatpush3.bf16.msra.mxu0 %v2665_v22  ;;  %v569_v25 = vld [vmem:[%s2983_s27 + $0xc0] sm:$0xff]  ;;  %v570_v26 = vld [vmem:[%s2983_s27 + $0xc8] sm:$0xff]  ;;  %v571_v35 = vld [vmem:[%s2983_s27 + $0xd8] sm:$0xff] }
  0x53   : > { %2608 = vmatprep.subr.bf16.mxu1 %v2666_v23  ;;  %2466 = vmatprep.subr.bf16.mxu0 %v2666_v23  ;;  %v625_v27 = vpack.c.bf16 %v570_v26, %v569_v25  ;;  %v553_v28 = vld [vmem:[%s2983_s27] sm:$0xff]  ;;  %v554_v29 = vld [vmem:[%s2983_s27 + $0x8] sm:$0xff]  ;;  %v555_v38 = vld [vmem:[%s2983_s27 + $0x18] sm:$0xff] }
  0x54   : > { %v617_v30 = vpack.c.bf16 %v554_v29, %v553_v28  ;;  %v572_v36 = vld [vmem:[%s2983_s27 + $0xe0] sm:$0xff]  ;;  %v573_v41 = vld [vmem:[%s2983_s27 + $0xf0] sm:$0xff]  ;;  %v574_v42 = vld [vmem:[%s2983_s27 + $0xf8] sm:$0xff] }
  0x55   : > { %2494 = vmatprep.mubr.bf16.mxu1 %v625_v27  ;;  %v556_v39 = vld [vmem:[%s2983_s27 + $0x20] sm:$0xff]  ;;  %v626_v43 = vpack.c.bf16 %v572_v36, %v571_v35  ;;  %v557_v45 = vld [vmem:[%s2983_s27 + $0x30] sm:$0xff]  ;;  %v558_v46 = vld [vmem:[%s2983_s27 + $0x38] sm:$0xff]  ;;  %v627_v48 = vpack.c.bf16 %v574_v42, %v573_v41 }
  0x56   : > { %2616 = vmatpush3.bf16.msra.mxu1 %v2666_v23  ;;  %2467 = vmatpush3.bf16.msra.mxu0 %v2666_v23  ;;  %v618_v44 = vpack.c.bf16 %v556_v39, %v555_v38  ;;  %v619_v50 = vpack.c.bf16 %v558_v46, %v557_v45  ;;  %v575_v51 = vld [vmem:[%s2983_s27 + $0x108] sm:$0xff]  ;;  %v576_v52 = vld [vmem:[%s2983_s27 + $0x110] sm:$0xff]  ;;  %v577_v57 = vld [vmem:[%s2983_s27 + $0x120] sm:$0xff] }
  0x57   : > { %2609 = vmatprep.subr.bf16.mxu1 %v2667_v24  ;;  %2468 = vmatprep.subr.bf16.mxu0 %v2667_v24  ;;  %v559_v53 = vld [vmem:[%s2983_s27 + $0x48] sm:$0xff]  ;;  %v560_v54 = vld [vmem:[%s2983_s27 + $0x50] sm:$0xff]  ;;  %v628_v59 = vpack.c.bf16 %v576_v52, %v575_v51  ;;  %v561_v61 = vld [vmem:[%s2983_s27 + $0x60] sm:$0xff] }
  0x58   : > { %2478 = vmatprep.mubr.bf16.mxu0 %v617_v30  ;;  %v578_v58 = vld [vmem:[%s2983_s27 + $0x128] sm:$0xff]  ;;  %v620_v60 = vpack.c.bf16 %v560_v54, %v559_v53  ;;  %v579_v4 = vld [vmem:[%s2983_s27 + $0x138] sm:$0xff]  ;;  %v580_v5 = vld [vmem:[%s2983_s27 + $0x140] sm:$0xff] }
  0x59   : > { %v562_v62 = vld [vmem:[%s2983_s27 + $0x68] sm:$0xff]  ;;  %v629_v0 = vpack.c.bf16 %v578_v58, %v577_v57  ;;  %v563_v6 = vld [vmem:[%s2983_s27 + $0x78] sm:$0xff]  ;;  %v564_v7 = vld [vmem:[%s2983_s27 + $0x80] sm:$0xff]  ;;  %v630_v13 = vpack.c.bf16 %v580_v5, %v579_v4 }
  0x5a   : > { %2617 = vmatpush3.bf16.msra.mxu1 %v2667_v24  ;;  %2469 = vmatpush3.bf16.msra.mxu0 %v2667_v24  ;;  %v621_v3 = vpack.c.bf16 %v562_v62, %v561_v61  ;;  %v2682_v10 = vld [vmem:[%s2811_s15 + $0x98] sm:$0xff]   ;;  %v581_v11 = vld [vmem:[%s2983_s27 + $0x150] sm:$0xff]  ;;  %v622_v14 = vpack.c.bf16 %v564_v7, %v563_v6  ;;  %v583_v1 = vld [vmem:[%s2983_s27 + $0x168] sm:$0xff] }
  0x5b   : > { %2610 = vmatprep.subr.bf16.mxu1 %v2668_v31  ;;  %2470 = vmatprep.subr.bf16.mxu0 %v2668_v31  ;;  %v582_v12 = vld [vmem:[%s2983_s27 + $0x158] sm:$0xff]  ;;  %v565_v15 = vld [vmem:[%s2983_s27 + $0x90] sm:$0xff]  ;;  %v567_v8 = vld [vmem:[%s2983_s27 + $0xa8] sm:$0xff] }
  0x5c   : > { %v566_v16 = vld [vmem:[%s2983_s27 + $0x98] sm:$0xff]  ;;  %v631_v18 = vpack.c.bf16 %v582_v12, %v581_v11  ;;  %v2684_v19 = vld [vmem:[%s2811_s15 + $0x90] sm:$0xff]   ;;  %v2683_v23 = vld [vmem:[%s2811_s15 + $0x48] sm:$0xff]  }
  0x5d   : > { %v623_v20 = vpack.c.bf16 %v566_v16, %v565_v15  ;;  %v584_v21 = vld [vmem:[%s2983_s27 + $0x170] sm:$0xff]  ;;  %v2686_v24 = vld [vmem:[%s2811_s15 + $0x88] sm:$0xff]   ;;  %v924_v35 = vld [vmem:[%s2983_s27 + $0x19] sm:$0xff] }
  0x5e   : > { %2618 = vmatpush3.bf16.msra.mxu1 %v2668_v31  ;;  %2471 = vmatpush3.bf16.msra.mxu0 %v2668_v31  ;;  %v568_v22 = vld [vmem:[%s2983_s27 + $0xb0] sm:$0xff]  ;;  %v922_v25 = vld [vmem:[%s2983_s27 + $0x1] sm:$0xff]  ;;  %v632_v27 = vpack.c.bf16 %v584_v21, %v583_v1  ;;  %v940_v1 = vld [vmem:[%s2983_s27 + $0xd9] sm:$0xff] }
  0x5f   : > { %2611 = vmatprep.subr.bf16.mxu1 %v2669_v32  ;;  %2472 = vmatprep.subr.bf16.mxu0 %v2669_v32  ;;  %v923_v26 = vld [vmem:[%s2983_s27 + $0x9] sm:$0xff]  ;;  %v624_v28 = vpack.c.bf16 %v568_v22, %v567_v8  ;;  %v2685_v31 = vld [vmem:[%s2811_s15 + $0x40] sm:$0xff]   ;;  %v926_v39 = vld [vmem:[%s2983_s27 + $0x31] sm:$0xff] }
  0x60   : > { %v1292_v29 = vld [vmem:[%s2983_s27 + $0x2] sm:$0xff]  ;;  %v1293_v30 = vld [vmem:[%s2983_s27 + $0xa] sm:$0xff]  ;;  %v1296_v41 = vld [vmem:[%s2983_s27 + $0x32] sm:$0xff] }
  0x61   : > { %v925_v36 = vld [vmem:[%s2983_s27 + $0x21] sm:$0xff]  ;;  %v931_v52 = vld [vmem:[%s2983_s27 + $0x69] sm:$0xff]  ;;  %v1307_v12 = vld [vmem:[%s2983_s27 + $0xb2] sm:$0xff] }
  0x62   : > { %2619 = vmatpush3.bf16.msra.mxu1 %v2669_v32  ;;  %2473 = vmatpush3.bf16.msra.mxu0 %v2669_v32  ;;  %v986_v32 = vpack.c.bf16 %v923_v26, %v922_v25  ;;  %v1295_v38 = vld [vmem:[%s2983_s27 + $0x22] sm:$0xff]  ;;  %v1297_v42 = vld [vmem:[%s2983_s27 + $0x3a] sm:$0xff]  ;;  %v1301_v54 = vld [vmem:[%s2983_s27 + $0x6a] sm:$0xff] }
  0x63   : > { %2612 = vmatprep.subr.bf16.mxu1 %v2670_v33  ;;  %2474 = vmatprep.subr.bf16.mxu0 %v2670_v33  ;;  %v1358_v46 = vpack.c.bf16 %v1297_v42, %v1296_v41  ;;  %v930_v51 = vld [vmem:[%s2983_s27 + $0x61] sm:$0xff]  ;;  %v1306_v11 = vld [vmem:[%s2983_s27 + $0xaa] sm:$0xff]  ;;  %v1312_v25 = vld [vmem:[%s2983_s27 + $0xf2] sm:$0xff] }
  0x64   : > { %v1300_v53 = vld [vmem:[%s2983_s27 + $0x62] sm:$0xff]  ;;  %v990_v57 = vpack.c.bf16 %v931_v52, %v930_v51  ;;  %v1302_v61 = vld [vmem:[%s2983_s27 + $0x7a] sm:$0xff]  ;;  %v1309_v16 = vld [vmem:[%s2983_s27 + $0xca] sm:$0xff] }
  0x65   : > { %v1360_v58 = vpack.c.bf16 %v1301_v54, %v1300_v53  ;;  %v1303_v62 = vld [vmem:[%s2983_s27 + $0x82] sm:$0xff]  ;;  %v1310_v8 = vld [vmem:[%s2983_s27 + $0xda] sm:$0xff] }
  0x66   : > { %2620 = vmatpush3.bf16.msra.mxu1 %v2670_v33  ;;  %2475 = vmatpush3.bf16.msra.mxu0 %v2670_v33  ;;  %v2687_v33 = vld [vmem:[%s2811_s15 + $0x80] sm:$0xff]   ;;  %v1361_v5 = vpack.c.bf16 %v1303_v62, %v1302_v61 }
  0x67   : > { %2613 = vmatprep.subr.bf16.mxu1 %v2671_v34  ;;  %2476 = vmatprep.subr.bf16.mxu0 %v2671_v34  ;;  %v1308_v15 = vld [vmem:[%s2983_s27 + $0xc2] sm:$0xff]  ;;  %v1313_v26 = vld [vmem:[%s2983_s27 + $0xfa] sm:$0xff] }
  0x68   : > { %v941_v21 = vld [vmem:[%s2983_s27 + $0xe1] sm:$0xff] }
  0x69   : > { %v1311_v22 = vld [vmem:[%s2983_s27 + $0xe2] sm:$0xff] }
  0x6a   : > { %2621 = vmatpush3.bf16.msra.mxu1 %v2671_v34  ;;  %2477 = vmatpush3.bf16.msra.mxu0 %v2671_v34  ;;  %v1356_v34 = vpack.c.bf16 %v1293_v30, %v1292_v29  ;;  %v1366_v30 = vpack.c.bf16 %v1313_v26, %v1312_v25  ;;  %v587_v25 = vld [vmem:[#allocation3 + $0xd8] sm:$0xff] }
  0x6b   : > { %2510 = vmatprep.subr.bf16.mxu1 %v2672_v37  ;;  %2558 = vmatprep.subr.bf16.mxu0 %v2674_v40 }
  0x6d   : > { %2495 = vmatmul.mubr.bf16.vlgmr.msra.gmra.mxu1 %v626_v43  ;;  %2479 = vmatmul.mubr.bf16.vlgmr.msra.gmra.mxu0 %v618_v44  ;;  %v987_v43 = vpack.c.bf16 %v925_v36, %v924_v35  ;;  %v946_v35 = vld [vmem:[%s2983_s27 + $0x121] sm:$0xff]  ;;  %v947_v36 = vld [vmem:[%s2983_s27 + $0x129] sm:$0xff] }
  0x6e   : > { %2511 = vmatpush3.bf16.msra.mxu1 %v2672_v37  ;;  %2559 = vmatpush3.bf16.msra.mxu0 %v2674_v40  ;;  %v1294_v37 = vld [vmem:[%s2983_s27 + $0x1a] sm:$0xff]  ;;  %v998_v41 = vpack.c.bf16 %v947_v36, %v946_v35 }
  0x6f   : > { %2512 = vmatprep.subr.bf16.mxu1 %v2673_v47  ;;  %2498 = vmatprep.mubr.bf16.mxu1 %v627_v48  ;;  %v927_v40 = vld [vmem:[%s2983_s27 + $0x39] sm:$0xff]  ;;  %v1357_v44 = vpack.c.bf16 %v1295_v38, %v1294_v37  ;;  %v929_v48 = vld [vmem:[%s2983_s27 + $0x51] sm:$0xff]  ;;  %v1316_v37 = vld [vmem:[%s2983_s27 + $0x122] sm:$0xff] }
  0x70   : > { %2560 = vmatprep.subr.bf16.mxu0 %v2676_v49  ;;  %2482 = vmatprep.mubr.bf16.mxu0 %v619_v50  ;;  %v988_v45 = vpack.c.bf16 %v927_v40, %v926_v39  ;;  %v1299_v50 = vld [vmem:[%s2983_s27 + $0x52] sm:$0xff]  ;;  %v1317_v38 = vld [vmem:[%s2983_s27 + $0x12a] sm:$0xff] }
  0x71   : > { %v1368_v42 = vpack.c.bf16 %v1317_v38, %v1316_v37  ;;  %v586_v37 = vld [vmem:[#allocation3] sm:$0xff] }
  0x72   : > { %2513 = vmatpush3.bf16.msra.mxu1 %v2673_v47  ;;  %2561 = vmatpush3.bf16.msra.mxu0 %v2676_v49  ;;  %v928_v47 = vld [vmem:[%s2983_s27 + $0x49] sm:$0xff] }
  0x73   : > { %2514 = vmatprep.subr.bf16.mxu1 %v2675_v55  ;;  %2562 = vmatprep.subr.bf16.mxu0 %v2678_v56  ;;  %v1298_v49 = vld [vmem:[%s2983_s27 + $0x4a] sm:$0xff] }
  0x75   : > { %2499 = vmatmul.mubr.bf16.gmra.mxu1 %v628_v59  ;;  %2483 = vmatmul.mubr.bf16.gmra.mxu0 %v620_v60  ;;  %v932_v59 = vld [vmem:[%s2983_s27 + $0x79] sm:$0xff]  ;;  %v933_v60 = vld [vmem:[%s2983_s27 + $0x81] sm:$0xff] }
  0x76   : > { %2515 = vmatpush3.bf16.msra.mxu1 %v2675_v55  ;;  %2563 = vmatpush3.bf16.msra.mxu0 %v2678_v56  ;;  %v989_v55 = vpack.c.bf16 %v929_v48, %v928_v47  ;;  %v1359_v56 = vpack.c.bf16 %v1299_v50, %v1298_v49  ;;  %v991_v4 = vpack.c.bf16 %v933_v60, %v932_v59  ;;  %v950_v47 = vld [vmem:[%s2983_s27 + $0x151] sm:$0xff]  ;;  %v951_v48 = vld [vmem:[%s2983_s27 + $0x159] sm:$0xff] }
  0x77   : > { %2516 = vmatprep.subr.bf16.mxu1 %v2677_v63  ;;  %2502 = vmatprep.mubr.bf16.mxu1 %v629_v0  ;;  %v935_v0 = vld [vmem:[%s2983_s27 + $0x99] sm:$0xff]  ;;  %v1000_v53 = vpack.c.bf16 %v951_v48, %v950_v47 }
  0x78   : > { %2564 = vmatprep.subr.bf16.mxu0 %v2680_v2  ;;  %2486 = vmatprep.mubr.bf16.mxu0 %v621_v3  ;;  %v1305_v3 = vld [vmem:[%s2983_s27 + $0x9a] sm:$0xff]  ;;  %v1320_v49 = vld [vmem:[%s2983_s27 + $0x152] sm:$0xff] }
  0x79   : > { %v1321_v50 = vld [vmem:[%s2983_s27 + $0x15a] sm:$0xff] }
  0x7a   : > { %2517 = vmatpush3.bf16.msra.mxu1 %v2677_v63  ;;  %2565 = vmatpush3.bf16.msra.mxu0 %v2680_v2  ;;  %v934_v63 = vld [vmem:[%s2983_s27 + $0x91] sm:$0xff]  ;;  %v1370_v54 = vpack.c.bf16 %v1321_v50, %v1320_v49  ;;  %v589_v49 = vld [vmem:[#allocation3 + $0x50] sm:$0xff] }
  0x7b   : > { %2518 = vmatprep.subr.bf16.mxu1 %v2679_v9  ;;  %2566 = vmatprep.subr.bf16.mxu0 %v2682_v10  ;;  %v1304_v2 = vld [vmem:[%s2983_s27 + $0x92] sm:$0xff]  ;;  %v992_v6 = vpack.c.bf16 %v935_v0, %v934_v63 }
  0x7c   : > { %v1362_v7 = vpack.c.bf16 %v1305_v3, %v1304_v2 }
  0x7d   : > { %2503 = vmatmul.mubr.bf16.gmra.mxu1 %v630_v13  ;;  %2487 = vmatmul.mubr.bf16.gmra.mxu0 %v622_v14  ;;  %v938_v13 = vld [vmem:[%s2983_s27 + $0xc1] sm:$0xff]  ;;  %v939_v14 = vld [vmem:[%s2983_s27 + $0xc9] sm:$0xff] }
  0x7e   : > { %2519 = vmatpush3.bf16.msra.mxu1 %v2679_v9  ;;  %2567 = vmatpush3.bf16.msra.mxu0 %v2682_v10  ;;  %v936_v9 = vld [vmem:[%s2983_s27 + $0xa9] sm:$0xff]  ;;  %v937_v10 = vld [vmem:[%s2983_s27 + $0xb1] sm:$0xff] }
  0x7f   : > { %2520 = vmatprep.subr.bf16.mxu1 %v2681_v17  ;;  %2506 = vmatprep.mubr.bf16.mxu1 %v631_v18  ;;  %v1363_v18 = vpack.c.bf16 %v1307_v12, %v1306_v11 }
  0x80   : > { %2568 = vmatprep.subr.bf16.mxu0 %v2684_v19  ;;  %2490 = vmatprep.mubr.bf16.mxu0 %v623_v20  ;;  %v1364_v20 = vpack.c.bf16 %v1309_v16, %v1308_v15 }
  0x82   : > { %2521 = vmatpush3.bf16.msra.mxu1 %v2681_v17  ;;  %2569 = vmatpush3.bf16.msra.mxu0 %v2684_v19  ;;  %v993_v17 = vpack.c.bf16 %v937_v10, %v936_v9  ;;  %v994_v19 = vpack.c.bf16 %v939_v14, %v938_v13 }
  0x83   : > { %2522 = vmatprep.subr.bf16.mxu1 %v2683_v23  ;;  %2570 = vmatprep.subr.bf16.mxu0 %v2686_v24 }
  0x85   : > { %2507 = vmatmul.mubr.bf16.gmra.mxu1 %v632_v27  ;;  %2491 = vmatmul.mubr.bf16.gmra.mxu0 %v624_v28  ;;  %v995_v27 = vpack.c.bf16 %v941_v21, %v940_v1  ;;  %v1365_v28 = vpack.c.bf16 %v1311_v22, %v1310_v8 }
  0x86   : > { %2523 = vmatpush3.bf16.msra.mxu1 %v2683_v23  ;;  %2571 = vmatpush3.bf16.msra.mxu0 %v2686_v24  ;;  %v942_v23 = vld [vmem:[%s2983_s27 + $0xf1] sm:$0xff]  ;;  %v943_v24 = vld [vmem:[%s2983_s27 + $0xf9] sm:$0xff] }
  0x87   : > { %2524 = vmatprep.subr.bf16.mxu1 %v2685_v31  ;;  %2526 = vmatprep.mubr.bf16.mxu1 %v986_v32  ;;  %v996_v29 = vpack.c.bf16 %v943_v24, %v942_v23  ;;  %v945_v32 = vld [vmem:[%s2983_s27 + $0x111] sm:$0xff] }
  0x88   : > { %2572 = vmatprep.subr.bf16.mxu0 %v2687_v33  ;;  %2574 = vmatprep.mubr.bf16.mxu0 %v1356_v34  ;;  %v1315_v34 = vld [vmem:[%s2983_s27 + $0x112] sm:$0xff] }
  0x8a   : > { %2525 = vmatpush3.bf16.msra.mxu1 %v2685_v31  ;;  %2573 = vmatpush3.bf16.msra.mxu0 %v2687_v33  ;;  %v944_v31 = vld [vmem:[%s2983_s27 + $0x109] sm:$0xff] }
  0x8b   : > { %v1314_v33 = vld [vmem:[%s2983_s27 + $0x10a] sm:$0xff]  ;;  %v997_v39 = vpack.c.bf16 %v945_v32, %v944_v31 }
  0x8c   : > { %v1367_v40 = vpack.c.bf16 %v1315_v34, %v1314_v33  ;;  %v588_v32 = vld [vmem:[#allocation3 + $0x18] sm:$0xff] }
  0x8d   : > { %2527 = vmatmul.mubr.bf16.vlgmr.msra.gmra.mxu1 %v987_v43  ;;  %2575 = vmatmul.mubr.bf16.vlgmr.msra.gmra.mxu0 %v1357_v44  ;;  %v948_v43 = vld [vmem:[%s2983_s27 + $0x139] sm:$0xff]  ;;  %v949_v44 = vld [vmem:[%s2983_s27 + $0x141] sm:$0xff] }
  0x8e   : > { %2530 = vmatprep.mubr.bf16.mxu1 %v988_v45  ;;  %2578 = vmatprep.mubr.bf16.mxu0 %v1358_v46  ;;  %v1318_v45 = vld [vmem:[%s2983_s27 + $0x13a] sm:$0xff]  ;;  %v1319_v46 = vld [vmem:[%s2983_s27 + $0x142] sm:$0xff]  ;;  %v999_v51 = vpack.c.bf16 %v949_v44, %v948_v43 }
  0x8f   : > { %v1369_v52 = vpack.c.bf16 %v1319_v46, %v1318_v45  ;;  %v591_v43 = vld [vmem:[#allocation3 + $0x30] sm:$0xff] }
  0x95   : > { %2531 = vmatmul.mubr.bf16.gmra.mxu1 %v989_v55  ;;  %2579 = vmatmul.mubr.bf16.gmra.mxu0 %v1359_v56  ;;  %v952_v55 = vld [vmem:[%s2983_s27 + $0x169] sm:$0xff]  ;;  %v953_v56 = vld [vmem:[%s2983_s27 + $0x171] sm:$0xff] }
  0x96   : > { %2534 = vmatprep.mubr.bf16.mxu1 %v990_v57  ;;  %2582 = vmatprep.mubr.bf16.mxu0 %v1360_v58  ;;  %v1322_v57 = vld [vmem:[%s2983_s27 + $0x16a] sm:$0xff]  ;;  %v1323_v58 = vld [vmem:[%s2983_s27 + $0x172] sm:$0xff]  ;;  %v1001_v59 = vpack.c.bf16 %v953_v56, %v952_v55 }
  0x97   : > { %v1371_v60 = vpack.c.bf16 %v1323_v58, %v1322_v57  ;;  %v592_v55 = vld [vmem:[#allocation3 + $0x48] sm:$0xff] }
  0x9d   : > { %2535 = vmatmul.mubr.bf16.gmra.mxu1 %v991_v4  ;;  %2583 = vmatmul.mubr.bf16.gmra.mxu0 %v1361_v5 }
  0x9e   : > { %2538 = vmatprep.mubr.bf16.mxu1 %v992_v6  ;;  %2586 = vmatprep.mubr.bf16.mxu0 %v1362_v7 }
  0xa5   : > { %2539 = vmatmul.mubr.bf16.gmra.mxu1 %v993_v17  ;;  %2587 = vmatmul.mubr.bf16.gmra.mxu0 %v1363_v18 }
  0xa6   : > { %2542 = vmatprep.mubr.bf16.mxu1 %v994_v19  ;;  %2590 = vmatprep.mubr.bf16.mxu0 %v1364_v20 }
  0xad   : > { %2543 = vmatmul.mubr.bf16.gmra.mxu1 %v995_v27  ;;  %2591 = vmatmul.mubr.bf16.gmra.mxu0 %v1365_v28  ;;  %v585_v28 = vld [vmem:[#allocation3 + $0xb0] sm:$0xff] }
  0xae   : > { %2546 = vmatprep.mubr.bf16.mxu1 %v996_v29  ;;  %2594 = vmatprep.mubr.bf16.mxu0 %v1366_v30 }
  0xb5   : > { %2547 = vmatmul.mubr.bf16.gmra.mxu1 %v997_v39  ;;  %2595 = vmatmul.mubr.bf16.gmra.mxu0 %v1367_v40 }
  0xb6   : > { %2550 = vmatprep.mubr.bf16.mxu1 %v998_v41  ;;  %2598 = vmatprep.mubr.bf16.mxu0 %v1368_v42 }
  0xbd   : > { %2551 = vmatmul.mubr.bf16.gmra.mxu1 %v999_v51  ;;  %2599 = vmatmul.mubr.bf16.gmra.mxu0 %v1369_v52 }
  0xbe   : > { %2554 = vmatprep.mubr.bf16.mxu1 %v1000_v53  ;;  %2602 = vmatprep.mubr.bf16.mxu0 %v1370_v54 }
  0xc5   : > { %2555 = vmatmul.mubr.bf16.gmra.mxu1 %v1001_v59  ;;  %2603 = vmatmul.mubr.bf16.gmra.mxu0 %v1371_v60 }
 0x12d   : > { %v3101_v61 = vpop.f32.mrf.mxu1  ;;  %v2480_v62 = vpop.f32.mrf.mxu0 }
 0x12e   : > { %v860_v31 = vadd.f32 %v2480_v62, %v587_v25  ;;  %v590_v62 = vld [vmem:[#allocation3 + $0x68] sm:$0xff] }
 0x12f   : > { %v3103_v63 = vpop.f32.mrf.mxu1  ;;  %v731_v0 = vpop.f32.mrf.mxu0 }
 0x130   : > { %v858_v35 = vadd.f32 %v731_v0, %v585_v28 }
 0x131   : > { %v3105_v2 = vpop.f32.mrf.mxu1  ;;  %v2481_v3 = vpop.f32.mrf.mxu0 }
 0x132   : > { %v861_v40 = vadd.f32 %v2481_v3, %v588_v32 }
 0x133   : > { %v3107_v4 = vpop.f32.mrf.mxu1  ;;  %v734_v5 = vpop.f32.mrf.mxu0 }
 0x134   : > { %v859_v46 = vadd.f32 %v734_v5, %v586_v37 }
 0x135   : > { %v3109_v6 = vpop.f32.mrf.mxu1  ;;  %v2484_v7 = vpop.f32.mrf.mxu0 }
 0x136   : > { %v864_v52 = vadd.f32 %v2484_v7, %v591_v43 }
 0x137   : > { %v3111_v9 = vpop.f32.mrf.mxu1  ;;  %v747_v10 = vpop.f32.mrf.mxu0 }
 0x138   : > { %v862_v58 = vadd.f32 %v747_v10, %v589_v49 }
 0x139   : > { %v3113_v11 = vpop.f32.mrf.mxu1  ;;  %v2485_v12 = vpop.f32.mrf.mxu0 }
 0x13a   : > { %v865_v5 = vadd.f32 %v2485_v12, %v592_v55 }
 0x13b   : > { %v3115_v13 = vpop.f32.mrf.mxu1  ;;  %v750_v14 = vpop.f32.mrf.mxu0 }
 0x13d   : > { %v3117_v15 = vpop.f32.mrf.mxu1  ;;  %v3119_v16 = vpop.f32.mrf.mxu0 }
 0x13f   : > { %v3121_v17 = vpop.f32.mrf.mxu1  ;;  %v3123_v18 = vpop.f32.mrf.mxu0 }
 0x141   : > { %v3125_v19 = vpop.f32.mrf.mxu1  ;;  %v3127_v20 = vpop.f32.mrf.mxu0 }
 0x143   : > { %v3129_v1 = vpop.f32.mrf.mxu1  ;;  %v3131_v21 = vpop.f32.mrf.mxu0 }
 0x145   : > { %v3133_v8 = vpop.f32.mrf.mxu1  ;;  %v3135_v22 = vpop.f32.mrf.mxu0 }
 0x147   : > { %v3137_v23 = vpop.f32.mrf.mxu1  ;;  %v3139_v24 = vpop.f32.mrf.mxu0 }
 0x149   : > { %v3141_v26 = vpop.f32.mrf.mxu1  ;;  %v3143_v27 = vpop.f32.mrf.mxu0 }
 0x14b   : > { %v3145_v29 = vpop.f32.mrf.mxu1  ;;  %v3147_v30 = vpop.f32.mrf.mxu0 }
 0x14d   : > { %v2528_v33 = vpop.f32.mrf.mxu1  ;;  %v2576_v34 = vpop.f32.mrf.mxu0 }
 0x14e   : > { %v1230_v36 = vadd.f32 %v2528_v33, %v860_v31  ;;  %v595_v31 = vld [vmem:[#allocation3 + $0xe8] sm:$0xff]  ;;  %v863_v33 = vadd.f32 %v750_v14, %v590_v62 }
 0x14f   : > { %v1101_v38 = vpop.f32.mrf.mxu1  ;;  %v1471_v39 = vpop.f32.mrf.mxu0  ;;  %v594_v14 = vld [vmem:[#allocation3 + $0x88] sm:$0xff] }
 0x150   : > { %v1228_v41 = vadd.f32 %v1101_v38, %v858_v35  ;;  %v1600_v42 = vadd.f32 %v2576_v34, %v1230_v36  ;;  %v593_v36 = vld [vmem:[#allocation3 + $0x80] sm:$0xff]  ;;  %v868_v38 = vadd.f32 %v3119_v16, %v595_v31  ;;  %v599_v16 = vld [vmem:[#allocation3 + $0x8] sm:$0xff] }
 0x151   : > { %v2529_v44 = vpop.f32.mrf.mxu1  ;;  %v2577_v45 = vpop.f32.mrf.mxu0  ;;  %v866_v43 = vadd.f32 %v3123_v18, %v593_v36  ;;  %v597_v18 = vld [vmem:[#allocation3 + $0x60] sm:$0xff] }
 0x152   : > { %v1231_v47 = vadd.f32 %v2529_v44, %v861_v40  ;;  %1632 = vst [vmem:[#allocation3 + $0xd8] sm:$0xff] %v1600_v42  ;;  %v1598_v48 = vadd.f32 %v1471_v39, %v1228_v41  ;;  %v596_v41 = vld [vmem:[#allocation3 + $0xb8] sm:$0xff] }
 0x153   : > { %v1104_v50 = vpop.f32.mrf.mxu1  ;;  %v1474_v51 = vpop.f32.mrf.mxu0 }
 0x154   : > { %v1229_v53 = vadd.f32 %v1104_v50, %v859_v46  ;;  %1630 = vst [vmem:[#allocation3 + $0xb0] sm:$0xff] %v1598_v48  ;;  %v1601_v54 = vadd.f32 %v2577_v45, %v1231_v47  ;;  %v869_v48 = vadd.f32 %v3127_v20, %v596_v41  ;;  %v600_v20 = vld [vmem:[#allocation3 + $0x78] sm:$0xff] }
 0x155   : > { %v2532_v56 = vpop.f32.mrf.mxu1  ;;  %v2580_v57 = vpop.f32.mrf.mxu0 }
 0x156   : > { %v1234_v59 = vadd.f32 %v2532_v56, %v864_v52  ;;  %1633 = vst [vmem:[#allocation3 + $0x18] sm:$0xff] %v1601_v54  ;;  %v1599_v60 = vadd.f32 %v1474_v51, %v1229_v53  ;;  %v867_v53 = vadd.f32 %v3131_v21, %v594_v14  ;;  %v598_v21 = vld [vmem:[#allocation3 + $0xf0] sm:$0xff] }
 0x157   : > { %v1117_v0 = vpop.f32.mrf.mxu1  ;;  %v1487_v3 = vpop.f32.mrf.mxu0  ;;  %v871_v36 = vadd.f32 %v3147_v30, %v598_v21  ;;  %v602_v30 = vld [vmem:[#allocation3 + $0x58] sm:$0xff] }
 0x158   : > { %v1232_v25 = vadd.f32 %v1117_v0, %v862_v58  ;;  %1631 = vst [vmem:[#allocation3] sm:$0xff] %v1599_v60  ;;  %v1604_v28 = vadd.f32 %v2580_v57, %v1234_v59  ;;  %v872_v58 = vadd.f32 %v3135_v22, %v599_v16  ;;  %v603_v22 = vld [vmem:[#allocation3 + $0x40] sm:$0xff] }
 0x159   : > { %v2533_v32 = vpop.f32.mrf.mxu1  ;;  %v2581_v7 = vpop.f32.mrf.mxu0 }
 0x15a   : > { %v1235_v34 = vadd.f32 %v2533_v32, %v865_v5  ;;  %1636 = vst [vmem:[#allocation3 + $0x30] sm:$0xff] %v1604_v28  ;;  %v1602_v35 = vadd.f32 %v1487_v3, %v1232_v25  ;;  %v870_v3 = vadd.f32 %v3139_v24, %v597_v18  ;;  %v873_v32 = vadd.f32 %v3143_v27, %v600_v20  ;;  %v601_v24 = vld [vmem:[#allocation3 + $0x38] sm:$0xff]  ;;  %v604_v27 = vld [vmem:[#allocation3 + $0xc8] sm:$0xff] }
 0x15b   : > { %v1120_v37 = vpop.f32.mrf.mxu1  ;;  %v1490_v10 = vpop.f32.mrf.mxu0 }
 0x15c   : > { %v1233_v39 = vadd.f32 %v1120_v37, %v863_v33  ;;  %1634 = vst [vmem:[#allocation3 + $0x50] sm:$0xff] %v1602_v35  ;;  %v1605_v40 = vadd.f32 %v2581_v7, %v1235_v34 }
 0x15d   : > { %v2536_v12 = vpop.f32.mrf.mxu1  ;;  %v2584_v42 = vpop.f32.mrf.mxu0 }
 0x15e   : > { %v1238_v44 = vadd.f32 %v2536_v12, %v868_v38  ;;  %1637 = vst [vmem:[#allocation3 + $0x48] sm:$0xff] %v1605_v40  ;;  %v1603_v45 = vadd.f32 %v1490_v10, %v1233_v39  ;;  %v876_v40 = vadd.f32 %v3101_v61, %v603_v22  ;;  %v607_v61 = vld [vmem:[#allocation3 + $0x70] sm:$0xff] }
 0x15f   : > { %v1133_v46 = vpop.f32.mrf.mxu1  ;;  %v1503_v47 = vpop.f32.mrf.mxu0 }
 0x160   : > { %v1236_v49 = vadd.f32 %v1133_v46, %v866_v43  ;;  %1635 = vst [vmem:[#allocation3 + $0x68] sm:$0xff] %v1603_v45  ;;  %v1608_v50 = vadd.f32 %v2584_v42, %v1238_v44  ;;  %v874_v44 = vadd.f32 %v3103_v63, %v601_v24  ;;  %v605_v63 = vld [vmem:[#allocation3 + $0xe0] sm:$0xff] }
 0x161   : > { %v2537_v51 = vpop.f32.mrf.mxu1  ;;  %v2585_v52 = vpop.f32.mrf.mxu0  ;;  %v878_v20 = vadd.f32 %v3111_v9, %v605_v63  ;;  %v609_v9 = vld [vmem:[#allocation3 + $0xa8] sm:$0xff] }
 0x162   : > { %v1239_v54 = vadd.f32 %v2537_v51, %v869_v48  ;;  %1640 = vst [vmem:[#allocation3 + $0xe8] sm:$0xff] %v1608_v50  ;;  %v1606_v55 = vadd.f32 %v1503_v47, %v1236_v49  ;;  %v877_v48 = vadd.f32 %v3105_v2, %v604_v27  ;;  %v608_v2 = vld [vmem:[#allocation3 + $0xc0] sm:$0xff] }
 0x163   : > { %v1136_v56 = vpop.f32.mrf.mxu1  ;;  %v1506_v57 = vpop.f32.mrf.mxu0 }
 0x164   : > { %v1237_v59 = vadd.f32 %v1136_v56, %v867_v53  ;;  %1638 = vst [vmem:[#allocation3 + $0x80] sm:$0xff] %v1606_v55  ;;  %v1609_v60 = vadd.f32 %v2585_v52, %v1239_v54  ;;  %v875_v52 = vadd.f32 %v3107_v4, %v602_v30  ;;  %v880_v56 = vadd.f32 %v3109_v6, %v607_v61  ;;  %v606_v4 = vld [vmem:[#allocation3 + $0x90] sm:$0xff] }
 0x165   : > { %v2540_v62 = vpop.f32.mrf.mxu1  ;;  %v2588_v0 = vpop.f32.mrf.mxu0  ;;  %v611_v6 = vld [vmem:[#allocation3 + $0x10] sm:$0xff] }
 0x166   : > { %v1242_v5 = vadd.f32 %v2540_v62, %v872_v58  ;;  %1641 = vst [vmem:[#allocation3 + $0xb8] sm:$0xff] %v1609_v60  ;;  %v1607_v25 = vadd.f32 %v1506_v57, %v1237_v59 }
 0x167   : > { %v1149_v28 = vpop.f32.mrf.mxu1  ;;  %v1519_v31 = vpop.f32.mrf.mxu0 }
 0x168   : > { %v1240_v7 = vadd.f32 %v1149_v28, %v870_v3  ;;  %1639 = vst [vmem:[#allocation3 + $0x88] sm:$0xff] %v1607_v25  ;;  %v1612_v33 = vadd.f32 %v2588_v0, %v1242_v5  ;;  %v881_v25 = vadd.f32 %v3113_v11, %v608_v2  ;;  %v612_v11 = vld [vmem:[#allocation3 + $0x28] sm:$0xff] }
 0x169   : > { %v2541_v34 = vpop.f32.mrf.mxu1  ;;  %v2589_v35 = vpop.f32.mrf.mxu0 }
 0x16a   : > { %v1243_v37 = vadd.f32 %v2541_v34, %v873_v32  ;;  %1644 = vst [vmem:[#allocation3 + $0x8] sm:$0xff] %v1612_v33  ;;  %v1610_v10 = vadd.f32 %v1519_v31, %v1240_v7  ;;  %v879_v7 = vadd.f32 %v3115_v13, %v606_v4  ;;  %v610_v13 = vld [vmem:[#allocation3 + $0xd0] sm:$0xff] }
 0x16b   : > { %v1152_v38 = vpop.f32.mrf.mxu1  ;;  %v1522_v39 = vpop.f32.mrf.mxu0  ;;  %v883_v30 = vadd.f32 %v3129_v1, %v610_v13  ;;  %v614_v1 = vld [vmem:[#allocation3 + $0xf8] sm:$0xff] }
 0x16c   : > { %v1241_v41 = vadd.f32 %v1152_v38, %v871_v36  ;;  %1642 = vst [vmem:[#allocation3 + $0x60] sm:$0xff] %v1610_v10  ;;  %v1613_v12 = vadd.f32 %v2589_v35, %v1243_v37  ;;  %v884_v36 = vadd.f32 %v3117_v15, %v611_v6  ;;  %v615_v15 = vld [vmem:[#allocation3 + $0x20] sm:$0xff] }
 0x16d   : > { %v2544_v42 = vpop.f32.mrf.mxu1  ;;  %v2592_v43 = vpop.f32.mrf.mxu0 }
 0x16e   : > { %v1246_v45 = vadd.f32 %v2544_v42, %v876_v40  ;;  %1645 = vst [vmem:[#allocation3 + $0x78] sm:$0xff] %v1613_v12  ;;  %v1611_v14 = vadd.f32 %v1522_v39, %v1241_v41  ;;  %v882_v39 = vadd.f32 %v3121_v17, %v609_v9  ;;  %v885_v42 = vadd.f32 %v3125_v19, %v612_v11  ;;  %v613_v17 = vld [vmem:[#allocation3 + $0xa0] sm:$0xff]  ;;  %v616_v19 = vld [vmem:[#allocation3 + $0x98] sm:$0xff] }
 0x16f   : > { %v1165_v46 = vpop.f32.mrf.mxu1  ;;  %v1535_v47 = vpop.f32.mrf.mxu0 }
 0x170   : > { %v1244_v49 = vadd.f32 %v1165_v46, %v874_v44  ;;  %1643 = vst [vmem:[#allocation3 + $0xf0] sm:$0xff] %v1611_v14  ;;  %v1616_v50 = vadd.f32 %v2592_v43, %v1246_v45 }
 0x171   : > { %v2545_v16 = vpop.f32.mrf.mxu1  ;;  %v2593_v51 = vpop.f32.mrf.mxu0 }
 0x172   : > { %v1247_v53 = vadd.f32 %v2545_v16, %v877_v48  ;;  %1648 = vst [vmem:[#allocation3 + $0x40] sm:$0xff] %v1616_v50  ;;  %v1614_v54 = vadd.f32 %v1535_v47, %v1244_v49  ;;  %v888_v50 = vadd.f32 %v3133_v8, %v615_v15 }
 0x173   : > { %v1168_v55 = vpop.f32.mrf.mxu1  ;;  %v1538_v18 = vpop.f32.mrf.mxu0 }
 0x174   : > { %v1245_v57 = vadd.f32 %v1168_v55, %v875_v52  ;;  %1646 = vst [vmem:[#allocation3 + $0x38] sm:$0xff] %v1614_v54  ;;  %v1617_v58 = vadd.f32 %v2593_v51, %v1247_v53  ;;  %v886_v53 = vadd.f32 %v3137_v23, %v613_v17 }
 0x175   : > { %v2548_v59 = vpop.f32.mrf.mxu1  ;;  %v2596_v60 = vpop.f32.mrf.mxu0 }
 0x176   : > { %v1250_v62 = vadd.f32 %v2548_v59, %v880_v56  ;;  %1649 = vst [vmem:[#allocation3 + $0xc8] sm:$0xff] %v1617_v58  ;;  %v1615_v0 = vadd.f32 %v1538_v18, %v1245_v57  ;;  %v889_v56 = vadd.f32 %v3141_v26, %v616_v19  ;;  %v887_v59 = vadd.f32 %v3145_v29, %v614_v1 }
 0x177   : > { %v1181_v3 = vpop.f32.mrf.mxu1  ;;  %v1551_v5 = vpop.f32.mrf.mxu0 }
 0x178   : > { %v1248_v21 = vadd.f32 %v1181_v3, %v878_v20  ;;  %1647 = vst [vmem:[#allocation3 + $0x58] sm:$0xff] %v1615_v0  ;;  %v1620_v28 = vadd.f32 %v2596_v60, %v1250_v62 }
 0x179   : > { %v2549_v31 = vpop.f32.mrf.mxu1  ;;  %v2597_v32 = vpop.f32.mrf.mxu0 }
 0x17a   : > { %v1251_v33 = vadd.f32 %v2549_v31, %v881_v25  ;;  %1652 = vst [vmem:[#allocation3 + $0x70] sm:$0xff] %v1620_v28  ;;  %v1618_v22 = vadd.f32 %v1551_v5, %v1248_v21 }
 0x17b   : > { %v1184_v34 = vpop.f32.mrf.mxu1  ;;  %v1554_v35 = vpop.f32.mrf.mxu0 }
 0x17c   : > { %v1249_v37 = vadd.f32 %v1184_v34, %v879_v7  ;;  %1650 = vst [vmem:[#allocation3 + $0xe0] sm:$0xff] %v1618_v22  ;;  %v1621_v10 = vadd.f32 %v2597_v32, %v1251_v33 }
 0x17d   : > { %v2552_v24 = vpop.f32.mrf.mxu1  ;;  %v2600_v38 = vpop.f32.mrf.mxu0 }
 0x17e   : > { %v1254_v40 = vadd.f32 %v2552_v24, %v884_v36  ;;  %1653 = vst [vmem:[#allocation3 + $0xc0] sm:$0xff] %v1621_v10  ;;  %v1619_v41 = vadd.f32 %v1554_v35, %v1249_v37 }
 0x17f   : > { %v1197_v12 = vpop.f32.mrf.mxu1  ;;  %v1567_v27 = vpop.f32.mrf.mxu0 }
 0x180   : > { %v1252_v43 = vadd.f32 %v1197_v12, %v882_v39  ;;  %1651 = vst [vmem:[#allocation3 + $0x90] sm:$0xff] %v1619_v41  ;;  %v1624_v44 = vadd.f32 %v2600_v38, %v1254_v40 }
 0x181   : > { %v2553_v45 = vpop.f32.mrf.mxu1  ;;  %v2601_v14 = vpop.f32.mrf.mxu0 }
 0x182   : > { %v1255_v46 = vadd.f32 %v2553_v45, %v885_v42  ;;  %1656 = vst [vmem:[#allocation3 + $0x10] sm:$0xff] %v1624_v44  ;;  %v1622_v47 = vadd.f32 %v1567_v27, %v1252_v43 }
 0x183   : > { %v1200_v48 = vpop.f32.mrf.mxu1  ;;  %v1570_v49 = vpop.f32.mrf.mxu0 }
 0x184   : > { %v1253_v61 = vadd.f32 %v1200_v48, %v883_v30  ;;  %1654 = vst [vmem:[#allocation3 + $0xa8] sm:$0xff] %v1622_v47  ;;  %v1625_v16 = vadd.f32 %v2601_v14, %v1255_v46 }
 0x185   : > { %v2556_v51 = vpop.f32.mrf.mxu1  ;;  %v2604_v52 = vpop.f32.mrf.mxu0 }
 0x186   : > { %v1258_v54 = vadd.f32 %v2556_v51, %v888_v50  ;;  %1657 = vst [vmem:[#allocation3 + $0x28] sm:$0xff] %v1625_v16  ;;  %v1623_v63 = vadd.f32 %v1570_v49, %v1253_v61 }
 0x187   : > { %v1213_v55 = vpop.f32.mrf.mxu1  ;;  %v1583_v18 = vpop.f32.mrf.mxu0 }
 0x188   : > { %v1256_v57 = vadd.f32 %v1213_v55, %v886_v53  ;;  %1655 = vst [vmem:[#allocation3 + $0xd0] sm:$0xff] %v1623_v63  ;;  %v1628_v58 = vadd.f32 %v2604_v52, %v1258_v54 }
 0x189   : > { %v2557_v8 = vpop.f32.mrf.mxu1  ;;  %v2605_v2 = vpop.f32.mrf.mxu0 }
 0x18a   : > { %v1259_v60 = vadd.f32 %v2557_v8, %v889_v56  ;;  %1660 = vst [vmem:[#allocation3 + $0x20] sm:$0xff] %v1628_v58  ;;  %v1626_v20 = vadd.f32 %v1583_v18, %v1256_v57 }
 0x18b   : > { %v1216_v62 = vpop.f32.mrf.mxu1  ;;  %v1586_v4 = vpop.f32.mrf.mxu0 }
 0x18c   : > { %v1257_v23 = vadd.f32 %v1216_v62, %v887_v59  ;;  %1658 = vst [vmem:[#allocation3 + $0xa0] sm:$0xff] %v1626_v20  ;;  %v1629_v0 = vadd.f32 %v2605_v2, %v1259_v60  ;;  %1665 = sbr.rel (%p2147_p8) target bundleno = 479 (0x1df), region = 44 }
 0x18e   : > { %1661 = vst [vmem:[#allocation3 + $0x98] sm:$0xff] %v1629_v0  ;;  %v1627_v3 = vadd.f32 %v1586_v4, %v1257_v23 }
 0x190   : > { %1659 = vst [vmem:[#allocation3 + $0xf8] sm:$0xff] %v1627_v3 }
 0x191   : > { %v1666_v26 = vld [vmem:[#allocation3 + $0xb0] sm:$0xff]  ;;  %v1667_v5 = vld [vmem:[#allocation3] sm:$0xff]  ;;  %v1668_v25 = vld [vmem:[#allocation3 + $0xd8] sm:$0xff] }
 0x192   : > { %v2283_v21 = vpack.c.bf16 %v1667_v5, %v1666_v26  ;;  %v1858_v29 = vadd.f32 %v1667_v5, %v1666_v26  ;;  %v1896_v28 = vmul.f32 %v1666_v26, %v1666_v26  ;;  %v1897_v6 = vmul.f32 %v1667_v5, %v1667_v5  ;;  %v1669_v31 = vld [vmem:[#allocation3 + $0x18] sm:$0xff]  ;;  %v1670_v32 = vld [vmem:[#allocation3 + $0x50] sm:$0xff]  ;;  %v1671_v7 = vld [vmem:[#allocation3 + $0x68] sm:$0xff] }
 0x193   : > { %v2288_v33 = vpack.c.bf16 %v1669_v31, %v1668_v25  ;;  %v1898_v22 = vmul.f32 %v1668_v25, %v1668_v25  ;;  %v2293_v9 = vpack.c.bf16 %v1671_v7, %v1670_v32  ;;  %v1672_v34 = vld [vmem:[#allocation3 + $0x30] sm:$0xff]  ;;  %v1899_v37 = vmul.f32 %v1669_v31, %v1669_v31  ;;  %v1673_v10 = vld [vmem:[#allocation3 + $0x48] sm:$0xff]  ;;  %v1674_v11 = vld [vmem:[#allocation3 + $0x80] sm:$0xff] }
 0x194   : > { %2284 = vst [vmem:[%s2801_s9] sm:$0xff] %v2283_v21   ;;  %v1928_v35 = vadd.f32 %v1897_v6, %v1896_v28  ;;  %v1859_v36 = vadd.f32 %v1858_v29, %v1668_v25  ;;  %v3175_v24 = vld [vmem:[#allocation3 + $0x88] sm:$0xff]  ;;  %v2298_v38 = vpack.c.bf16 %v1673_v10, %v1672_v34  ;;  %v1900_v12 = vmul.f32 %v1670_v32, %v1670_v32  ;;  %v3182_v27 = vld [vmem:[#allocation3 + $0xb8] sm:$0xff]  ;;  %v3184_v42 = vld [vmem:[#allocation3 + $0x60] sm:$0xff] }
 0x195   : > { %2375 = vst [vmem:[%s2801_s9 + $0x8] sm:$0xff] %v2288_v33   ;;  %2376 = vst [vmem:[%s2801_s9 + $0x10] sm:$0xff] %v2293_v9   ;;  %v2303_v39 = vpack.c.bf16 %v3175_v24, %v1674_v11  ;;  %v3180_v40 = vld [vmem:[#allocation3 + $0xe8] sm:$0xff]  ;;  %v3186_v43 = vld [vmem:[#allocation3 + $0xf0] sm:$0xff]  ;;  %v1901_v46 = vmul.f32 %v1671_v7, %v1671_v7  ;;  %v1902_v51 = vmul.f32 %v1672_v34, %v1672_v34 }
 0x196   : > { %v1860_v41 = vadd.f32 %v1859_v36, %v1669_v31  ;;  %v1929_v13 = vadd.f32 %v1928_v35, %v1898_v22  ;;  %2377 = vst [vmem:[%s2801_s9 + $0x18] sm:$0xff] %v2298_v38   ;;  %v2308_v44 = vpack.c.bf16 %v3182_v27, %v3180_v40  ;;  %v2313_v15 = vpack.c.bf16 %v3186_v43, %v3184_v42  ;;  %v3194_v45 = vld [vmem:[#allocation3 + $0x8] sm:$0xff]  ;;  %v3196_v47 = vld [vmem:[#allocation3 + $0x78] sm:$0xff]  ;;  %v3208_v61 = vld [vmem:[#allocation3 + $0x40] sm:$0xff] }
 0x197   : > { %2378 = vst [vmem:[%s2801_s9 + $0x20] sm:$0xff] %v2303_v39   ;;  %v3198_v17 = vld [vmem:[#allocation3 + $0x38] sm:$0xff]  ;;  %v2318_v49 = vpack.c.bf16 %v3196_v47, %v3194_v45  ;;  %v3210_v52 = vld [vmem:[#allocation3 + $0xc8] sm:$0xff]  ;;  %v3212_v53 = vld [vmem:[#allocation3 + $0xe0] sm:$0xff]  ;;  %v1903_v57 = vmul.f32 %v1673_v10, %v1673_v10  ;;  %v1904_v0 = vmul.f32 %v1674_v11, %v1674_v11  ;;  %v1905_v28 = vmul.f32 %v3175_v24, %v3175_v24 }
 0x198   : > { %v1930_v14 = vadd.f32 %v1929_v13, %v1899_v37  ;;  %v1861_v30 = vadd.f32 %v1860_v41, %v1670_v32  ;;  %v3200_v48 = vld [vmem:[#allocation3 + $0x58] sm:$0xff]  ;;  %2379 = vst [vmem:[%s2801_s9 + $0x28] sm:$0xff] %v2308_v44   ;;  %2380 = vst [vmem:[%s2801_s9 + $0x30] sm:$0xff] %v2313_v15   ;;  %v3214_v54 = vld [vmem:[#allocation3 + $0x90] sm:$0xff]  ;;  %v2328_v63 = vpack.c.bf16 %v3210_v52, %v3208_v61 }
 0x199   : > { %v2323_v50 = vpack.c.bf16 %v3200_v48, %v3198_v17  ;;  %2381 = vst [vmem:[%s2801_s9 + $0x38] sm:$0xff] %v2318_v49   ;;  %v2333_v1 = vpack.c.bf16 %v3214_v54, %v3212_v53  ;;  %v3222_v55 = vld [vmem:[#allocation3 + $0x70] sm:$0xff]  ;;  %v3224_v58 = vld [vmem:[#allocation3 + $0xc0] sm:$0xff]  ;;  %v3226_v8 = vld [vmem:[#allocation3 + $0xa8] sm:$0xff]  ;;  %v1906_v22 = vmul.f32 %v3180_v40, %v3180_v40  ;;  %v1907_v35 = vmul.f32 %v3182_v27, %v3182_v27 }
 0x19a   : > { %v1862_v16 = vadd.f32 %v1861_v30, %v1671_v7  ;;  %v1931_v19 = vadd.f32 %v1930_v14, %v1900_v12  ;;  %v3228_v2 = vld [vmem:[#allocation3 + $0xd0] sm:$0xff]  ;;  %2383 = vst [vmem:[%s2801_s9 + $0x48] sm:$0xff] %v2328_v63   ;;  %v2338_v59 = vpack.c.bf16 %v3224_v58, %v3222_v55  ;;  %v3238_v4 = vld [vmem:[#allocation3 + $0x28] sm:$0xff]  ;;  %v3240_v3 = vld [vmem:[#allocation3 + $0xa0] sm:$0xff]  ;;  %v1909_v38 = vmul.f32 %v3186_v43, %v3186_v43 }
 0x19b   : > { %2382 = vst [vmem:[%s2801_s9 + $0x40] sm:$0xff] %v2323_v50   ;;  %2384 = vst [vmem:[%s2801_s9 + $0x50] sm:$0xff] %v2333_v1   ;;  %v2343_v60 = vpack.c.bf16 %v3228_v2, %v3226_v8  ;;  %v3236_v20 = vld [vmem:[#allocation3 + $0x10] sm:$0xff]  ;;  %v3242_v26 = vld [vmem:[#allocation3 + $0xf8] sm:$0xff] }
 0x19c   : > { %v1932_v18 = vadd.f32 %v1931_v19, %v1901_v46  ;;  %v1863_v56 = vadd.f32 %v1862_v16, %v1672_v34  ;;  %2385 = vst [vmem:[%s2801_s9 + $0x58] sm:$0xff] %v2338_v59   ;;  %v2348_v5 = vpack.c.bf16 %v3238_v4, %v3236_v20  ;;  %v2353_v25 = vpack.c.bf16 %v3242_v26, %v3240_v3  ;;  %v3252_v6 = vld [vmem:[#allocation3 + $0x20] sm:$0xff]  ;;  %v3254_v31 = vld [vmem:[#allocation3 + $0x98] sm:$0xff] }
 0x19d   : > { %2386 = vst [vmem:[%s2801_s9 + $0x60] sm:$0xff] %v2343_v60   ;;  %v2358_v32 = vpack.c.bf16 %v3254_v31, %v3252_v6 }
 0x19e   : > { %v1864_v62 = vadd.f32 %v1863_v56, %v1673_v10  ;;  %v1933_v23 = vadd.f32 %v1932_v18, %v1902_v51  ;;  %2387 = vst [vmem:[%s2801_s9 + $0x68] sm:$0xff] %v2348_v5   ;;  %2388 = vst [vmem:[%s2801_s9 + $0x70] sm:$0xff] %v2353_v25   ;;  %v1908_v10 = vmul.f32 %v3184_v42, %v3184_v42 }
 0x19f   : > { %2389 = vst [vmem:[%s2801_s9 + $0x78] sm:$0xff] %v2358_v32  }
 0x1a0   : > { %v1934_v21 = vadd.f32 %v1933_v23, %v1903_v57  ;;  %v1865_v29 = vadd.f32 %v1864_v62, %v1674_v11 }
 0x1a2   : > { %v1866_v7 = vadd.f32 %v1865_v29, %v3175_v24  ;;  %v1935_v33 = vadd.f32 %v1934_v21, %v1904_v0 }
 0x1a4   : > { %v1936_v9 = vadd.f32 %v1935_v33, %v1905_v28  ;;  %v1867_v34 = vadd.f32 %v1866_v7, %v3180_v40  ;;  %v1910_v40 = vmul.f32 %v3194_v45, %v3194_v45 }
 0x1a6   : > { %v1868_v36 = vadd.f32 %v1867_v34, %v3182_v27  ;;  %v1937_v37 = vadd.f32 %v1936_v9, %v1906_v22  ;;  %v1911_v27 = vmul.f32 %v3196_v47, %v3196_v47 }
 0x1a8   : > { %v1938_v11 = vadd.f32 %v1937_v37, %v1907_v35  ;;  %v1869_v24 = vadd.f32 %v1868_v36, %v3184_v42  ;;  %v1912_v42 = vmul.f32 %v3198_v17, %v3198_v17 }
 0x1aa   : > { %v1870_v39 = vadd.f32 %v1869_v24, %v3186_v43  ;;  %v1939_v41 = vadd.f32 %v1938_v11, %v1908_v10  ;;  %v1913_v43 = vmul.f32 %v3200_v48, %v3200_v48 }
 0x1ac   : > { %v1940_v13 = vadd.f32 %v1939_v41, %v1909_v38  ;;  %v1871_v12 = vadd.f32 %v1870_v39, %v3194_v45  ;;  %v1914_v45 = vmul.f32 %v3208_v61, %v3208_v61 }
 0x1ae   : > { %v1872_v44 = vadd.f32 %v1871_v12, %v3196_v47  ;;  %v1941_v15 = vadd.f32 %v1940_v13, %v1910_v40  ;;  %v1915_v47 = vmul.f32 %v3210_v52, %v3210_v52 }
 0x1b0   : > { %v1942_v14 = vadd.f32 %v1941_v15, %v1911_v27  ;;  %v1873_v30 = vadd.f32 %v1872_v44, %v3198_v17  ;;  %v1916_v17 = vmul.f32 %v3212_v53, %v3212_v53 }
 0x1b2   : > { %v1874_v46 = vadd.f32 %v1873_v30, %v3200_v48  ;;  %v1943_v49 = vadd.f32 %v1942_v14, %v1912_v42  ;;  %v1917_v48 = vmul.f32 %v3214_v54, %v3214_v54 }
 0x1b4   : > { %v1944_v50 = vadd.f32 %v1943_v49, %v1913_v43  ;;  %v1875_v16 = vadd.f32 %v1874_v46, %v3208_v61  ;;  %v1918_v61 = vmul.f32 %v3222_v55, %v3222_v55 }
 0x1b6   : > { %v1876_v19 = vadd.f32 %v1875_v16, %v3210_v52  ;;  %v1945_v51 = vadd.f32 %v1944_v50, %v1914_v45  ;;  %v1919_v52 = vmul.f32 %v3224_v58, %v3224_v58 }
 0x1b8   : > { %v1946_v63 = vadd.f32 %v1945_v51, %v1915_v47  ;;  %v1877_v1 = vadd.f32 %v1876_v19, %v3212_v53  ;;  %v1920_v53 = vmul.f32 %v3226_v8, %v3226_v8 }
 0x1ba   : > { %v1878_v18 = vadd.f32 %v1877_v1, %v3214_v54  ;;  %v1947_v56 = vadd.f32 %v1946_v63, %v1916_v17  ;;  %v1921_v54 = vmul.f32 %v3228_v2, %v3228_v2 }
 0x1bc   : > { %v1948_v57 = vadd.f32 %v1947_v56, %v1917_v48  ;;  %v1879_v59 = vadd.f32 %v1878_v18, %v3222_v55  ;;  %v1922_v55 = vmul.f32 %v3236_v20, %v3236_v20 }
 0x1be   : > { %v1880_v60 = vadd.f32 %v1879_v59, %v3224_v58  ;;  %v1949_v62 = vadd.f32 %v1948_v57, %v1918_v61  ;;  %v1923_v58 = vmul.f32 %v3238_v4, %v3238_v4 }
 0x1c0   : > { %v1950_v23 = vadd.f32 %v1949_v62, %v1919_v52  ;;  %v1881_v0 = vadd.f32 %v1880_v60, %v3226_v8  ;;  %v1924_v8 = vmul.f32 %v3240_v3, %v3240_v3 }
 0x1c2   : > { %v1882_v5 = vadd.f32 %v1881_v0, %v3228_v2  ;;  %v1951_v25 = vadd.f32 %v1950_v23, %v1920_v53  ;;  %v1925_v2 = vmul.f32 %v3242_v26, %v3242_v26 }
 0x1c4   : > { %v1952_v21 = vadd.f32 %v1951_v25, %v1921_v54  ;;  %v1883_v29 = vadd.f32 %v1882_v5, %v3236_v20  ;;  %v1926_v20 = vmul.f32 %v3252_v6, %v3252_v6 }
 0x1c6   : > { %v1884_v28 = vadd.f32 %v1883_v29, %v3238_v4  ;;  %v1953_v32 = vadd.f32 %v1952_v21, %v1922_v55  ;;  %v1927_v4 = vmul.f32 %v3254_v31, %v3254_v31 }
 0x1c8   : > { %v1954_v7 = vadd.f32 %v1953_v32, %v1923_v58  ;;  %v1885_v33 = vadd.f32 %v1884_v28, %v3240_v3 }
 0x1ca   : > { %v1886_v22 = vadd.f32 %v1885_v33, %v3242_v26  ;;  %v1955_v9 = vadd.f32 %v1954_v7, %v1924_v8 }
 0x1cc   : > { %v1956_v34 = vadd.f32 %v1955_v9, %v1925_v2  ;;  %v1887_v35 = vadd.f32 %v1886_v22, %v3252_v6 }
 0x1ce   : > { %v1888_v36 = vadd.f32 %v1887_v35, %v3254_v31  ;;  %v1957_v3 = vadd.f32 %v1956_v34, %v1926_v20 }
 0x1d0   : > { %v1889_v37 = vrot.slane %v1888_v36, 4  ;;  %v1958_v10 = vadd.f32 %v1957_v3, %v1927_v4 }
 0x1d2   : > { %v1890_v11 = vadd.f32 %v1889_v37, %v1888_v36  ;;  %v1959_v24 = vrot.slane %v1958_v10, 4 }
 0x1d4   : > { %v1891_v26 = vrot.slane %v1890_v11, 2  ;;  %v1960_v38 = vadd.f32 %v1959_v24, %v1958_v10 }
 0x1d6   : > { %v1892_v39 = vadd.f32 %v1891_v26, %v1890_v11  ;;  %v1961_v41 = vrot.slane %v1960_v38, 2 }
 0x1d8   : > { %v1893_v40 = vrot.slane %v1892_v39, 1  ;;  %v1962_v13 = vadd.f32 %v1961_v41, %v1960_v38 }
 0x1da   : > { %v1894_v12 = vadd.f32 %v1893_v40, %v1892_v39  ;;  %v1963_v6 = vrot.slane %v1962_v13, 1 }
 0x1dc   : > { %1895 = vst [vmem:[%s2806_s12] sm:$0x1] %v1894_v12  ;;  %v1964_v27 = vadd.f32 %v1963_v6, %v1962_v13 }
 0x1de   : > { %1965 = vst [vmem:[%s2806_s12 + $0x1] sm:$0x1] %v1964_v27 }
 0x1df PF: > { %s16_s22 = sadd.s32 1, %s2726_s22   ;;  %s3351_s18 = smov %s2718_s20 }
 0x1e0   : > { %p13_p9 = scmp.ge.s32.totalorder %s16_s22, 8   ;;  %s3352_s19 = smov %s2722_s21 }
 0x1e1   : > { %s3353_s20 = smov %s3356_s23  ;;  %s3354_s21 = smov %s3360_s24 }
 0x1e2   :  { %15 = sbr.rel (!%p13_p9) target bundleno = 3 (0x3), region = 94 }

</bundles_post_ra>
